<compile_context>
chip_gen: v7x
topology: tpu7x:2x2x1
jax: 0.10.0
libtpu: 0.0.40
codegen_flags: <defaults>
</compile_context>

<pallas_src>
import functools
import math

import jax
import jax.numpy as jnp
from jax.experimental import pallas as pl
from jax.experimental.pallas import tpu as pltpu


# -----------------------------------------------------------------------------
# Fused encoder-layer kernel (single grid step, everything VMEM-resident)
# -----------------------------------------------------------------------------
def _encoder_layer_kernel(nhead, scale, eps,
                          x_ref, w_in_ref, b_in_ref, w_out_ref, b_out_ref,
                          g1_ref, be1_ref, w1_ref, b1_ref, w2_ref, b2_ref,
                          g2_ref, be2_ref, o_ref):
    S, B, E = x_ref.shape
    D = E // nhead
    bf16 = jnp.bfloat16
    f32 = jnp.float32

    w_in = w_in_ref[...]            # (E, 3E) bf16
    b_in = b_in_ref[...]            # (1, 3E) f32
    b_out = b_out_ref[...]          # (1, E)  f32
    g1, be1 = g1_ref[...], be1_ref[...]
    w1, b1 = w1_ref[...], b1_ref[...]      # (E, FF) bf16, (1, FF) f32
    w2, b2 = w2_ref[...], b2_ref[...]      # (FF, E) bf16, (1, E) f32
    g2, be2 = g2_ref[...], be2_ref[...]

    def layer_norm(y, g, be):
        mu = jnp.mean(y, axis=-1, keepdims=True)
        var = jnp.mean(jnp.square(y - mu), axis=-1, keepdims=True)
        return (y - mu) * jax.lax.rsqrt(var + eps) * g + be

    # Small unrolled loop over batch (B=2) inside ONE grid step; avoids any
    # cross-batch attention mixing without reshapes/concats/masks.
    for b in range(B):
        x = x_ref[:, b, :]                                   # (S, E) f32

        # Fused QKV projection (MXU, bf16 operands, f32 accumulate).
        qkv = jnp.dot(x.astype(bf16), w_in,
                      preferred_element_type=f32) + b_in     # (S, 3E) f32
        q = qkv[:, 0:E]
        k = qkv[:, E:2 * E]
        v = qkv[:, 2 * E:3 * E]

        # Per-head attention; out-projection accumulated head-by-head
        # (no jnp.concatenate -> no XLU relayout traffic).
        proj = None
        for h in range(nhead):                               # unrolled (4)
            qh = q[:, h * D:(h + 1) * D].astype(bf16)        # (S, D)
            kh = k[:, h * D:(h + 1) * D].astype(bf16)
            vh = v[:, h * D:(h + 1) * D].astype(bf16)
            s = jax.lax.dot_general(qh, kh, (((1,), (1,)), ((), ())),
                                    preferred_element_type=f32) * scale
            s = s - jnp.max(s, axis=-1, keepdims=True)
            p = jnp.exp(s)
            p = p * pl.reciprocal(jnp.sum(p, axis=-1, keepdims=True),
                                  approx=True)               # EUP, not VALU
            ah = jnp.dot(p.astype(bf16), vh,
                         preferred_element_type=f32)         # (S, D) f32
            # Partial out-projection for this head (w_out rows are f32 and
            # D-aligned to the sublane tile; cast the slice to bf16 for MXU).
            w_out_h = w_out_ref[h * D:(h + 1) * D, :].astype(bf16)   # (D, E)
            c = jnp.dot(ah.astype(bf16), w_out_h,
                        preferred_element_type=f32)          # (S, E) f32
            proj = c if proj is None else proj + c

        # Residual + LayerNorm1 (dropout = identity in eval mode).
        y1 = layer_norm(x + proj + b_out, g1, be1)           # (S, E) f32

        # Feed-forward: linear1 + ReLU -> linear2, residual, LayerNorm2.
        hdn = jnp.dot(y1.astype(bf16), w1, preferred_element_type=f32)
        hdn = jnp.maximum(hdn + b1, 0.0)                     # (S, FF) f32
        y2 = jnp.dot(hdn.astype(bf16), w2, preferred_element_type=f32)
        y2 = y2 + b2 + y1

        o_ref[:, b, :] = layer_norm(y2, g2, be2).astype(o_ref.dtype)


# -----------------------------------------------------------------------------
# Forward pass (mirrors nn.TransformerEncoder(encoder_layer, num_layers=1))
# -----------------------------------------------------------------------------
def transformer_encoder_forward(params, src, *, nhead, eps=1e-5):
    """src: (S, B, E) float32 (PyTorch batch_first=False layout) -> (S, B, E)."""
    S, B, E = src.shape
    FF = params['w1'].shape[1]
    scale = 1.0 / math.sqrt(E // nhead)
    kernel = functools.partial(_encoder_layer_kernel, nhead, scale, eps)
    return pl.pallas_call(
        kernel,
        out_shape=jax.ShapeDtypeStruct((S, B, E), jnp.float32),
        grid_spec=pltpu.PrefetchScalarGridSpec(
            num_scalar_prefetch=0,
            grid=(1,),                                       # single step
            in_specs=[
                pl.BlockSpec((S, B, E), lambda i: (0, 0, 0)),   # src
                pl.BlockSpec((E, 3 * E), lambda i: (0, 0)),     # w_in  (bf16)
                pl.BlockSpec((1, 3 * E), lambda i: (0, 0)),     # b_in
                pl.BlockSpec((E, E), lambda i: (0, 0)),         # w_out (f32)
                pl.BlockSpec((1, E), lambda i: (0, 0)),         # b_out
                pl.BlockSpec((1, E), lambda i: (0, 0)),         # ln1 gamma
                pl.BlockSpec((1, E), lambda i: (0, 0)),         # ln1 beta
                pl.BlockSpec((E, FF), lambda i: (0, 0)),        # w1 (bf16)
                pl.BlockSpec((1, FF), lambda i: (0, 0)),        # b1
                pl.BlockSpec((FF, E), lambda i: (0, 0)),        # w2 (bf16)
                pl.BlockSpec((1, E), lambda i: (0, 0)),         # b2
                pl.BlockSpec((1, E), lambda i: (0, 0)),         # ln2 gamma
                pl.BlockSpec((1, E), lambda i: (0, 0)),         # ln2 beta
            ],
            out_specs=pl.BlockSpec((S, B, E), lambda i: (0, 0, 0)),
        ),
        compiler_params=pltpu.CompilerParams(
            dimension_semantics=("arbitrary",)),
    )(src.astype(jnp.float32),
      params['w_in'], params['b_in'], params['w_out'], params['b_out'],
      params['g1'], params['be1'],
      params['w1'], params['b1'], params['w2'], params['b2'],
      params['g2'], params['be2'])


# -----------------------------------------------------------------------------
# Parameter init (PyTorch layout) + one-time kernel-friendly re-layout
# -----------------------------------------------------------------------------
def init_params(key, embed_size, dim_feedforward=2048):
    E, FF = embed_size, dim_feedforward
    ks = jax.random.split(key, 8)

    def lin(k, fan_in, shape):
        bound = 1.0 / math.sqrt(fan_in)
        return jax.random.uniform(k, shape, jnp.float32, -bound, bound)

    return {
        'in_proj_weight': lin(ks[0], E, (3 * E, E)),
        'in_proj_bias': jnp.zeros((3 * E,), jnp.float32),
        'out_proj_weight': lin(ks[1], E, (E, E)),
        'out_proj_bias': jnp.zeros((E,), jnp.float32),
        'linear1_weight': lin(ks[2], E, (FF, E)),
        'linear1_bias': lin(ks[3], E, (FF,)),
        'linear2_weight': lin(ks[4], FF, (E, FF)),
        'linear2_bias': lin(ks[5], FF, (E,)),
        'norm1_weight': jnp.ones((E,), jnp.float32),
        'norm1_bias': jnp.zeros((E,), jnp.float32),
        'norm2_weight': jnp.ones((E,), jnp.float32),
        'norm2_bias': jnp.zeros((E,), jnp.float32),
    }


def prepare_params(raw):
    """One-time re-layout OUTSIDE the jitted forward: transpose weights to
    (in, out), cast the big MXU operands to bf16, reshape biases / LN affines
    to lane-dense (1, N) rows.  w_out stays f32 so its per-head row slices are
    sublane-tile aligned (cast to bf16 inside the kernel)."""
    f32, bf16 = jnp.float32, jnp.bfloat16
    return {
        'w_in': raw['in_proj_weight'].T.astype(bf16),     # (E, 3E)
        'b_in': raw['in_proj_bias'].reshape(1, -1).astype(f32),
        'w_out': raw['out_proj_weight'].T.astype(f32),    # (E, E)
        'b_out': raw['out_proj_bias'].reshape(1, -1).astype(f32),
        'w1': raw['linear1_weight'].T.astype(bf16),       # (E, FF)
        'b1': raw['linear1_bias'].reshape(1, -1).astype(f32),
        'w2': raw['linear2_weight'].T.astype(bf16),       # (FF, E)
        'b2': raw['linear2_bias'].reshape(1, -1).astype(f32),
        'g1': raw['norm1_weight'].reshape(1, -1).astype(f32),
        'be1': raw['norm1_bias'].reshape(1, -1).astype(f32),
        'g2': raw['norm2_weight'].reshape(1, -1).astype(f32),
        'be2': raw['norm2_bias'].reshape(1, -1).astype(f32),
    }


# -----------------------------------------------------------------------------
# Pure-JAX reference (same bf16 matmul precision) for correctness check
# -----------------------------------------------------------------------------
def _reference_forward(params, src, *, nhead, eps=1e-5):
    bf16, f32 = jnp.bfloat16, jnp.float32
    S, B, E = src.shape
    D = E // nhead
    scale = 1.0 / math.sqrt(D)

    def ln(y, g, be):
        mu = jnp.mean(y, axis=-1, keepdims=True)
        var = jnp.mean(jnp.square(y - mu), axis=-1, keepdims=True)
        return (y - mu) * jax.lax.rsqrt(var + eps) * g + be

    outs = []
    for b in range(B):
        x = src[:, b, :].astype(f32)
        qkv = jnp.dot(x.astype(bf16), params['w_in'],
                      preferred_element_type=f32) + params['b_in']
        q, k, v = qkv[:, :E], qkv[:, E:2 * E], qkv[:, 2 * E:]
        heads = []
        for h in range(nhead):
            qh = q[:, h * D:(h + 1) * D].astype(bf16)
            kh = k[:, h * D:(h + 1) * D].astype(bf16)
            vh = v[:, h * D:(h + 1) * D].astype(bf16)
            s = jnp.dot(qh, kh.T, preferred_element_type=f32) * scale
            p = jax.nn.softmax(s, axis=-1)
            heads.append(jnp.dot(p.astype(bf16), vh, preferred_element_type=f32))
        a = jnp.concatenate(heads, axis=-1)
        proj = jnp.dot(a.astype(bf16), params['w_out'].astype(bf16),
                       preferred_element_type=f32) + params['b_out']
        y1 = ln(x + proj, params['g1'], params['be1'])
        hdn = jnp.maximum(jnp.dot(y1.astype(bf16), params['w1'],
                                  preferred_element_type=f32) + params['b1'], 0.0)
        y2 = jnp.dot(hdn.astype(bf16), params['w2'],
                     preferred_element_type=f32) + params['b2'] + y1
        outs.append(ln(y2, params['g2'], params['be2']))
    return jnp.stack(outs, axis=1)                           # (S, B, E)


if __name__ == "__main__":
    EMBED, NHEAD, SEQ, BATCH = 32, 4, 8, 2   # embed_size=32, num_heads=4, max_len=8

    key = jax.random.PRNGKey(0)
    pkey, dkey = jax.random.split(key)
    raw = init_params(pkey, EMBED)
    params = prepare_params(raw)             # one-time weight prep, outside jit

    # src: (seq, batch, embed) — PyTorch default batch_first=False layout
    src = jax.random.normal(dkey, (SEQ, BATCH, EMBED), jnp.float32)

    fwd = jax.jit(functools.partial(transformer_encoder_forward, nhead=NHEAD))
    out = jax.block_until_ready(fwd(params, src))

    assert out.shape == (SEQ, BATCH, EMBED) and out.dtype == jnp.float32
    assert bool(jnp.all(jnp.isfinite(out)))

    ref = _reference_forward(params, src, nhead=NHEAD)
    max_err = float(jnp.max(jnp.abs(out - ref)))
    assert max_err < 5e-2, f"kernel/reference mismatch: max abs err = {max_err}"
    print("KERNEL_OK")
</pallas_src>

<mosaic_0001>
module attributes {stable_mosaic.version = 11 : i64} {
  func.func @_encoder_layer_kernel(%arg0: i32, %arg1: memref<8x2x32xf32, #tpu.memory_space<vmem>>, %arg2: memref<32x96xbf16, #tpu.memory_space<vmem>>, %arg3: memref<1x96xf32, #tpu.memory_space<vmem>>, %arg4: memref<32x32xf32, #tpu.memory_space<vmem>>, %arg5: memref<1x32xf32, #tpu.memory_space<vmem>>, %arg6: memref<1x32xf32, #tpu.memory_space<vmem>>, %arg7: memref<1x32xf32, #tpu.memory_space<vmem>>, %arg8: memref<32x2048xbf16, #tpu.memory_space<vmem>>, %arg9: memref<1x2048xf32, #tpu.memory_space<vmem>>, %arg10: memref<2048x32xbf16, #tpu.memory_space<vmem>>, %arg11: memref<1x32xf32, #tpu.memory_space<vmem>>, %arg12: memref<1x32xf32, #tpu.memory_space<vmem>>, %arg13: memref<1x32xf32, #tpu.memory_space<vmem>>, %arg14: memref<8x2x32xf32, #tpu.memory_space<vmem>>) attributes {dimension_semantics = [#tpu.dimension_semantics<arbitrary>], iteration_bounds = array<i64: 1>, scalar_prefetch = 0 : i64, scratch_operands = 0 : i64, tpu.core_type = #tpu.core_type<tc>, window_params = [{pipeline_mode = #tpu.pipeline_mode<synchronous>, transform_indices = @transform_0, window_bounds = array<i64: 8, 2, 32>}, {pipeline_mode = #tpu.pipeline_mode<synchronous>, transform_indices = @transform_1, window_bounds = array<i64: 32, 96>}, {pipeline_mode = #tpu.pipeline_mode<synchronous>, transform_indices = @transform_2, window_bounds = array<i64: 1, 96>}, {pipeline_mode = #tpu.pipeline_mode<synchronous>, transform_indices = @transform_3, window_bounds = array<i64: 32, 32>}, {pipeline_mode = #tpu.pipeline_mode<synchronous>, transform_indices = @transform_4, window_bounds = array<i64: 1, 32>}, {pipeline_mode = #tpu.pipeline_mode<synchronous>, transform_indices = @transform_5, window_bounds = array<i64: 1, 32>}, {pipeline_mode = #tpu.pipeline_mode<synchronous>, transform_indices = @transform_6, window_bounds = array<i64: 1, 32>}, {pipeline_mode = #tpu.pipeline_mode<synchronous>, transform_indices = @transform_7, window_bounds = array<i64: 32, 2048>}, {pipeline_mode = #tpu.pipeline_mode<synchronous>, transform_indices = @transform_8, window_bounds = array<i64: 1, 2048>}, {pipeline_mode = #tpu.pipeline_mode<synchronous>, transform_indices = @transform_9, window_bounds = array<i64: 2048, 32>}, {pipeline_mode = #tpu.pipeline_mode<synchronous>, transform_indices = @transform_10, window_bounds = array<i64: 1, 32>}, {pipeline_mode = #tpu.pipeline_mode<synchronous>, transform_indices = @transform_11, window_bounds = array<i64: 1, 32>}, {pipeline_mode = #tpu.pipeline_mode<synchronous>, transform_indices = @transform_12, window_bounds = array<i64: 1, 32>}, {pipeline_mode = #tpu.pipeline_mode<synchronous>, transform_indices = @transform_13, window_bounds = array<i64: 8, 2, 32>}]} {
    %c0 = arith.constant 0 : index
    %c0_0 = arith.constant 0 : index
    %0 = vector.load %arg2[%c0, %c0_0] : memref<32x96xbf16, #tpu.memory_space<vmem>>, vector<32x96xbf16>
    %c0_1 = arith.constant 0 : index
    %c0_2 = arith.constant 0 : index
    %1 = vector.load %arg3[%c0_1, %c0_2] : memref<1x96xf32, #tpu.memory_space<vmem>>, vector<1x96xf32>
    %c0_3 = arith.constant 0 : index
    %c0_4 = arith.constant 0 : index
    %2 = vector.load %arg5[%c0_3, %c0_4] : memref<1x32xf32, #tpu.memory_space<vmem>>, vector<1x32xf32>
    %c0_5 = arith.constant 0 : index
    %c0_6 = arith.constant 0 : index
    %3 = vector.load %arg6[%c0_5, %c0_6] : memref<1x32xf32, #tpu.memory_space<vmem>>, vector<1x32xf32>
    %c0_7 = arith.constant 0 : index
    %c0_8 = arith.constant 0 : index
    %4 = vector.load %arg7[%c0_7, %c0_8] : memref<1x32xf32, #tpu.memory_space<vmem>>, vector<1x32xf32>
    %c0_9 = arith.constant 0 : index
    %c0_10 = arith.constant 0 : index
    %5 = vector.load %arg8[%c0_9, %c0_10] : memref<32x2048xbf16, #tpu.memory_space<vmem>>, vector<32x2048xbf16>
    %c0_11 = arith.constant 0 : index
    %c0_12 = arith.constant 0 : index
    %6 = vector.load %arg9[%c0_11, %c0_12] : memref<1x2048xf32, #tpu.memory_space<vmem>>, vector<1x2048xf32>
    %c0_13 = arith.constant 0 : index
    %c0_14 = arith.constant 0 : index
    %7 = vector.load %arg10[%c0_13, %c0_14] : memref<2048x32xbf16, #tpu.memory_space<vmem>>, vector<2048x32xbf16>
    %c0_15 = arith.constant 0 : index
    %c0_16 = arith.constant 0 : index
    %8 = vector.load %arg11[%c0_15, %c0_16] : memref<1x32xf32, #tpu.memory_space<vmem>>, vector<1x32xf32>
    %c0_17 = arith.constant 0 : index
    %c0_18 = arith.constant 0 : index
    %9 = vector.load %arg12[%c0_17, %c0_18] : memref<1x32xf32, #tpu.memory_space<vmem>>, vector<1x32xf32>
    %c0_19 = arith.constant 0 : index
    %c0_20 = arith.constant 0 : index
    %10 = vector.load %arg13[%c0_19, %c0_20] : memref<1x32xf32, #tpu.memory_space<vmem>>, vector<1x32xf32>
    %c0_21 = arith.constant 0 : index
    %c0_22 = arith.constant 0 : index
    %c0_23 = arith.constant 0 : index
    %11 = vector.load %arg1[%c0_21, %c0_22, %c0_23] : memref<8x2x32xf32, #tpu.memory_space<vmem>>, vector<8x1x32xf32>
    %12 = vector.shape_cast %11 : vector<8x1x32xf32> to vector<8x32xf32>
    %13 = arith.truncf %12 : vector<8x32xf32> to vector<8x32xbf16>
    %cst = arith.constant dense<0.000000e+00> : vector<8x96xf32>
    %14 = tpu.matmul %13, %0, %cst {dimension_numbers = #tpu.dot_dimension_numbers<[1], [0], [0], [1], [0, 0, 1, 1], [], []>} : vector<8x32xbf16>, vector<32x96xbf16>, vector<8x96xf32> -> vector<8x96xf32>
    %15 = vector.broadcast %1 : vector<1x96xf32> to vector<8x96xf32>
    %16 = arith.addf %14, %15 : vector<8x96xf32>
    %17 = vector.extract_strided_slice %16 {offsets = [0, 0], sizes = [8, 32], strides = [1, 1]} : vector<8x96xf32> to vector<8x32xf32>
    %18 = vector.extract_strided_slice %16 {offsets = [0, 32], sizes = [8, 32], strides = [1, 1]} : vector<8x96xf32> to vector<8x32xf32>
    %19 = vector.extract_strided_slice %16 {offsets = [0, 64], sizes = [8, 32], strides = [1, 1]} : vector<8x96xf32> to vector<8x32xf32>
    %20 = vector.extract_strided_slice %17 {offsets = [0, 0], sizes = [8, 8], strides = [1, 1]} : vector<8x32xf32> to vector<8x8xf32>
    %21 = arith.truncf %20 : vector<8x8xf32> to vector<8x8xbf16>
    %22 = vector.extract_strided_slice %18 {offsets = [0, 0], sizes = [8, 8], strides = [1, 1]} : vector<8x32xf32> to vector<8x8xf32>
    %23 = arith.truncf %22 : vector<8x8xf32> to vector<8x8xbf16>
    %24 = vector.extract_strided_slice %19 {offsets = [0, 0], sizes = [8, 8], strides = [1, 1]} : vector<8x32xf32> to vector<8x8xf32>
    %25 = arith.truncf %24 : vector<8x8xf32> to vector<8x8xbf16>
    %cst_24 = arith.constant dense<0.000000e+00> : vector<8x8xf32>
    %26 = tpu.matmul %21, %23, %cst_24 {dimension_numbers = #tpu.dot_dimension_numbers<[1], [1], [0], [0], [0, 0, 1, 0], [], []>} : vector<8x8xbf16>, vector<8x8xbf16>, vector<8x8xf32> -> vector<8x8xf32>
    %cst_25 = arith.constant 0.353553385 : f32
    %27 = vector.broadcast %cst_25 : f32 to vector<8x8xf32>
    %28 = arith.mulf %26, %27 : vector<8x8xf32>
    %cst_26 = arith.constant dense<0xFF800000> : vector<8xf32>
    %29 = vector.multi_reduction <maximumf>, %28, %cst_26 [1] : vector<8x8xf32> to vector<8xf32>
    %30 = vector.shape_cast %29 : vector<8xf32> to vector<8x1xf32>
    %31 = vector.broadcast %30 : vector<8x1xf32> to vector<8x8xf32>
    %32 = arith.subf %28, %31 : vector<8x8xf32>
    %33 = math.exp %32 : vector<8x8xf32>
    %cst_27 = arith.constant dense<0.000000e+00> : vector<8xf32>
    %34 = vector.multi_reduction <add>, %33, %cst_27 [1] : vector<8x8xf32> to vector<8xf32>
    %35 = vector.shape_cast %34 : vector<8xf32> to vector<8x1xf32>
    %36 = tpu.reciprocal %35 {approx = true} : vector<8x1xf32> -> vector<8x1xf32>
    %37 = vector.broadcast %36 : vector<8x1xf32> to vector<8x8xf32>
    %38 = arith.mulf %33, %37 : vector<8x8xf32>
    %39 = arith.truncf %38 : vector<8x8xf32> to vector<8x8xbf16>
    %cst_28 = arith.constant dense<0.000000e+00> : vector<8x8xf32>
    %40 = tpu.matmul %39, %25, %cst_28 {dimension_numbers = #tpu.dot_dimension_numbers<[1], [0], [0], [1], [0, 0, 1, 1], [], []>} : vector<8x8xbf16>, vector<8x8xbf16>, vector<8x8xf32> -> vector<8x8xf32>
    %c0_29 = arith.constant 0 : index
    %c0_30 = arith.constant 0 : index
    %41 = vector.load %arg4[%c0_29, %c0_30] : memref<32x32xf32, #tpu.memory_space<vmem>>, vector<8x32xf32>
    %42 = arith.truncf %41 : vector<8x32xf32> to vector<8x32xbf16>
    %43 = arith.truncf %40 : vector<8x8xf32> to vector<8x8xbf16>
    %cst_31 = arith.constant dense<0.000000e+00> : vector<8x32xf32>
    %44 = tpu.matmul %43, %42, %cst_31 {dimension_numbers = #tpu.dot_dimension_numbers<[1], [0], [0], [1], [0, 0, 1, 1], [], []>} : vector<8x8xbf16>, vector<8x32xbf16>, vector<8x32xf32> -> vector<8x32xf32>
    %45 = vector.extract_strided_slice %17 {offsets = [0, 8], sizes = [8, 8], strides = [1, 1]} : vector<8x32xf32> to vector<8x8xf32>
    %46 = arith.truncf %45 : vector<8x8xf32> to vector<8x8xbf16>
    %47 = vector.extract_strided_slice %18 {offsets = [0, 8], sizes = [8, 8], strides = [1, 1]} : vector<8x32xf32> to vector<8x8xf32>
    %48 = arith.truncf %47 : vector<8x8xf32> to vector<8x8xbf16>
    %49 = vector.extract_strided_slice %19 {offsets = [0, 8], sizes = [8, 8], strides = [1, 1]} : vector<8x32xf32> to vector<8x8xf32>
    %50 = arith.truncf %49 : vector<8x8xf32> to vector<8x8xbf16>
    %cst_32 = arith.constant dense<0.000000e+00> : vector<8x8xf32>
    %51 = tpu.matmul %46, %48, %cst_32 {dimension_numbers = #tpu.dot_dimension_numbers<[1], [1], [0], [0], [0, 0, 1, 0], [], []>} : vector<8x8xbf16>, vector<8x8xbf16>, vector<8x8xf32> -> vector<8x8xf32>
    %cst_33 = arith.constant 0.353553385 : f32
    %52 = vector.broadcast %cst_33 : f32 to vector<8x8xf32>
    %53 = arith.mulf %51, %52 : vector<8x8xf32>
    %cst_34 = arith.constant dense<0xFF800000> : vector<8xf32>
    %54 = vector.multi_reduction <maximumf>, %53, %cst_34 [1] : vector<8x8xf32> to vector<8xf32>
    %55 = vector.shape_cast %54 : vector<8xf32> to vector<8x1xf32>
    %56 = vector.broadcast %55 : vector<8x1xf32> to vector<8x8xf32>
    %57 = arith.subf %53, %56 : vector<8x8xf32>
    %58 = math.exp %57 : vector<8x8xf32>
    %cst_35 = arith.constant dense<0.000000e+00> : vector<8xf32>
    %59 = vector.multi_reduction <add>, %58, %cst_35 [1] : vector<8x8xf32> to vector<8xf32>
    %60 = vector.shape_cast %59 : vector<8xf32> to vector<8x1xf32>
    %61 = tpu.reciprocal %60 {approx = true} : vector<8x1xf32> -> vector<8x1xf32>
    %62 = vector.broadcast %61 : vector<8x1xf32> to vector<8x8xf32>
    %63 = arith.mulf %58, %62 : vector<8x8xf32>
    %64 = arith.truncf %63 : vector<8x8xf32> to vector<8x8xbf16>
    %cst_36 = arith.constant dense<0.000000e+00> : vector<8x8xf32>
    %65 = tpu.matmul %64, %50, %cst_36 {dimension_numbers = #tpu.dot_dimension_numbers<[1], [0], [0], [1], [0, 0, 1, 1], [], []>} : vector<8x8xbf16>, vector<8x8xbf16>, vector<8x8xf32> -> vector<8x8xf32>
    %c8 = arith.constant 8 : index
    %c0_37 = arith.constant 0 : index
    %66 = vector.load %arg4[%c8, %c0_37] : memref<32x32xf32, #tpu.memory_space<vmem>>, vector<8x32xf32>
    %67 = arith.truncf %66 : vector<8x32xf32> to vector<8x32xbf16>
    %68 = arith.truncf %65 : vector<8x8xf32> to vector<8x8xbf16>
    %cst_38 = arith.constant dense<0.000000e+00> : vector<8x32xf32>
    %69 = tpu.matmul %68, %67, %cst_38 {dimension_numbers = #tpu.dot_dimension_numbers<[1], [0], [0], [1], [0, 0, 1, 1], [], []>} : vector<8x8xbf16>, vector<8x32xbf16>, vector<8x32xf32> -> vector<8x32xf32>
    %70 = arith.addf %44, %69 : vector<8x32xf32>
    %71 = vector.extract_strided_slice %17 {offsets = [0, 16], sizes = [8, 8], strides = [1, 1]} : vector<8x32xf32> to vector<8x8xf32>
    %72 = arith.truncf %71 : vector<8x8xf32> to vector<8x8xbf16>
    %73 = vector.extract_strided_slice %18 {offsets = [0, 16], sizes = [8, 8], strides = [1, 1]} : vector<8x32xf32> to vector<8x8xf32>
    %74 = arith.truncf %73 : vector<8x8xf32> to vector<8x8xbf16>
    %75 = vector.extract_strided_slice %19 {offsets = [0, 16], sizes = [8, 8], strides = [1, 1]} : vector<8x32xf32> to vector<8x8xf32>
    %76 = arith.truncf %75 : vector<8x8xf32> to vector<8x8xbf16>
    %cst_39 = arith.constant dense<0.000000e+00> : vector<8x8xf32>
    %77 = tpu.matmul %72, %74, %cst_39 {dimension_numbers = #tpu.dot_dimension_numbers<[1], [1], [0], [0], [0, 0, 1, 0], [], []>} : vector<8x8xbf16>, vector<8x8xbf16>, vector<8x8xf32> -> vector<8x8xf32>
    %cst_40 = arith.constant 0.353553385 : f32
    %78 = vector.broadcast %cst_40 : f32 to vector<8x8xf32>
    %79 = arith.mulf %77, %78 : vector<8x8xf32>
    %cst_41 = arith.constant dense<0xFF800000> : vector<8xf32>
    %80 = vector.multi_reduction <maximumf>, %79, %cst_41 [1] : vector<8x8xf32> to vector<8xf32>
    %81 = vector.shape_cast %80 : vector<8xf32> to vector<8x1xf32>
    %82 = vector.broadcast %81 : vector<8x1xf32> to vector<8x8xf32>
    %83 = arith.subf %79, %82 : vector<8x8xf32>
    %84 = math.exp %83 : vector<8x8xf32>
    %cst_42 = arith.constant dense<0.000000e+00> : vector<8xf32>
    %85 = vector.multi_reduction <add>, %84, %cst_42 [1] : vector<8x8xf32> to vector<8xf32>
    %86 = vector.shape_cast %85 : vector<8xf32> to vector<8x1xf32>
    %87 = tpu.reciprocal %86 {approx = true} : vector<8x1xf32> -> vector<8x1xf32>
    %88 = vector.broadcast %87 : vector<8x1xf32> to vector<8x8xf32>
    %89 = arith.mulf %84, %88 : vector<8x8xf32>
    %90 = arith.truncf %89 : vector<8x8xf32> to vector<8x8xbf16>
    %cst_43 = arith.constant dense<0.000000e+00> : vector<8x8xf32>
    %91 = tpu.matmul %90, %76, %cst_43 {dimension_numbers = #tpu.dot_dimension_numbers<[1], [0], [0], [1], [0, 0, 1, 1], [], []>} : vector<8x8xbf16>, vector<8x8xbf16>, vector<8x8xf32> -> vector<8x8xf32>
    %c16 = arith.constant 16 : index
    %c0_44 = arith.constant 0 : index
    %92 = vector.load %arg4[%c16, %c0_44] : memref<32x32xf32, #tpu.memory_space<vmem>>, vector<8x32xf32>
    %93 = arith.truncf %92 : vector<8x32xf32> to vector<8x32xbf16>
    %94 = arith.truncf %91 : vector<8x8xf32> to vector<8x8xbf16>
    %cst_45 = arith.constant dense<0.000000e+00> : vector<8x32xf32>
    %95 = tpu.matmul %94, %93, %cst_45 {dimension_numbers = #tpu.dot_dimension_numbers<[1], [0], [0], [1], [0, 0, 1, 1], [], []>} : vector<8x8xbf16>, vector<8x32xbf16>, vector<8x32xf32> -> vector<8x32xf32>
    %96 = arith.addf %70, %95 : vector<8x32xf32>
    %97 = vector.extract_strided_slice %17 {offsets = [0, 24], sizes = [8, 8], strides = [1, 1]} : vector<8x32xf32> to vector<8x8xf32>
    %98 = arith.truncf %97 : vector<8x8xf32> to vector<8x8xbf16>
    %99 = vector.extract_strided_slice %18 {offsets = [0, 24], sizes = [8, 8], strides = [1, 1]} : vector<8x32xf32> to vector<8x8xf32>
    %100 = arith.truncf %99 : vector<8x8xf32> to vector<8x8xbf16>
    %101 = vector.extract_strided_slice %19 {offsets = [0, 24], sizes = [8, 8], strides = [1, 1]} : vector<8x32xf32> to vector<8x8xf32>
    %102 = arith.truncf %101 : vector<8x8xf32> to vector<8x8xbf16>
    %cst_46 = arith.constant dense<0.000000e+00> : vector<8x8xf32>
    %103 = tpu.matmul %98, %100, %cst_46 {dimension_numbers = #tpu.dot_dimension_numbers<[1], [1], [0], [0], [0, 0, 1, 0], [], []>} : vector<8x8xbf16>, vector<8x8xbf16>, vector<8x8xf32> -> vector<8x8xf32>
    %cst_47 = arith.constant 0.353553385 : f32
    %104 = vector.broadcast %cst_47 : f32 to vector<8x8xf32>
    %105 = arith.mulf %103, %104 : vector<8x8xf32>
    %cst_48 = arith.constant dense<0xFF800000> : vector<8xf32>
    %106 = vector.multi_reduction <maximumf>, %105, %cst_48 [1] : vector<8x8xf32> to vector<8xf32>
    %107 = vector.shape_cast %106 : vector<8xf32> to vector<8x1xf32>
    %108 = vector.broadcast %107 : vector<8x1xf32> to vector<8x8xf32>
    %109 = arith.subf %105, %108 : vector<8x8xf32>
    %110 = math.exp %109 : vector<8x8xf32>
    %cst_49 = arith.constant dense<0.000000e+00> : vector<8xf32>
    %111 = vector.multi_reduction <add>, %110, %cst_49 [1] : vector<8x8xf32> to vector<8xf32>
    %112 = vector.shape_cast %111 : vector<8xf32> to vector<8x1xf32>
    %113 = tpu.reciprocal %112 {approx = true} : vector<8x1xf32> -> vector<8x1xf32>
    %114 = vector.broadcast %113 : vector<8x1xf32> to vector<8x8xf32>
    %115 = arith.mulf %110, %114 : vector<8x8xf32>
    %116 = arith.truncf %115 : vector<8x8xf32> to vector<8x8xbf16>
    %cst_50 = arith.constant dense<0.000000e+00> : vector<8x8xf32>
    %117 = tpu.matmul %116, %102, %cst_50 {dimension_numbers = #tpu.dot_dimension_numbers<[1], [0], [0], [1], [0, 0, 1, 1], [], []>} : vector<8x8xbf16>, vector<8x8xbf16>, vector<8x8xf32> -> vector<8x8xf32>
    %c24 = arith.constant 24 : index
    %c0_51 = arith.constant 0 : index
    %118 = vector.load %arg4[%c24, %c0_51] : memref<32x32xf32, #tpu.memory_space<vmem>>, vector<8x32xf32>
    %119 = arith.truncf %118 : vector<8x32xf32> to vector<8x32xbf16>
    %120 = arith.truncf %117 : vector<8x8xf32> to vector<8x8xbf16>
    %cst_52 = arith.constant dense<0.000000e+00> : vector<8x32xf32>
    %121 = tpu.matmul %120, %119, %cst_52 {dimension_numbers = #tpu.dot_dimension_numbers<[1], [0], [0], [1], [0, 0, 1, 1], [], []>} : vector<8x8xbf16>, vector<8x32xbf16>, vector<8x32xf32> -> vector<8x32xf32>
    %122 = arith.addf %96, %121 : vector<8x32xf32>
    %123 = arith.addf %12, %122 : vector<8x32xf32>
    %124 = vector.broadcast %2 : vector<1x32xf32> to vector<8x32xf32>
    %125 = arith.addf %123, %124 : vector<8x32xf32>
    %cst_53 = arith.constant dense<0.000000e+00> : vector<8xf32>
    %126 = vector.multi_reduction <add>, %125, %cst_53 [1] : vector<8x32xf32> to vector<8xf32>
    %127 = vector.shape_cast %126 : vector<8xf32> to vector<8x1xf32>
    %cst_54 = arith.constant 3.200000e+01 : f32
    %128 = vector.broadcast %cst_54 : f32 to vector<8x1xf32>
    %129 = arith.divf %127, %128 : vector<8x1xf32>
    %130 = vector.broadcast %129 : vector<8x1xf32> to vector<8x32xf32>
    %131 = arith.subf %125, %130 : vector<8x32xf32>
    %132 = arith.mulf %131, %131 : vector<8x32xf32>
    %cst_55 = arith.constant dense<0.000000e+00> : vector<8xf32>
    %133 = vector.multi_reduction <add>, %132, %cst_55 [1] : vector<8x32xf32> to vector<8xf32>
    %134 = vector.shape_cast %133 : vector<8xf32> to vector<8x1xf32>
    %cst_56 = arith.constant 3.200000e+01 : f32
    %135 = vector.broadcast %cst_56 : f32 to vector<8x1xf32>
    %136 = arith.divf %134, %135 : vector<8x1xf32>
    %137 = vector.broadcast %129 : vector<8x1xf32> to vector<8x32xf32>
    %138 = arith.subf %125, %137 : vector<8x32xf32>
    %cst_57 = arith.constant 9.99999974E-6 : f32
    %139 = vector.broadcast %cst_57 : f32 to vector<8x1xf32>
    %140 = arith.addf %136, %139 : vector<8x1xf32>
    %141 = math.rsqrt %140 : vector<8x1xf32>
    %142 = vector.broadcast %141 : vector<8x1xf32> to vector<8x32xf32>
    %143 = arith.mulf %138, %142 : vector<8x32xf32>
    %144 = vector.broadcast %3 : vector<1x32xf32> to vector<8x32xf32>
    %145 = arith.mulf %143, %144 : vector<8x32xf32>
    %146 = vector.broadcast %4 : vector<1x32xf32> to vector<8x32xf32>
    %147 = arith.addf %145, %146 : vector<8x32xf32>
    %148 = arith.truncf %147 : vector<8x32xf32> to vector<8x32xbf16>
    %cst_58 = arith.constant dense<0.000000e+00> : vector<8x2048xf32>
    %149 = tpu.matmul %148, %5, %cst_58 {dimension_numbers = #tpu.dot_dimension_numbers<[1], [0], [0], [1], [0, 0, 1, 1], [], []>} : vector<8x32xbf16>, vector<32x2048xbf16>, vector<8x2048xf32> -> vector<8x2048xf32>
    %150 = vector.broadcast %6 : vector<1x2048xf32> to vector<8x2048xf32>
    %151 = arith.addf %149, %150 : vector<8x2048xf32>
    %cst_59 = arith.constant 0.000000e+00 : f32
    %152 = vector.broadcast %cst_59 : f32 to vector<8x2048xf32>
    %153 = arith.maximumf %151, %152 : vector<8x2048xf32>
    %154 = arith.truncf %153 : vector<8x2048xf32> to vector<8x2048xbf16>
    %cst_60 = arith.constant dense<0.000000e+00> : vector<8x32xf32>
    %155 = tpu.matmul %154, %7, %cst_60 {dimension_numbers = #tpu.dot_dimension_numbers<[1], [0], [0], [1], [0, 0, 1, 1], [], []>} : vector<8x2048xbf16>, vector<2048x32xbf16>, vector<8x32xf32> -> vector<8x32xf32>
    %156 = vector.broadcast %8 : vector<1x32xf32> to vector<8x32xf32>
    %157 = arith.addf %155, %156 : vector<8x32xf32>
    %158 = arith.addf %157, %147 : vector<8x32xf32>
    %cst_61 = arith.constant dense<0.000000e+00> : vector<8xf32>
    %159 = vector.multi_reduction <add>, %158, %cst_61 [1] : vector<8x32xf32> to vector<8xf32>
    %160 = vector.shape_cast %159 : vector<8xf32> to vector<8x1xf32>
    %cst_62 = arith.constant 3.200000e+01 : f32
    %161 = vector.broadcast %cst_62 : f32 to vector<8x1xf32>
    %162 = arith.divf %160, %161 : vector<8x1xf32>
    %163 = vector.broadcast %162 : vector<8x1xf32> to vector<8x32xf32>
    %164 = arith.subf %158, %163 : vector<8x32xf32>
    %165 = arith.mulf %164, %164 : vector<8x32xf32>
    %cst_63 = arith.constant dense<0.000000e+00> : vector<8xf32>
    %166 = vector.multi_reduction <add>, %165, %cst_63 [1] : vector<8x32xf32> to vector<8xf32>
    %167 = vector.shape_cast %166 : vector<8xf32> to vector<8x1xf32>
    %cst_64 = arith.constant 3.200000e+01 : f32
    %168 = vector.broadcast %cst_64 : f32 to vector<8x1xf32>
    %169 = arith.divf %167, %168 : vector<8x1xf32>
    %170 = vector.broadcast %162 : vector<8x1xf32> to vector<8x32xf32>
    %171 = arith.subf %158, %170 : vector<8x32xf32>
    %cst_65 = arith.constant 9.99999974E-6 : f32
    %172 = vector.broadcast %cst_65 : f32 to vector<8x1xf32>
    %173 = arith.addf %169, %172 : vector<8x1xf32>
    %174 = math.rsqrt %173 : vector<8x1xf32>
    %175 = vector.broadcast %174 : vector<8x1xf32> to vector<8x32xf32>
    %176 = arith.mulf %171, %175 : vector<8x32xf32>
    %177 = vector.broadcast %9 : vector<1x32xf32> to vector<8x32xf32>
    %178 = arith.mulf %176, %177 : vector<8x32xf32>
    %179 = vector.broadcast %10 : vector<1x32xf32> to vector<8x32xf32>
    %180 = arith.addf %178, %179 : vector<8x32xf32>
    %c0_66 = arith.constant 0 : index
    %c0_67 = arith.constant 0 : index
    %c0_68 = arith.constant 0 : index
    %181 = vector.load %arg14[%c0_66, %c0_67, %c0_68] : memref<8x2x32xf32, #tpu.memory_space<vmem>>, vector<8x1x32xf32>
    %182 = vector.shape_cast %181 : vector<8x1x32xf32> to vector<8x32xf32>
    %183 = vector.shape_cast %180 : vector<8x32xf32> to vector<8x1x32xf32>
    tpu.vector_store %arg14[%c0_66, %c0_67, %c0_68], %183 {strides = array<i32>} : memref<8x2x32xf32, #tpu.memory_space<vmem>>, vector<8x1x32xf32>,
    %c0_69 = arith.constant 0 : index
    %c1 = arith.constant 1 : index
    %c0_70 = arith.constant 0 : index
    %184 = vector.load %arg1[%c0_69, %c1, %c0_70] : memref<8x2x32xf32, #tpu.memory_space<vmem>>, vector<8x1x32xf32>
    %185 = vector.shape_cast %184 : vector<8x1x32xf32> to vector<8x32xf32>
    %186 = arith.truncf %185 : vector<8x32xf32> to vector<8x32xbf16>
    %cst_71 = arith.constant dense<0.000000e+00> : vector<8x96xf32>
    %187 = tpu.matmul %186, %0, %cst_71 {dimension_numbers = #tpu.dot_dimension_numbers<[1], [0], [0], [1], [0, 0, 1, 1], [], []>} : vector<8x32xbf16>, vector<32x96xbf16>, vector<8x96xf32> -> vector<8x96xf32>
    %188 = vector.broadcast %1 : vector<1x96xf32> to vector<8x96xf32>
    %189 = arith.addf %187, %188 : vector<8x96xf32>
    %190 = vector.extract_strided_slice %189 {offsets = [0, 0], sizes = [8, 32], strides = [1, 1]} : vector<8x96xf32> to vector<8x32xf32>
    %191 = vector.extract_strided_slice %189 {offsets = [0, 32], sizes = [8, 32], strides = [1, 1]} : vector<8x96xf32> to vector<8x32xf32>
    %192 = vector.extract_strided_slice %189 {offsets = [0, 64], sizes = [8, 32], strides = [1, 1]} : vector<8x96xf32> to vector<8x32xf32>
    %193 = vector.extract_strided_slice %190 {offsets = [0, 0], sizes = [8, 8], strides = [1, 1]} : vector<8x32xf32> to vector<8x8xf32>
    %194 = arith.truncf %193 : vector<8x8xf32> to vector<8x8xbf16>
    %195 = vector.extract_strided_slice %191 {offsets = [0, 0], sizes = [8, 8], strides = [1, 1]} : vector<8x32xf32> to vector<8x8xf32>
    %196 = arith.truncf %195 : vector<8x8xf32> to vector<8x8xbf16>
    %197 = vector.extract_strided_slice %192 {offsets = [0, 0], sizes = [8, 8], strides = [1, 1]} : vector<8x32xf32> to vector<8x8xf32>
    %198 = arith.truncf %197 : vector<8x8xf32> to vector<8x8xbf16>
    %cst_72 = arith.constant dense<0.000000e+00> : vector<8x8xf32>
    %199 = tpu.matmul %194, %196, %cst_72 {dimension_numbers = #tpu.dot_dimension_numbers<[1], [1], [0], [0], [0, 0, 1, 0], [], []>} : vector<8x8xbf16>, vector<8x8xbf16>, vector<8x8xf32> -> vector<8x8xf32>
    %cst_73 = arith.constant 0.353553385 : f32
    %200 = vector.broadcast %cst_73 : f32 to vector<8x8xf32>
    %201 = arith.mulf %199, %200 : vector<8x8xf32>
    %cst_74 = arith.constant dense<0xFF800000> : vector<8xf32>
    %202 = vector.multi_reduction <maximumf>, %201, %cst_74 [1] : vector<8x8xf32> to vector<8xf32>
    %203 = vector.shape_cast %202 : vector<8xf32> to vector<8x1xf32>
    %204 = vector.broadcast %203 : vector<8x1xf32> to vector<8x8xf32>
    %205 = arith.subf %201, %204 : vector<8x8xf32>
    %206 = math.exp %205 : vector<8x8xf32>
    %cst_75 = arith.constant dense<0.000000e+00> : vector<8xf32>
    %207 = vector.multi_reduction <add>, %206, %cst_75 [1] : vector<8x8xf32> to vector<8xf32>
    %208 = vector.shape_cast %207 : vector<8xf32> to vector<8x1xf32>
    %209 = tpu.reciprocal %208 {approx = true} : vector<8x1xf32> -> vector<8x1xf32>
    %210 = vector.broadcast %209 : vector<8x1xf32> to vector<8x8xf32>
    %211 = arith.mulf %206, %210 : vector<8x8xf32>
    %212 = arith.truncf %211 : vector<8x8xf32> to vector<8x8xbf16>
    %cst_76 = arith.constant dense<0.000000e+00> : vector<8x8xf32>
    %213 = tpu.matmul %212, %198, %cst_76 {dimension_numbers = #tpu.dot_dimension_numbers<[1], [0], [0], [1], [0, 0, 1, 1], [], []>} : vector<8x8xbf16>, vector<8x8xbf16>, vector<8x8xf32> -> vector<8x8xf32>
    %c0_77 = arith.constant 0 : index
    %c0_78 = arith.constant 0 : index
    %214 = vector.load %arg4[%c0_77, %c0_78] : memref<32x32xf32, #tpu.memory_space<vmem>>, vector<8x32xf32>
    %215 = arith.truncf %214 : vector<8x32xf32> to vector<8x32xbf16>
    %216 = arith.truncf %213 : vector<8x8xf32> to vector<8x8xbf16>
    %cst_79 = arith.constant dense<0.000000e+00> : vector<8x32xf32>
    %217 = tpu.matmul %216, %215, %cst_79 {dimension_numbers = #tpu.dot_dimension_numbers<[1], [0], [0], [1], [0, 0, 1, 1], [], []>} : vector<8x8xbf16>, vector<8x32xbf16>, vector<8x32xf32> -> vector<8x32xf32>
    %218 = vector.extract_strided_slice %190 {offsets = [0, 8], sizes = [8, 8], strides = [1, 1]} : vector<8x32xf32> to vector<8x8xf32>
    %219 = arith.truncf %218 : vector<8x8xf32> to vector<8x8xbf16>
    %220 = vector.extract_strided_slice %191 {offsets = [0, 8], sizes = [8, 8], strides = [1, 1]} : vector<8x32xf32> to vector<8x8xf32>
    %221 = arith.truncf %220 : vector<8x8xf32> to vector<8x8xbf16>
    %222 = vector.extract_strided_slice %192 {offsets = [0, 8], sizes = [8, 8], strides = [1, 1]} : vector<8x32xf32> to vector<8x8xf32>
    %223 = arith.truncf %222 : vector<8x8xf32> to vector<8x8xbf16>
    %cst_80 = arith.constant dense<0.000000e+00> : vector<8x8xf32>
    %224 = tpu.matmul %219, %221, %cst_80 {dimension_numbers = #tpu.dot_dimension_numbers<[1], [1], [0], [0], [0, 0, 1, 0], [], []>} : vector<8x8xbf16>, vector<8x8xbf16>, vector<8x8xf32> -> vector<8x8xf32>
    %cst_81 = arith.constant 0.353553385 : f32
    %225 = vector.broadcast %cst_81 : f32 to vector<8x8xf32>
    %226 = arith.mulf %224, %225 : vector<8x8xf32>
    %cst_82 = arith.constant dense<0xFF800000> : vector<8xf32>
    %227 = vector.multi_reduction <maximumf>, %226, %cst_82 [1] : vector<8x8xf32> to vector<8xf32>
    %228 = vector.shape_cast %227 : vector<8xf32> to vector<8x1xf32>
    %229 = vector.broadcast %228 : vector<8x1xf32> to vector<8x8xf32>
    %230 = arith.subf %226, %229 : vector<8x8xf32>
    %231 = math.exp %230 : vector<8x8xf32>
    %cst_83 = arith.constant dense<0.000000e+00> : vector<8xf32>
    %232 = vector.multi_reduction <add>, %231, %cst_83 [1] : vector<8x8xf32> to vector<8xf32>
    %233 = vector.shape_cast %232 : vector<8xf32> to vector<8x1xf32>
    %234 = tpu.reciprocal %233 {approx = true} : vector<8x1xf32> -> vector<8x1xf32>
    %235 = vector.broadcast %234 : vector<8x1xf32> to vector<8x8xf32>
    %236 = arith.mulf %231, %235 : vector<8x8xf32>
    %237 = arith.truncf %236 : vector<8x8xf32> to vector<8x8xbf16>
    %cst_84 = arith.constant dense<0.000000e+00> : vector<8x8xf32>
    %238 = tpu.matmul %237, %223, %cst_84 {dimension_numbers = #tpu.dot_dimension_numbers<[1], [0], [0], [1], [0, 0, 1, 1], [], []>} : vector<8x8xbf16>, vector<8x8xbf16>, vector<8x8xf32> -> vector<8x8xf32>
    %c8_85 = arith.constant 8 : index
    %c0_86 = arith.constant 0 : index
    %239 = vector.load %arg4[%c8_85, %c0_86] : memref<32x32xf32, #tpu.memory_space<vmem>>, vector<8x32xf32>
    %240 = arith.truncf %239 : vector<8x32xf32> to vector<8x32xbf16>
    %241 = arith.truncf %238 : vector<8x8xf32> to vector<8x8xbf16>
    %cst_87 = arith.constant dense<0.000000e+00> : vector<8x32xf32>
    %242 = tpu.matmul %241, %240, %cst_87 {dimension_numbers = #tpu.dot_dimension_numbers<[1], [0], [0], [1], [0, 0, 1, 1], [], []>} : vector<8x8xbf16>, vector<8x32xbf16>, vector<8x32xf32> -> vector<8x32xf32>
    %243 = arith.addf %217, %242 : vector<8x32xf32>
    %244 = vector.extract_strided_slice %190 {offsets = [0, 16], sizes = [8, 8], strides = [1, 1]} : vector<8x32xf32> to vector<8x8xf32>
    %245 = arith.truncf %244 : vector<8x8xf32> to vector<8x8xbf16>
    %246 = vector.extract_strided_slice %191 {offsets = [0, 16], sizes = [8, 8], strides = [1, 1]} : vector<8x32xf32> to vector<8x8xf32>
    %247 = arith.truncf %246 : vector<8x8xf32> to vector<8x8xbf16>
    %248 = vector.extract_strided_slice %192 {offsets = [0, 16], sizes = [8, 8], strides = [1, 1]} : vector<8x32xf32> to vector<8x8xf32>
    %249 = arith.truncf %248 : vector<8x8xf32> to vector<8x8xbf16>
    %cst_88 = arith.constant dense<0.000000e+00> : vector<8x8xf32>
    %250 = tpu.matmul %245, %247, %cst_88 {dimension_numbers = #tpu.dot_dimension_numbers<[1], [1], [0], [0], [0, 0, 1, 0], [], []>} : vector<8x8xbf16>, vector<8x8xbf16>, vector<8x8xf32> -> vector<8x8xf32>
    %cst_89 = arith.constant 0.353553385 : f32
    %251 = vector.broadcast %cst_89 : f32 to vector<8x8xf32>
    %252 = arith.mulf %250, %251 : vector<8x8xf32>
    %cst_90 = arith.constant dense<0xFF800000> : vector<8xf32>
    %253 = vector.multi_reduction <maximumf>, %252, %cst_90 [1] : vector<8x8xf32> to vector<8xf32>
    %254 = vector.shape_cast %253 : vector<8xf32> to vector<8x1xf32>
    %255 = vector.broadcast %254 : vector<8x1xf32> to vector<8x8xf32>
    %256 = arith.subf %252, %255 : vector<8x8xf32>
    %257 = math.exp %256 : vector<8x8xf32>
    %cst_91 = arith.constant dense<0.000000e+00> : vector<8xf32>
    %258 = vector.multi_reduction <add>, %257, %cst_91 [1] : vector<8x8xf32> to vector<8xf32>
    %259 = vector.shape_cast %258 : vector<8xf32> to vector<8x1xf32>
    %260 = tpu.reciprocal %259 {approx = true} : vector<8x1xf32> -> vector<8x1xf32>
    %261 = vector.broadcast %260 : vector<8x1xf32> to vector<8x8xf32>
    %262 = arith.mulf %257, %261 : vector<8x8xf32>
    %263 = arith.truncf %262 : vector<8x8xf32> to vector<8x8xbf16>
    %cst_92 = arith.constant dense<0.000000e+00> : vector<8x8xf32>
    %264 = tpu.matmul %263, %249, %cst_92 {dimension_numbers = #tpu.dot_dimension_numbers<[1], [0], [0], [1], [0, 0, 1, 1], [], []>} : vector<8x8xbf16>, vector<8x8xbf16>, vector<8x8xf32> -> vector<8x8xf32>
    %c16_93 = arith.constant 16 : index
    %c0_94 = arith.constant 0 : index
    %265 = vector.load %arg4[%c16_93, %c0_94] : memref<32x32xf32, #tpu.memory_space<vmem>>, vector<8x32xf32>
    %266 = arith.truncf %265 : vector<8x32xf32> to vector<8x32xbf16>
    %267 = arith.truncf %264 : vector<8x8xf32> to vector<8x8xbf16>
    %cst_95 = arith.constant dense<0.000000e+00> : vector<8x32xf32>
    %268 = tpu.matmul %267, %266, %cst_95 {dimension_numbers = #tpu.dot_dimension_numbers<[1], [0], [0], [1], [0, 0, 1, 1], [], []>} : vector<8x8xbf16>, vector<8x32xbf16>, vector<8x32xf32> -> vector<8x32xf32>
    %269 = arith.addf %243, %268 : vector<8x32xf32>
    %270 = vector.extract_strided_slice %190 {offsets = [0, 24], sizes = [8, 8], strides = [1, 1]} : vector<8x32xf32> to vector<8x8xf32>
    %271 = arith.truncf %270 : vector<8x8xf32> to vector<8x8xbf16>
    %272 = vector.extract_strided_slice %191 {offsets = [0, 24], sizes = [8, 8], strides = [1, 1]} : vector<8x32xf32> to vector<8x8xf32>
    %273 = arith.truncf %272 : vector<8x8xf32> to vector<8x8xbf16>
    %274 = vector.extract_strided_slice %192 {offsets = [0, 24], sizes = [8, 8], strides = [1, 1]} : vector<8x32xf32> to vector<8x8xf32>
    %275 = arith.truncf %274 : vector<8x8xf32> to vector<8x8xbf16>
    %cst_96 = arith.constant dense<0.000000e+00> : vector<8x8xf32>
    %276 = tpu.matmul %271, %273, %cst_96 {dimension_numbers = #tpu.dot_dimension_numbers<[1], [1], [0], [0], [0, 0, 1, 0], [], []>} : vector<8x8xbf16>, vector<8x8xbf16>, vector<8x8xf32> -> vector<8x8xf32>
    %cst_97 = arith.constant 0.353553385 : f32
    %277 = vector.broadcast %cst_97 : f32 to vector<8x8xf32>
    %278 = arith.mulf %276, %277 : vector<8x8xf32>
    %cst_98 = arith.constant dense<0xFF800000> : vector<8xf32>
    %279 = vector.multi_reduction <maximumf>, %278, %cst_98 [1] : vector<8x8xf32> to vector<8xf32>
    %280 = vector.shape_cast %279 : vector<8xf32> to vector<8x1xf32>
    %281 = vector.broadcast %280 : vector<8x1xf32> to vector<8x8xf32>
    %282 = arith.subf %278, %281 : vector<8x8xf32>
    %283 = math.exp %282 : vector<8x8xf32>
    %cst_99 = arith.constant dense<0.000000e+00> : vector<8xf32>
    %284 = vector.multi_reduction <add>, %283, %cst_99 [1] : vector<8x8xf32> to vector<8xf32>
    %285 = vector.shape_cast %284 : vector<8xf32> to vector<8x1xf32>
    %286 = tpu.reciprocal %285 {approx = true} : vector<8x1xf32> -> vector<8x1xf32>
    %287 = vector.broadcast %286 : vector<8x1xf32> to vector<8x8xf32>
    %288 = arith.mulf %283, %287 : vector<8x8xf32>
    %289 = arith.truncf %288 : vector<8x8xf32> to vector<8x8xbf16>
    %cst_100 = arith.constant dense<0.000000e+00> : vector<8x8xf32>
    %290 = tpu.matmul %289, %275, %cst_100 {dimension_numbers = #tpu.dot_dimension_numbers<[1], [0], [0], [1], [0, 0, 1, 1], [], []>} : vector<8x8xbf16>, vector<8x8xbf16>, vector<8x8xf32> -> vector<8x8xf32>
    %c24_101 = arith.constant 24 : index
    %c0_102 = arith.constant 0 : index
    %291 = vector.load %arg4[%c24_101, %c0_102] : memref<32x32xf32, #tpu.memory_space<vmem>>, vector<8x32xf32>
    %292 = arith.truncf %291 : vector<8x32xf32> to vector<8x32xbf16>
    %293 = arith.truncf %290 : vector<8x8xf32> to vector<8x8xbf16>
    %cst_103 = arith.constant dense<0.000000e+00> : vector<8x32xf32>
    %294 = tpu.matmul %293, %292, %cst_103 {dimension_numbers = #tpu.dot_dimension_numbers<[1], [0], [0], [1], [0, 0, 1, 1], [], []>} : vector<8x8xbf16>, vector<8x32xbf16>, vector<8x32xf32> -> vector<8x32xf32>
    %295 = arith.addf %269, %294 : vector<8x32xf32>
    %296 = arith.addf %185, %295 : vector<8x32xf32>
    %297 = vector.broadcast %2 : vector<1x32xf32> to vector<8x32xf32>
    %298 = arith.addf %296, %297 : vector<8x32xf32>
    %cst_104 = arith.constant dense<0.000000e+00> : vector<8xf32>
    %299 = vector.multi_reduction <add>, %298, %cst_104 [1] : vector<8x32xf32> to vector<8xf32>
    %300 = vector.shape_cast %299 : vector<8xf32> to vector<8x1xf32>
    %cst_105 = arith.constant 3.200000e+01 : f32
    %301 = vector.broadcast %cst_105 : f32 to vector<8x1xf32>
    %302 = arith.divf %300, %301 : vector<8x1xf32>
    %303 = vector.broadcast %302 : vector<8x1xf32> to vector<8x32xf32>
    %304 = arith.subf %298, %303 : vector<8x32xf32>
    %305 = arith.mulf %304, %304 : vector<8x32xf32>
    %cst_106 = arith.constant dense<0.000000e+00> : vector<8xf32>
    %306 = vector.multi_reduction <add>, %305, %cst_106 [1] : vector<8x32xf32> to vector<8xf32>
    %307 = vector.shape_cast %306 : vector<8xf32> to vector<8x1xf32>
    %cst_107 = arith.constant 3.200000e+01 : f32
    %308 = vector.broadcast %cst_107 : f32 to vector<8x1xf32>
    %309 = arith.divf %307, %308 : vector<8x1xf32>
    %310 = vector.broadcast %302 : vector<8x1xf32> to vector<8x32xf32>
    %311 = arith.subf %298, %310 : vector<8x32xf32>
    %cst_108 = arith.constant 9.99999974E-6 : f32
    %312 = vector.broadcast %cst_108 : f32 to vector<8x1xf32>
    %313 = arith.addf %309, %312 : vector<8x1xf32>
    %314 = math.rsqrt %313 : vector<8x1xf32>
    %315 = vector.broadcast %314 : vector<8x1xf32> to vector<8x32xf32>
    %316 = arith.mulf %311, %315 : vector<8x32xf32>
    %317 = vector.broadcast %3 : vector<1x32xf32> to vector<8x32xf32>
    %318 = arith.mulf %316, %317 : vector<8x32xf32>
    %319 = vector.broadcast %4 : vector<1x32xf32> to vector<8x32xf32>
    %320 = arith.addf %318, %319 : vector<8x32xf32>
    %321 = arith.truncf %320 : vector<8x32xf32> to vector<8x32xbf16>
    %cst_109 = arith.constant dense<0.000000e+00> : vector<8x2048xf32>
    %322 = tpu.matmul %321, %5, %cst_109 {dimension_numbers = #tpu.dot_dimension_numbers<[1], [0], [0], [1], [0, 0, 1, 1], [], []>} : vector<8x32xbf16>, vector<32x2048xbf16>, vector<8x2048xf32> -> vector<8x2048xf32>
    %323 = vector.broadcast %6 : vector<1x2048xf32> to vector<8x2048xf32>
    %324 = arith.addf %322, %323 : vector<8x2048xf32>
    %cst_110 = arith.constant 0.000000e+00 : f32
    %325 = vector.broadcast %cst_110 : f32 to vector<8x2048xf32>
    %326 = arith.maximumf %324, %325 : vector<8x2048xf32>
    %327 = arith.truncf %326 : vector<8x2048xf32> to vector<8x2048xbf16>
    %cst_111 = arith.constant dense<0.000000e+00> : vector<8x32xf32>
    %328 = tpu.matmul %327, %7, %cst_111 {dimension_numbers = #tpu.dot_dimension_numbers<[1], [0], [0], [1], [0, 0, 1, 1], [], []>} : vector<8x2048xbf16>, vector<2048x32xbf16>, vector<8x32xf32> -> vector<8x32xf32>
    %329 = vector.broadcast %8 : vector<1x32xf32> to vector<8x32xf32>
    %330 = arith.addf %328, %329 : vector<8x32xf32>
    %331 = arith.addf %330, %320 : vector<8x32xf32>
    %cst_112 = arith.constant dense<0.000000e+00> : vector<8xf32>
    %332 = vector.multi_reduction <add>, %331, %cst_112 [1] : vector<8x32xf32> to vector<8xf32>
    %333 = vector.shape_cast %332 : vector<8xf32> to vector<8x1xf32>
    %cst_113 = arith.constant 3.200000e+01 : f32
    %334 = vector.broadcast %cst_113 : f32 to vector<8x1xf32>
    %335 = arith.divf %333, %334 : vector<8x1xf32>
    %336 = vector.broadcast %335 : vector<8x1xf32> to vector<8x32xf32>
    %337 = arith.subf %331, %336 : vector<8x32xf32>
    %338 = arith.mulf %337, %337 : vector<8x32xf32>
    %cst_114 = arith.constant dense<0.000000e+00> : vector<8xf32>
    %339 = vector.multi_reduction <add>, %338, %cst_114 [1] : vector<8x32xf32> to vector<8xf32>
    %340 = vector.shape_cast %339 : vector<8xf32> to vector<8x1xf32>
    %cst_115 = arith.constant 3.200000e+01 : f32
    %341 = vector.broadcast %cst_115 : f32 to vector<8x1xf32>
    %342 = arith.divf %340, %341 : vector<8x1xf32>
    %343 = vector.broadcast %335 : vector<8x1xf32> to vector<8x32xf32>
    %344 = arith.subf %331, %343 : vector<8x32xf32>
    %cst_116 = arith.constant 9.99999974E-6 : f32
    %345 = vector.broadcast %cst_116 : f32 to vector<8x1xf32>
    %346 = arith.addf %342, %345 : vector<8x1xf32>
    %347 = math.rsqrt %346 : vector<8x1xf32>
    %348 = vector.broadcast %347 : vector<8x1xf32> to vector<8x32xf32>
    %349 = arith.mulf %344, %348 : vector<8x32xf32>
    %350 = vector.broadcast %9 : vector<1x32xf32> to vector<8x32xf32>
    %351 = arith.mulf %349, %350 : vector<8x32xf32>
    %352 = vector.broadcast %10 : vector<1x32xf32> to vector<8x32xf32>
    %353 = arith.addf %351, %352 : vector<8x32xf32>
    %c0_117 = arith.constant 0 : index
    %c1_118 = arith.constant 1 : index
    %c0_119 = arith.constant 0 : index
    %354 = vector.load %arg14[%c0_117, %c1_118, %c0_119] : memref<8x2x32xf32, #tpu.memory_space<vmem>>, vector<8x1x32xf32>
    %355 = vector.shape_cast %354 : vector<8x1x32xf32> to vector<8x32xf32>
    %356 = vector.shape_cast %353 : vector<8x32xf32> to vector<8x1x32xf32>
    tpu.vector_store %arg14[%c0_117, %c1_118, %c0_119], %356 {strides = array<i32>} : memref<8x2x32xf32, #tpu.memory_space<vmem>>, vector<8x1x32xf32>,
    return
  }
  func.func @transform_0(%arg0: i32) -> (i32, i32, i32) {
    %c0_i32 = arith.constant 0 : i32
    %c0_i32_0 = arith.constant 0 : i32
    %c0_i32_1 = arith.constant 0 : i32
    %c0_i32_2 = arith.constant 0 : i32
    return %c0_i32, %c0_i32_0, %c0_i32_1 : i32, i32, i32
  }
  func.func @transform_1(%arg0: i32) -> (i32, i32) {
    %c0_i32 = arith.constant 0 : i32
    %c0_i32_0 = arith.constant 0 : i32
    %c0_i32_1 = arith.constant 0 : i32
    return %c0_i32, %c0_i32_0 : i32, i32
  }
  func.func @transform_2(%arg0: i32) -> (i32, i32) {
    %c0_i32 = arith.constant 0 : i32
    %c0_i32_0 = arith.constant 0 : i32
    %c0_i32_1 = arith.constant 0 : i32
    return %c0_i32, %c0_i32_0 : i32, i32
  }
  func.func @transform_3(%arg0: i32) -> (i32, i32) {
    %c0_i32 = arith.constant 0 : i32
    %c0_i32_0 = arith.constant 0 : i32
    %c0_i32_1 = arith.constant 0 : i32
    return %c0_i32, %c0_i32_0 : i32, i32
  }
  func.func @transform_4(%arg0: i32) -> (i32, i32) {
    %c0_i32 = arith.constant 0 : i32
    %c0_i32_0 = arith.constant 0 : i32
    %c0_i32_1 = arith.constant 0 : i32
    return %c0_i32, %c0_i32_0 : i32, i32
  }
  func.func @transform_5(%arg0: i32) -> (i32, i32) {
    %c0_i32 = arith.constant 0 : i32
    %c0_i32_0 = arith.constant 0 : i32
    %c0_i32_1 = arith.constant 0 : i32
    return %c0_i32, %c0_i32_0 : i32, i32
  }
  func.func @transform_6(%arg0: i32) -> (i32, i32) {
    %c0_i32 = arith.constant 0 : i32
    %c0_i32_0 = arith.constant 0 : i32
    %c0_i32_1 = arith.constant 0 : i32
    return %c0_i32, %c0_i32_0 : i32, i32
  }
  func.func @transform_7(%arg0: i32) -> (i32, i32) {
    %c0_i32 = arith.constant 0 : i32
    %c0_i32_0 = arith.constant 0 : i32
    %c0_i32_1 = arith.constant 0 : i32
    return %c0_i32, %c0_i32_0 : i32, i32
  }
  func.func @transform_8(%arg0: i32) -> (i32, i32) {
    %c0_i32 = arith.constant 0 : i32
    %c0_i32_0 = arith.constant 0 : i32
    %c0_i32_1 = arith.constant 0 : i32
    return %c0_i32, %c0_i32_0 : i32, i32
  }
  func.func @transform_9(%arg0: i32) -> (i32, i32) {
    %c0_i32 = arith.constant 0 : i32
    %c0_i32_0 = arith.constant 0 : i32
    %c0_i32_1 = arith.constant 0 : i32
    return %c0_i32, %c0_i32_0 : i32, i32
  }
  func.func @transform_10(%arg0: i32) -> (i32, i32) {
    %c0_i32 = arith.constant 0 : i32
    %c0_i32_0 = arith.constant 0 : i32
    %c0_i32_1 = arith.constant 0 : i32
    return %c0_i32, %c0_i32_0 : i32, i32
  }
  func.func @transform_11(%arg0: i32) -> (i32, i32) {
    %c0_i32 = arith.constant 0 : i32
    %c0_i32_0 = arith.constant 0 : i32
    %c0_i32_1 = arith.constant 0 : i32
    return %c0_i32, %c0_i32_0 : i32, i32
  }
  func.func @transform_12(%arg0: i32) -> (i32, i32) {
    %c0_i32 = arith.constant 0 : i32
    %c0_i32_0 = arith.constant 0 : i32
    %c0_i32_1 = arith.constant 0 : i32
    return %c0_i32, %c0_i32_0 : i32, i32
  }
  func.func @transform_13(%arg0: i32) -> (i32, i32, i32) {
    %c0_i32 = arith.constant 0 : i32
    %c0_i32_0 = arith.constant 0 : i32
    %c0_i32_1 = arith.constant 0 : i32
    %c0_i32_2 = arith.constant 0 : i32
    return %c0_i32, %c0_i32_0, %c0_i32_1 : i32, i32, i32
  }
}

</mosaic_0001>

<bundles_post_ra>
// kernel: transformer_encoder_forward.1
= control target key start
LH: loop header
LB: loop body
LE: loop exit
PB: predicated region body
PF: predicated region fallthrough
CT: control target
= control target key end

     0   :  { %v7898_v1 = vmov 0.0   ;;  %vm6034_vm0 = vmmov 0   ;;  %vm386_vm1 = vcmask 1041409   ;;  %vm389_vm2 = vcmask 1042434   ;;  %s7878_s0 = inlined_call_operand.vmem [shape: f32[8,2,32], index: 0, kind: input, shape index: {}]   ;;  %s7879_s1 = inlined_call_operand.vmem [shape: bf16[32,96], index: 1, kind: input, shape index: {}]   ;;  %s7880_s2 = inlined_call_operand.vmem [shape: f32[1,96], index: 2, kind: input, shape index: {}]   ;;  %s7881_s3 = inlined_call_operand.vmem [shape: f32[32,32], index: 3, kind: input, shape index: {}]   ;;  %s7882_s4 = inlined_call_operand.vmem [shape: f32[1,32], index: 4, kind: input, shape index: {}]   ;;  %s7883_s5 = inlined_call_operand.vmem [shape: f32[1,32], index: 5, kind: input, shape index: {}]   ;;  %s7884_s6 = inlined_call_operand.vmem [shape: f32[1,32], index: 6, kind: input, shape index: {}]   ;;  %s7885_s7 = inlined_call_operand.vmem [shape: bf16[32,2048], index: 7, kind: input, shape index: {}]   ;;  %s7886_s8 = inlined_call_operand.vmem [shape: f32[1,2048], index: 8, kind: input, shape index: {}]   ;;  %s7887_s9 = inlined_call_operand.vmem [shape: bf16[2048,32], index: 9, kind: input, shape index: {}]   ;;  %s7888_s10 = inlined_call_operand.vmem [shape: f32[1,32], index: 10, kind: input, shape index: {}]   ;;  %s7889_s11 = inlined_call_operand.vmem [shape: f32[1,32], index: 11, kind: input, shape index: {}]   ;;  %s7890_s12 = inlined_call_operand.vmem [shape: f32[1,32], index: 12, kind: input, shape index: {}]   ;;  %s7891_s13 = inlined_call_operand.hbm [shape: f32[8,2,32], index: 13, kind: output, shape index: {}]  }
   0x1   :  { %v5696_v0 = vld [vmem:[%s7879_s1] sm:$0xff]   ;;  %5494 = vmatprep.subr.bf16.mxu0 %v7898_v1  ;;  %v5697_v2 = vld [vmem:[%s7879_s1 + $0x8] sm:$0xff]   ;;  %5502 = vmatprep.subr.bf16.mxu1 %v7898_v1  ;;  %vm392_vm3 = vcmask 1043459   ;;  %vm395_vm4 = vcmask 1044484   ;;  %vm398_vm5 = vcmask 1045509   ;;  %vm401_vm6 = vcmask 1046534  }
   0x2   :  { %5495 = vmatpush3.bf16.msra.mxu0 %v5696_v0  ;;  %5498 = vmatprep.mubr.msk.bf16.mxu0 %vm6034_vm0, %v7898_v1  ;;  %v347_v3 = vld [vmem:[%s7878_s0] sm:$0x1]  ;;  %v348_v4 = vld [vmem:[%s7878_s0 + $0x2] sm:$0x1]  ;;  %v349_v5 = vld [vmem:[%s7878_s0 + $0x4] sm:$0x1] }
   0x3   :  { %5496 = vmatprep.subr.bf16.mxu0 %v7898_v1  ;;  %v350_v6 = vld [vmem:[%s7878_s0 + $0x6] sm:$0x1]  ;;  %v351_v7 = vld [vmem:[%s7878_s0 + $0x8] sm:$0x1]  ;;  %v352_v8 = vld [vmem:[%s7878_s0 + $0xa] sm:$0x1]  ;;  %v355_v9 = vpack.c.bf16 %v347_v3, %v347_v3  ;;  %v356_v10 = vpack.c.bf16 %v348_v4, %v348_v4  ;;  %v357_v11 = vpack.c.bf16 %v349_v5, %v349_v5  ;;  %5504 = vmatprep.mubr.msk.bf16.mxu1 %vm6034_vm0, %v7898_v1 }
   0x4   :  { %v353_v12 = vld [vmem:[%s7878_s0 + $0xc] sm:$0x1]  ;;  %v354_v13 = vld [vmem:[%s7878_s0 + $0xe] sm:$0x1]  ;;  %v358_v14 = vpack.c.bf16 %v350_v6, %v350_v6  ;;  %v359_v15 = vpack.c.bf16 %v351_v7, %v351_v7  ;;  %v360_v16 = vpack.c.bf16 %v352_v8, %v352_v8  ;;  %vm404_vm7 = vcmask 1047559  }
   0x5   :  { %v361_v17 = vpack.c.bf16 %v353_v12, %v353_v12  ;;  %v362_v18 = vpack.c.bf16 %v354_v13, %v354_v13  ;;  %v377_v19 = vunpack.c.l.b16 %v355_v9  ;;  %v378_v20 = vunpack.c.l.b16 %v356_v10 }
   0x6   :  { %5497 = vmatpush3.bf16.msra.mxu0 %v5697_v2  ;;  %v379_v21 = vunpack.c.l.b16 %v357_v11  ;;  %v380_v22 = vunpack.c.l.b16 %v358_v14  ;;  %v381_v23 = vunpack.c.l.b16 %v359_v15  ;;  %v382_v24 = vunpack.c.l.b16 %v360_v16 }
   0x7   :  { %v383_v25 = vunpack.c.l.b16 %v361_v17  ;;  %v384_v26 = vunpack.c.l.b16 %v362_v18  ;;  %v385_v27 = vrot.slane %v378_v20, 7  ;;  %5508 = vmatprep.subr.bf16.mxu0 %v7898_v1  ;;  %vm419_vm8 = vcmask 261120  }
   0x8   :  { %v388_v28 = vrot.slane %v379_v21, 6  ;;  %v391_v29 = vrot.slane %v380_v22, 5  ;;  %v394_v30 = vrot.slane %v381_v23, 4  ;;  %v397_v32 = vrot.slane %v382_v24, 3 }
   0x9   :  { %v387_v31 = vsel %vm386_vm1, %v385_v27, %v377_v19  ;;  %v400_v34 = vrot.slane %v383_v25, 2  ;;  %v403_v35 = vrot.slane %v384_v26, 1 }
   0xa   :  { %v390_v33 = vsel %vm389_vm2, %v388_v28, %v387_v31 }
   0xb   :  { %v393_v36 = vsel %vm392_vm3, %v391_v29, %v390_v33 }
   0xc   :  { %v396_v37 = vsel %vm395_vm4, %v394_v30, %v393_v36 }
   0xd   :  { %v399_v38 = vsel %vm398_vm5, %v397_v32, %v396_v37 }
   0xe   :  { %v402_v39 = vsel %vm401_vm6, %v400_v34, %v399_v38 }
   0xf   :  { %v405_v40 = vsel %vm404_vm7, %v403_v35, %v402_v39 }
  0x10   :  { %v406_v41 = vpack.c.b16 %v405_v40, %v405_v40 }
  0x12   :  { %5499 = vmatmul.mubr.msk.bf16.vlgmr.msra.gmra.mrb[0].mxu0 %vm419_vm8, %v406_v41 }
  0x13   :  { %5510 = vmatprep.mubr.msk.bf16.mxu0 %vm6034_vm0, %v7898_v1 }
  0x14   :  { %18 = vsyncpa [#allocation3], 0  ;;  %v4877_v42 = vld [vmem:[%s7880_s2] ss:$0 sm:$0xff]  ;;  %s6035_s30 = smov 120   ;;  %s6036_s14 = smov 96  }
  0x15   :  { %s6037_s15 = smov 88   ;;  %vm467_vm9 = vcmask 64512   ;;  %s6038_s16 = smov 56   ;;  %vm532_vm10 = vcmask 1043456   ;;  %v690_v28 = vld [vmem:[%s7881_s3 + $0x8] sm:$0xff]  ;;  %v576_v34 = vld [vmem:[%s7881_s3] sm:$0xff] }
  0x16   :  { %s6039_s17 = smov 64   ;;  %s6040_s18 = smov 80   ;;  %v691_v29 = vpack.c.bf16 %v690_v28, %v690_v28  ;;  %v577_v36 = vpack.c.bf16 %v576_v34, %v576_v34  ;;  %vm3133_vm11 = vcmask 253952  }
  0x17   :  { %s6041_s19 = smov 112   ;;  %s7893_s24 = smov 72  }
  0x18   :  { %v697_v30 = vsel %vm532_vm10, %v691_v29, 0  ;;  %v743_v40 = vsel %vm532_vm10, %v577_v36, 0  ;;  %s7894_s25 = smov 104   ;;  %s7895_s26 = smov 48  }
  0x19   :  { %s7892_s29 = smov 40  }
  0xe5   :  { %v457_v43 = vpop.f32.mrb[0].mxu0 }
  0xe6   :  { %v458_v44 = vadd.f32 %v4877_v42, %v457_v43  ;;  %v5500_v45 = vpop.f32.mrb[1].mxu0 }
  0xe7   :  { %v460_v46 = vpop.f32.mrb[2].mxu0 }
  0xe8   :  { %v6172_v47 = vpack.c.bf16 %v458_v44, %v458_v44  ;;  %v5501_v48 = vpop.f32.mrb[3].mxu0 }
  0xea   :  { %579 = vrot.lane.b32.xlu1 %v6172_v47, %s6035_s30  ;;  %465 = vrot.lane.b32.xlu0 %v6172_v47, %s6036_s14 }
  0xee   :  { %581 = vrot.lane.b32.xlu0 %v6172_v47, %s6037_s15 }
 0x15c   :  { %v466_v49 = vpop.permute.xlu0 %465  ;;  %v580_v53 = vpop.permute.xlu1 %579 }
 0x15d   :  { %v472_v50 = vsel %vm467_vm9, %v466_v49, 0 }
 0x15e   :  { %5503 = vmatpush3.bf16.xpose.msra.mxu1 %v472_v50 }
 0x15f   :  { %5514 = vmatprep.subr.bf16.mxu1 %v7898_v1 }
 0x160   :  { %v582_v51 = vpop.permute.xlu0 %581 }
 0x161   :  { %v587_v52 = vsel %vm467_vm9, %v582_v51, 0 }
 0x165   :  { %5505 = vmatmul.mubr.msk.bf16.vlgmr.msra.gmra.mrb[0].mxu1 %vm467_vm9, %v6172_v47 }
 0x166   :  { %5515 = vmatpush3.bf16.xpose.msra.mxu1 %v587_v52  ;;  %5516 = vmatprep.mubr.msk.bf16.mxu1 %vm6034_vm0, %v7898_v1 }
 0x167   :  { %5526 = vmatprep.subr.bf16.mxu1 %v7898_v1 }
 0x16d   :  { %5517 = vmatmul.mubr.msk.bf16.vlgmr.msra.gmra.mrb[4].mxu1 %vm467_vm9, %v580_v53 }
 0x16e   :  { %5528 = vmatprep.mubr.msk.bf16.mxu1 %vm6034_vm0, %v7898_v1  ;;  %5527 = vmatpush3.bf16.msra.mxu1 %v697_v30 }
 0x16f   :  { %5532 = vmatprep.subr.bf16.mxu1 %v7898_v1 }
 0x238   :  { %v508_v54 = vpop.f32.mrb[0].mxu1 }
 0x239   :  { %v514_v55 = vmul.f32 0.35355338, %v508_v54  ;;  %v5506_v56 = vpop.f32.mrb[1].mxu1 }
 0x23a   :  { %v511_v57 = vpop.f32.mrb[2].mxu1 }
 0x23b   :  { %v5507_v58 = vpop.f32.mrb[3].mxu1  ;;  %v515_v59 = vsel %vm467_vm9, %v514_v55, -inf }
 0x23c   :  { %516 = vmax.xlane.f32.xlu1 %v515_v59 }
 0x240   :  { %v623_v60 = vpop.f32.mrb[4].mxu1 }
 0x241   :  { %v629_v61 = vmul.f32 0.35355338, %v623_v60  ;;  %v5518_v62 = vpop.f32.mrb[5].mxu1 }
 0x242   :  { %v626_v63 = vpop.f32.mrb[6].mxu1 }
 0x243   :  { %v5519_v0 = vpop.f32.mrb[7].mxu1  ;;  %v630_v2 = vsel %vm467_vm9, %v629_v61, -inf }
 0x244   :  { %631 = vmax.xlane.f32.xlu0 %v630_v2  ;;  %v896_v2 = vld [vmem:[%s7881_s3 + $0x10] sm:$0xff] }
 0x24d   :  { %642 = vrot.lane.b32.xlu1 %v6172_v47, %s6038_s16 }
 0x2c9   :  { %v517_v3 = vpop.xlane.xlu1 %516 }
 0x2ca   :  { %v518_v4 = vsub.f32 %v514_v55, %v517_v3  ;;  %v897_v3 = vpack.c.bf16 %v896_v2, %v896_v2 }
 0x2cc   :  { %v519_v5 = vmul.f32 1.442695, %v518_v4  ;;  %v903_v4 = vsel %vm532_vm10, %v897_v3, 0 }
 0x2cd   :  { %v643_v14 = vpop.permute.xlu1 %642 }
 0x2ce   :  { %5826 = vpow2.f32 %v519_v5  ;;  %v648_v21 = vsel %vm532_vm10, %v643_v14, 0 }
 0x2d1   :  { %v632_v6 = vpop.xlane.xlu0 %631 }
 0x2d2   :  { %v633_v7 = vsub.f32 %v629_v61, %v632_v6 }
 0x2d4   :  { %v634_v8 = vmul.f32 1.442695, %v633_v7 }
 0x2d6   :  { %5828 = vpow2.f32 %v634_v8 }
 0x2d8   :  { %v5827_v9 = vpop.eup %5826 }
 0x2d9   :  { %v521_v10 = vsel %vm467_vm9, %v5827_v9, 0.0 }
 0x2da   :  { %522 = vadd.xlane.f32.xlu0 %v521_v10 }
 0x2e0   :  { %v5829_v11 = vpop.eup %5828 }
 0x2e1   :  { %v636_v12 = vsel %vm467_vm9, %v5829_v11, 0.0 }
 0x2e2   :  { %637 = vadd.xlane.f32.xlu1 %v636_v12 }
 0x2f0   :  { %527 = vrot.lane.b32.xlu0 %v6172_v47, %s6039_s17 }
 0x2f3   :  { %787 = vrot.lane.b32.xlu1 %v6172_v47, %s6040_s18 }
 0x2f4   :  { %785 = vrot.lane.b32.xlu0 %v6172_v47, %s6041_s19 }
 0x367   :  { %v523_v13 = vpop.xlane.xlu0 %522 }
 0x368   :  { %5830 = vrcp.f32 %v523_v13 }
 0x36b   :  { %v528_v15 = vpop.permute.xlu0 %527 }
 0x36c   :  { %v534_v16 = vsel %vm532_vm10, %v528_v15, 0 }
 0x36d   :  { %5509 = vmatpush3.bf16.msra.mxu0 %v534_v16 }
 0x36e   :  { %5520 = vmatprep.subr.bf16.mxu0 %v7898_v1 }
 0x36f   :  { %v638_v17 = vpop.xlane.xlu1 %637  ;;  %v786_v27 = vpop.permute.xlu0 %785 }
 0x370   :  { %5832 = vrcp.f32 %v638_v17 }
 0x372   :  { %v5831_v18 = vpop.eup %5830 }
 0x373   :  { %v525_v19 = vmul.f32 %v5831_v18, %v5827_v9  ;;  %v788_v24 = vpop.permute.xlu1 %787 }
 0x374   :  { %v793_v26 = vsel %vm467_vm9, %v788_v24, 0 }
 0x375   :  { %v526_v20 = vpack.c.bf16 %v525_v19, %v525_v19 }
 0x377   :  { %5511 = vmatmul.mubr.msk.bf16.vlgmr.msra.gmra.mrb[4].mxu0 %vm467_vm9, %v526_v20 }
 0x378   :  { %5521 = vmatpush3.bf16.msra.mxu0 %v648_v21  ;;  %5522 = vmatprep.mubr.msk.bf16.mxu0 %vm6034_vm0, %v7898_v1 }
 0x379   :  { %5538 = vmatprep.subr.bf16.mxu0 %v7898_v1 }
 0x37a   :  { %v5833_v22 = vpop.eup %5832 }
 0x37b   :  { %v640_v23 = vmul.f32 %v5833_v22, %v5829_v11 }
 0x37d   :  { %v641_v25 = vpack.c.bf16 %v640_v23, %v640_v23 }
 0x37f   :  { %5523 = vmatmul.mubr.msk.bf16.vlgmr.msra.gmra.mrb[8].mxu0 %vm467_vm9, %v641_v25 }
 0x380   :  { %5540 = vmatprep.mubr.msk.bf16.mxu0 %vm6034_vm0, %v7898_v1 }
 0x381   :  { %5539 = vmatpush3.bf16.xpose.msra.mxu0 %v793_v26 }
 0x382   :  { %5544 = vmatprep.subr.bf16.mxu0 %v7898_v1 }
 0x388   :  { %5541 = vmatmul.mubr.msk.bf16.vlgmr.msra.gmra.mrb[12].mxu0 %vm467_vm9, %v786_v27 }
 0x389   :  { %5546 = vmatprep.mubr.msk.bf16.mxu0 %vm6034_vm0, %v7898_v1 }
 0x44a   :  { %v570_v31 = vpop.f32.mrb[4].mxu0 }
 0x44b   :  { %v5512_v32 = vpop.f32.mrb[5].mxu0  ;;  %v578_v50 = vpack.c.bf16 %v570_v31, %v570_v31 }
 0x44c   :  { %v573_v33 = vpop.f32.mrb[6].mxu0 }
 0x44d   :  { %v5513_v35 = vpop.f32.mrb[7].mxu0 }
 0x452   :  { %v684_v37 = vpop.f32.mrb[8].mxu0 }
 0x453   :  { %v692_v38 = vpack.c.bf16 %v684_v37, %v684_v37  ;;  %v5524_v39 = vpop.f32.mrb[9].mxu0 }
 0x454   :  { %v687_v41 = vpop.f32.mrb[10].mxu0 }
 0x455   :  { %v5525_v42 = vpop.f32.mrb[11].mxu0  ;;  %5529 = vmatmul.mubr.msk.bf16.vlgmr.msra.gmra.mrb[8].mxu1 %vm467_vm9, %v692_v38 }
 0x456   :  { %5533 = vmatpush3.bf16.msra.mxu1 %v743_v40  ;;  %5534 = vmatprep.mubr.msk.bf16.mxu1 %vm6034_vm0, %v7898_v1 }
 0x457   :  { %5550 = vmatprep.subr.bf16.mxu1 %v7898_v1 }
 0x45b   :  { %v829_v43 = vpop.f32.mrb[12].mxu0 }
 0x45c   :  { %v835_v44 = vmul.f32 0.35355338, %v829_v43  ;;  %v5542_v45 = vpop.f32.mrb[13].mxu0 }
 0x45d   :  { %v832_v46 = vpop.f32.mrb[14].mxu0 }
 0x45e   :  { %v5543_v48 = vpop.f32.mrb[15].mxu0  ;;  %v836_v49 = vsel %vm467_vm9, %v835_v44, -inf  ;;  %v5867_v46 = vld [vmem:[%s7878_s0 + $0x2] sm:$0x1] }
 0x45f   :  { %837 = vmax.xlane.f32.xlu1 %v836_v49 }
 0x461   :  { %5535 = vmatmul.mubr.msk.bf16.vlgmr.msra.gmra.mrb[8].mxu1 %vm467_vm9, %v578_v50  ;;  %v5868_v50 = vld [vmem:[%s7878_s0 + $0x4] sm:$0x1] }
 0x462   :  { %5552 = vmatprep.mubr.msk.bf16.mxu1 %vm6034_vm0, %v7898_v1  ;;  %5551 = vmatpush3.bf16.msra.mxu1 %v903_v4 }
 0x463   :  { %5562 = vmatprep.subr.bf16.mxu1 %v7898_v1 }
 0x470   :  { %948 = vrot.lane.b32.xlu1 %v6172_v47, %s7893_s24 }
 0x474   :  { %946 = vrot.lane.b32.xlu1 %v6172_v47, %s7894_s25 }
 0x4ec   :  { %v838_v51 = vpop.xlane.xlu1 %837 }
 0x4ed   :  { %v839_v52 = vsub.f32 %v835_v44, %v838_v51  ;;  %v5866_v44 = vld [vmem:[%s7878_s0] sm:$0x1] }
 0x4ef   :  { %v840_v53 = vmul.f32 1.442695, %v839_v52  ;;  %v5869_v52 = vld [vmem:[%s7878_s0 + $0x6] sm:$0x1] }
 0x4f0   :  { %v949_v61 = vpop.permute.xlu1 %948 }
 0x4f1   :  { %5834 = vpow2.f32 %v840_v53  ;;  %v954_v63 = vsel %vm467_vm9, %v949_v61, 0  ;;  %v5873_v61 = vld [vmem:[%s7878_s0 + $0xe] sm:$0x1] }
 0x4f4   :  { %v947_v0 = vpop.permute.xlu1 %946 }
 0x4fb   :  { %v5835_v54 = vpop.eup %5834 }
 0x4fc   :  { %v842_v55 = vsel %vm467_vm9, %v5835_v54, 0.0 }
 0x4fd   :  { %843 = vadd.xlane.f32.xlu0 %v842_v55  ;;  %v5870_v55 = vld [vmem:[%s7878_s0 + $0x8] sm:$0x1] }
 0x513   :  { %848 = vrot.lane.b32.xlu0 %v6172_v47, %s7895_s26 }
 0x58a   :  { %v844_v56 = vpop.xlane.xlu0 %843 }
 0x58b   :  { %5836 = vrcp.f32 %v844_v56 }
 0x58e   :  { %v849_v57 = vpop.permute.xlu0 %848 }
 0x58f   :  { %v854_v58 = vsel %vm532_vm10, %v849_v57, 0  ;;  %v5871_v57 = vld [vmem:[%s7878_s0 + $0xa] sm:$0x1] }
 0x590   :  { %5545 = vmatpush3.bf16.msra.mxu0 %v854_v58 }
 0x591   :  { %5556 = vmatprep.subr.bf16.mxu0 %v7898_v1 }
 0x595   :  { %v5837_v59 = vpop.eup %5836 }
 0x596   :  { %v846_v60 = vmul.f32 %v5837_v59, %v5835_v54  ;;  %v4893_v54 = vld [vmem:[%s7882_s4] ss:$0 sm:$0xff]  ;;  %v5872_v59 = vld [vmem:[%s7878_s0 + $0xc] sm:$0x1] }
 0x598   :  { %v847_v62 = vpack.c.bf16 %v846_v60, %v846_v60 }
 0x59a   :  { %5547 = vmatmul.mubr.msk.bf16.vlgmr.msra.gmra.mrb[16].mxu0 %vm467_vm9, %v847_v62 }
 0x59b   :  { %5557 = vmatpush3.bf16.xpose.msra.mxu0 %v954_v63  ;;  %5558 = vmatprep.mubr.msk.bf16.mxu0 %vm6034_vm0, %v7898_v1 }
 0x5a2   :  { %5559 = vmatmul.mubr.msk.bf16.vlgmr.msra.gmra.mrb[20].mxu0 %vm467_vm9, %v947_v0 }
 0x66d   :  { %v890_v5 = vpop.f32.mrb[16].mxu0 }
 0x66e   :  { %v898_v6 = vpack.c.bf16 %v890_v5, %v890_v5  ;;  %v5548_v7 = vpop.f32.mrb[17].mxu0 }
 0x66f   :  { %v893_v8 = vpop.f32.mrb[18].mxu0 }
 0x670   :  { %v5549_v9 = vpop.f32.mrb[19].mxu0  ;;  %5553 = vmatmul.mubr.msk.bf16.vlgmr.msra.gmra.mrb[8].mxu1 %vm467_vm9, %v898_v6 }
 0x671   :  { %5564 = vmatprep.mubr.msk.bf16.mxu1 %vm6034_vm0, %v7898_v1 }
 0x675   :  { %v990_v10 = vpop.f32.mrb[20].mxu0 }
 0x676   :  { %v996_v11 = vmul.f32 0.35355338, %v990_v10  ;;  %v5560_v12 = vpop.f32.mrb[21].mxu0 }
 0x677   :  { %v993_v13 = vpop.f32.mrb[22].mxu0 }
 0x678   :  { %v5561_v14 = vpop.f32.mrb[23].mxu0  ;;  %v997_v15 = vsel %vm467_vm9, %v996_v11, -inf }
 0x679   :  { %998 = vmax.xlane.f32.xlu0 %v997_v15 }
 0x68f   :  { %1009 = vrot.lane.b32.xlu0 %v6172_v47, %s7892_s29  ;;  %v1057_v47 = vld [vmem:[%s7881_s3 + $0x18] sm:$0xff]  ;;  %s7957_s29 = smov 40  }
 0x690   :  { %v1058_v24 = vpack.c.bf16 %v1057_v47, %v1057_v47 }
 0x692   :  { %v1064_v28 = vsel %vm532_vm10, %v1058_v24, 0 }
 0x706   :  { %v999_v16 = vpop.xlane.xlu0 %998 }
 0x707   :  { %v1000_v17 = vsub.f32 %v996_v11, %v999_v16 }
 0x709   :  { %v1001_v18 = vmul.f32 1.442695, %v1000_v17 }
 0x70a   :  { %v1010_v19 = vpop.permute.xlu0 %1009 }
 0x70b   :  { %5838 = vpow2.f32 %v1001_v18  ;;  %v1015_v20 = vsel %vm532_vm10, %v1010_v19, 0 }
 0x70c   :  { %5563 = vmatpush3.bf16.msra.mxu1 %v1015_v20 }
 0x70d   :  { %5568 = vmatprep.subr.bf16.mxu1 %v7898_v1 }
 0x715   :  { %v5839_v21 = vpop.eup %5838 }
 0x716   :  { %v1003_v22 = vsel %vm467_vm9, %v5839_v21, 0.0 }
 0x717   :  { %1004 = vadd.xlane.f32.xlu1 %v1003_v22 }
 0x7a4   :  { %v1005_v23 = vpop.xlane.xlu1 %1004 }
 0x7a5   :  { %5840 = vrcp.f32 %v1005_v23 }
 0x7af   :  { %v5841_v25 = vpop.eup %5840 }
 0x7b0   :  { %v1007_v26 = vmul.f32 %v5841_v25, %v5839_v21 }
 0x7b2   :  { %v1008_v27 = vpack.c.bf16 %v1007_v26, %v1007_v26 }
 0x7b4   :  { %5565 = vmatmul.mubr.msk.bf16.vlgmr.msra.gmra.mrb[12].mxu1 %vm467_vm9, %v1008_v27 }
 0x7b5   :  { %5569 = vmatpush3.bf16.msra.mxu1 %v1064_v28  ;;  %5570 = vmatprep.mubr.msk.bf16.mxu1 %vm6034_vm0, %v7898_v1 }
 0x887   :  { %v1051_v29 = vpop.f32.mrb[12].mxu1 }
 0x888   :  { %v1059_v30 = vpack.c.bf16 %v1051_v29, %v1051_v29  ;;  %v5566_v31 = vpop.f32.mrb[13].mxu1 }
 0x889   :  { %v1054_v32 = vpop.f32.mrb[14].mxu1 }
 0x88a   :  { %v5567_v33 = vpop.f32.mrb[15].mxu1  ;;  %5571 = vmatmul.mubr.msk.bf16.vlgmr.msra.gmra.mrb[8].mxu1 %vm467_vm9, %v1059_v30 }
 0x95d   :  { %v1100_v34 = vpop.f32.mrb[8].mxu1 }
 0x95e   :  { %v1108_v35 = vrot.slane %v1100_v34, 1  ;;  %v1109_v36 = vrot.slane %v1100_v34, 2  ;;  %v1110_v37 = vrot.slane %v1100_v34, 3  ;;  %v5572_v38 = vpop.f32.mrb[9].mxu1  ;;  %v1111_v40 = vrot.slane %v1100_v34, 4 }
 0x95f   :  { %v1103_v39 = vpop.f32.mrb[10].mxu1  ;;  %v1112_v41 = vrot.slane %v1100_v34, 5  ;;  %v1113_v42 = vrot.slane %v1100_v34, 6  ;;  %v1114_v43 = vrot.slane %v1100_v34, 7  ;;  %v1123_v45 = vadd.f32 %v5866_v44, %v1100_v34 }
 0x960   :  { %v1124_v48 = vadd.f32 %v5867_v46, %v1108_v35  ;;  %v5573_v49 = vpop.f32.mrb[11].mxu1  ;;  %v1125_v51 = vadd.f32 %v5868_v50, %v1109_v36  ;;  %v1126_v53 = vadd.f32 %v5869_v52, %v1110_v37  ;;  %v1127_v56 = vadd.f32 %v5870_v55, %v1111_v40 }
 0x961   :  { %v1128_v58 = vadd.f32 %v5871_v57, %v1112_v41  ;;  %v1129_v60 = vadd.f32 %v5872_v59, %v1113_v42  ;;  %v1130_v62 = vadd.f32 %v5873_v61, %v1114_v43  ;;  %v1137_v4 = vadd.f32 %v4893_v54, %v1123_v45 }
 0x962   :  { %v1138_v63 = vadd.f32 %v4893_v54, %v1124_v48  ;;  %v1139_v0 = vadd.f32 %v4893_v54, %v1125_v51  ;;  %v1140_v2 = vadd.f32 %v4893_v54, %v1126_v53  ;;  %v1141_v3 = vadd.f32 %v4893_v54, %v1127_v56 }
 0x963   :  { %v1142_v5 = vadd.f32 %v4893_v54, %v1128_v58  ;;  %v1143_v8 = vadd.f32 %v4893_v54, %v1129_v60  ;;  %v1144_v9 = vadd.f32 %v4893_v54, %v1130_v62 }
 0x964   :  { %v1153_v6 = vrot.slane %v1138_v63, 7  ;;  %v1155_v7 = vrot.slane %v1139_v0, 6  ;;  %v1157_v11 = vrot.slane %v1140_v2, 5  ;;  %v1159_v13 = vrot.slane %v1141_v3, 4 }
 0x965   :  { %v1161_v15 = vrot.slane %v1142_v5, 3  ;;  %v1163_v17 = vrot.slane %v1143_v8, 2  ;;  %v1165_v19 = vrot.slane %v1144_v9, 1 }
 0x966   :  { %v1154_v10 = vsel %vm386_vm1, %v1153_v6, %v1137_v4  ;;  %v70_v6 = vld [vmem:[%s7885_s7 + $0x80] sm:$0xff] }
 0x967   :  { %v1156_v12 = vsel %vm389_vm2, %v1155_v7, %v1154_v10  ;;  %v78_v7 = vld [vmem:[%s7885_s7 + $0xc0] sm:$0xff] }
 0x968   :  { %v1158_v14 = vsel %vm392_vm3, %v1157_v11, %v1156_v12  ;;  %v6374_v11 = vcombine.high %v70_v6, %v78_v7  ;;  %v72_v12 = vld [vmem:[%s7885_s7 + $0x90] sm:$0xff] }
 0x969   :  { %v1160_v16 = vsel %vm395_vm4, %v1159_v13, %v1158_v14  ;;  %v80_v13 = vld [vmem:[%s7885_s7 + $0xd0] sm:$0xff] }
 0x96a   :  { %v1162_v18 = vsel %vm398_vm5, %v1161_v15, %v1160_v16  ;;  %v6383_v14 = vcombine.high %v72_v12, %v80_v13  ;;  %v6387_v15 = vcombine.low %v70_v6, %v78_v7  ;;  %v6391_v16 = vcombine.low %v72_v12, %v80_v13 }
 0x96b   :  { %v1164_v20 = vsel %vm401_vm6, %v1163_v17, %v1162_v18  ;;  %v55_v17 = vld [vmem:[%s7885_s7 + $0x8] sm:$0xff] }
 0x96c   :  { %v1166_v21 = vsel %vm404_vm7, %v1165_v19, %v1164_v20  ;;  %v63_v18 = vld [vmem:[%s7885_s7 + $0x48] sm:$0xff]  ;;  %v58_v19 = vld [vmem:[%s7885_s7 + $0x20] sm:$0xff] }
 0x96d   :  { %v1168_v22 = vsel %vm419_vm8, %v1166_v21, 0.0  ;;  %v6405_v20 = vcombine.high %v55_v17, %v63_v18  ;;  %v66_v21 = vld [vmem:[%s7885_s7 + $0x60] sm:$0xff] }
 0x96e   :  { %1169 = vadd.xlane.f32.xlu1 %v1168_v22  ;;  %v6410_v22 = vcombine.low %v55_v17, %v63_v18 }
 0x9fb   :  { %v1170_v23 = vpop.xlane.xlu1 %1169 }
 0x9fc   :  { %v1172_v47 = vmul.f32 0.03125, %v1170_v23  ;;  %v6412_v23 = vcombine.low %v58_v19, %v66_v21 }
 0x9fe   :  { %v1174_v24 = vrot.slane %v1172_v47, 1  ;;  %v1175_v25 = vrot.slane %v1172_v47, 2  ;;  %v1176_v26 = vrot.slane %v1172_v47, 3  ;;  %v1177_v27 = vrot.slane %v1172_v47, 4 }
 0x9ff   :  { %v1178_v28 = vrot.slane %v1172_v47, 5  ;;  %v1179_v29 = vrot.slane %v1172_v47, 6  ;;  %v1180_v30 = vrot.slane %v1172_v47, 7  ;;  %v6306_v31 = vsub.f32 %v1137_v4, %v1172_v47 }
 0xa00   :  { %v6308_v32 = vsub.f32 %v1138_v63, %v1174_v24  ;;  %v6310_v33 = vsub.f32 %v1139_v0, %v1175_v25  ;;  %v6312_v34 = vsub.f32 %v1140_v2, %v1176_v26  ;;  %v6314_v35 = vsub.f32 %v1141_v3, %v1177_v27  ;;  %v54_v63 = vld [vmem:[%s7885_s7] sm:$0xff]  ;;  %v56_v2 = vld [vmem:[%s7885_s7 + $0x10] sm:$0xff] }
 0xa01   :  { %v6316_v36 = vsub.f32 %v1142_v5, %v1178_v28  ;;  %v6318_v37 = vsub.f32 %v1143_v8, %v1179_v29  ;;  %v6320_v38 = vsub.f32 %v1144_v9, %v1180_v30  ;;  %v1197_v43 = vmul.f32 %v6306_v31, %v6306_v31  ;;  %v62_v0 = vld [vmem:[%s7885_s7 + $0x40] sm:$0xff]  ;;  %v64_v5 = vld [vmem:[%s7885_s7 + $0x50] sm:$0xff] }
 0xa02   :  { %v1198_v39 = vmul.f32 %v6308_v32, %v6308_v32  ;;  %v1199_v40 = vmul.f32 %v6310_v33, %v6310_v33  ;;  %v1200_v41 = vmul.f32 %v6312_v34, %v6312_v34  ;;  %v1201_v42 = vmul.f32 %v6314_v35, %v6314_v35  ;;  %v4894_v28 = vld [vmem:[%s7883_s5] ss:$0 sm:$0xff] }
 0xa03   :  { %v1202_v44 = vmul.f32 %v6316_v36, %v6316_v36  ;;  %v1203_v48 = vmul.f32 %v6318_v37, %v6318_v37  ;;  %v1204_v49 = vmul.f32 %v6320_v38, %v6320_v38  ;;  %v6355_v3 = vcombine.low %v54_v63, %v62_v0 }
 0xa04   :  { %v1213_v45 = vrot.slane %v1198_v39, 7  ;;  %v1215_v46 = vrot.slane %v1199_v40, 6  ;;  %v1217_v51 = vrot.slane %v1200_v41, 5  ;;  %v1219_v53 = vrot.slane %v1201_v42, 4 }
 0xa05   :  { %v1221_v55 = vrot.slane %v1202_v44, 3  ;;  %v1223_v57 = vrot.slane %v1203_v48, 2  ;;  %v1225_v59 = vrot.slane %v1204_v49, 1  ;;  %v6357_v4 = vcombine.high %v54_v63, %v62_v0 }
 0xa06   :  { %v1214_v50 = vsel %vm386_vm1, %v1213_v45, %v1197_v43  ;;  %v7896_v8 = vmov 0   ;;  %v6370_v9 = vcombine.low %v56_v2, %v64_v5  ;;  %v6372_v10 = vcombine.high %v56_v2, %v64_v5  ;;  %v4895_v45 = vld [vmem:[%s7884_s6] ss:$0 sm:$0xff] }
 0xa07   :  { %v1216_v52 = vsel %vm389_vm2, %v1215_v46, %v1214_v50  ;;  %1602 = vmatprep.mubr.bf16.mxu0 %v7896_v8  ;;  %1684 = vmatprep.mubr.bf16.mxu1 %v7896_v8  ;;  %v6414_v47 = vcombine.high %v58_v19, %v66_v21 }
 0xa08   :  { %v1218_v54 = vsel %vm392_vm3, %v1217_v51, %v1216_v52  ;;  %1570 = vmatprep.subr.bf16.mxu0 %v6357_v4  ;;  %1652 = vmatprep.subr.bf16.mxu1 %v6372_v10 }
 0xa09   :  { %v1220_v56 = vsel %vm395_vm4, %v1219_v53, %v1218_v54  ;;  %1571 = vmatpush1.bf16.msra.mxu0 %v6355_v3  ;;  %1653 = vmatpush1.bf16.msra.mxu1 %v6370_v9 }
 0xa0a   :  { %v1222_v58 = vsel %vm398_vm5, %v1221_v55, %v1220_v56  ;;  %1572 = vmatprep.subr.bf16.mxu0 %v6374_v11  ;;  %1654 = vmatprep.subr.bf16.mxu1 %v6383_v14 }
 0xa0b   :  { %v1224_v60 = vsel %vm401_vm6, %v1223_v57, %v1222_v58 }
 0xa0c   :  { %v1226_v61 = vsel %vm404_vm7, %v1225_v59, %v1224_v60 }
 0xa0d   :  { %v1228_v62 = vsel %vm419_vm8, %v1226_v61, 0.0  ;;  %1573 = vmatpush1.bf16.msra.mxu0 %v6387_v15  ;;  %1655 = vmatpush1.bf16.msra.mxu1 %v6391_v16 }
 0xa0e   :  { %1229 = vadd.xlane.f32.xlu1 %v1228_v62  ;;  %1611 = vmatprep.subr.bf16.mxu0 %v6405_v20 }
 0xa0f   :  { %1734 = vmatprep.subr.bf16.mxu1 %v6414_v47 }
 0xa9b   :  { %v1230_v24 = vpop.xlane.xlu1 %1229 }
 0xa9c   :  { %v1231_v25 = vmul.f32 0.03125, %v1230_v24 }
 0xa9e   :  { %v1232_v26 = vadd.f32 1e-05, %v1231_v25 }
 0xaa0   :  { %5842 = vrsqrt.f32 %v1232_v26 }
 0xaaa   :  { %v5843_v27 = vpop.eup %5842 }
 0xaab   :  { %v1235_v29 = vrot.slane %v5843_v27, 1  ;;  %v1236_v30 = vrot.slane %v5843_v27, 2  ;;  %v1237_v39 = vrot.slane %v5843_v27, 3  ;;  %v1238_v40 = vrot.slane %v5843_v27, 4 }
 0xaac   :  { %v1239_v41 = vrot.slane %v5843_v27, 5  ;;  %v1240_v42 = vrot.slane %v5843_v27, 6  ;;  %v1241_v43 = vrot.slane %v5843_v27, 7  ;;  %v1250_v44 = vmul.f32 %v5843_v27, %v6306_v31 }
 0xaad   :  { %v1251_v46 = vmul.f32 %v1235_v29, %v6308_v32  ;;  %v1252_v48 = vmul.f32 %v1236_v30, %v6310_v33  ;;  %v1253_v49 = vmul.f32 %v1237_v39, %v6312_v34  ;;  %v1254_v50 = vmul.f32 %v1238_v40, %v6314_v35 }
 0xaae   :  { %v1255_v51 = vmul.f32 %v1239_v41, %v6316_v36  ;;  %v1256_v52 = vmul.f32 %v1240_v42, %v6318_v37  ;;  %v1257_v53 = vmul.f32 %v1241_v43, %v6320_v38  ;;  %v1264_v54 = vmul.f32 %v4894_v28, %v1250_v44 }
 0xaaf   :  { %v1265_v31 = vmul.f32 %v4894_v28, %v1251_v46  ;;  %v1266_v55 = vmul.f32 %v4894_v28, %v1252_v48  ;;  %v1267_v56 = vmul.f32 %v4894_v28, %v1253_v49  ;;  %v1268_v57 = vmul.f32 %v4894_v28, %v1254_v50 }
 0xab0   :  { %v1269_v58 = vmul.f32 %v4894_v28, %v1255_v51  ;;  %v1270_v59 = vmul.f32 %v4894_v28, %v1256_v52  ;;  %v1271_v32 = vmul.f32 %v4894_v28, %v1257_v53  ;;  %v1278_v60 = vadd.f32 %v4895_v45, %v1264_v54  ;;  %v71_v52 = vld [vmem:[%s7885_s7 + $0x88] sm:$0xff] }
 0xab1   :  { %v1279_v33 = vadd.f32 %v4895_v45, %v1265_v31  ;;  %v1280_v61 = vadd.f32 %v4895_v45, %v1266_v55  ;;  %v1281_v34 = vadd.f32 %v4895_v45, %v1267_v56  ;;  %v1282_v62 = vadd.f32 %v4895_v45, %v1268_v57  ;;  %v79_v56 = vld [vmem:[%s7885_s7 + $0xc8] sm:$0xff]  ;;  %v74_v57 = vld [vmem:[%s7885_s7 + $0xa0] sm:$0xff] }
 0xab2   :  { %v1283_v35 = vadd.f32 %v4895_v45, %v1269_v58  ;;  %v1284_v63 = vadd.f32 %v4895_v45, %v1270_v59  ;;  %v1285_v36 = vadd.f32 %v4895_v45, %v1271_v32  ;;  %v1286_v0 = vpack.c.bf16 %v1278_v60, %v1278_v60  ;;  %v82_v58 = vld [vmem:[%s7885_s7 + $0xe0] sm:$0xff] }
 0xab3   :  { %v1287_v37 = vpack.c.bf16 %v1279_v33, %v1279_v33  ;;  %v1288_v2 = vpack.c.bf16 %v1280_v61, %v1280_v61  ;;  %v1289_v38 = vpack.c.bf16 %v1281_v34, %v1281_v34  ;;  %v1290_v5 = vpack.c.bf16 %v1282_v62, %v1282_v62 }
 0xab4   :  { %v1291_v6 = vpack.c.bf16 %v1283_v35, %v1283_v35  ;;  %v1292_v7 = vpack.c.bf16 %v1284_v63, %v1284_v63  ;;  %v1293_v12 = vpack.c.bf16 %v1285_v36, %v1285_v36  ;;  %v3032_v21 = vrot.slane %v1279_v33, 7 }
 0xab5   :  { %v1385_v13 = vunpack.c.l.b16 %v1287_v37  ;;  %v1386_v17 = vunpack.c.l.b16 %v1288_v2  ;;  %v1387_v18 = vunpack.c.l.b16 %v1289_v38  ;;  %v1388_v19 = vunpack.c.l.b16 %v1290_v5  ;;  %v57_v2 = vld [vmem:[%s7885_s7 + $0x18] sm:$0xff]  ;;  %v60_v38 = vld [vmem:[%s7885_s7 + $0x30] sm:$0xff] }
 0xab6   :  { %v1384_v24 = vunpack.c.l.b16 %v1286_v0  ;;  %v1389_v25 = vunpack.c.l.b16 %v1291_v6  ;;  %v1390_v28 = vunpack.c.l.b16 %v1292_v7  ;;  %v3033_v29 = vsel %vm386_vm1, %v3032_v21, %v1278_v60  ;;  %v68_v5 = vld [vmem:[%s7885_s7 + $0x70] sm:$0xff] }
 0xab7   :  { %v1392_v26 = vrot.slane %v1385_v13, 7  ;;  %v1394_v27 = vrot.slane %v1386_v17, 6  ;;  %v1391_v30 = vunpack.c.l.b16 %v1293_v12  ;;  %v1396_v40 = vrot.slane %v1387_v18, 5  ;;  %v73_v17 = vld [vmem:[%s7885_s7 + $0x98] sm:$0xff]  ;;  %v84_v21 = vld [vmem:[%s7885_s7 + $0xf0] sm:$0xff] }
 0xab8   :  { %v3034_v41 = vrot.slane %v1280_v61, 6  ;;  %v1398_v43 = vrot.slane %v1388_v19, 4  ;;  %v3036_v44 = vrot.slane %v1281_v34, 5  ;;  %v1400_v46 = vrot.slane %v1389_v25, 3  ;;  %v81_v18 = vld [vmem:[%s7885_s7 + $0xd8] sm:$0xff]  ;;  %v76_v19 = vld [vmem:[%s7885_s7 + $0xb0] sm:$0xff] }
 0xab9   :  { %v1393_v39 = vsel %vm386_vm1, %v1392_v26, %v1384_v24  ;;  %v3038_v49 = vrot.slane %v1282_v62, 4  ;;  %v1402_v51 = vrot.slane %v1390_v28, 2  ;;  %v3040_v54 = vrot.slane %v1283_v35, 3  ;;  %v59_v28 = vld [vmem:[%s7885_s7 + $0x28] sm:$0xff] }
 0xaba   :  { %v1395_v42 = vsel %vm389_vm2, %v1394_v27, %v1393_v39  ;;  %v3035_v48 = vsel %vm389_vm2, %v3034_v41, %v3033_v29  ;;  %v1404_v55 = vrot.slane %v1391_v30, 1  ;;  %v3042_v32 = vrot.slane %v1284_v63, 2  ;;  %v67_v29 = vld [vmem:[%s7885_s7 + $0x68] sm:$0xff]  ;;  %v5698_v41 = vld [vmem:[%s7887_s9 + $0x40] sm:$0xff]  }
 0xabb   :  { %v1397_v45 = vsel %vm392_vm3, %v1396_v40, %v1395_v42  ;;  %v3037_v53 = vsel %vm392_vm3, %v3036_v44, %v3035_v48  ;;  %v3044_v61 = vrot.slane %v1285_v36, 1  ;;  %v6459_v0 = vcombine.high %v71_v52, %v79_v56  ;;  %v65_v36 = vld [vmem:[%s7885_s7 + $0x58] sm:$0xff]  ;;  %v75_v42 = vld [vmem:[%s7885_s7 + $0xa8] sm:$0xff] }
 0xabc   :  { %v1399_v50 = vsel %vm395_vm4, %v1398_v43, %v1397_v45  ;;  %v3039_v59 = vsel %vm395_vm4, %v3038_v49, %v3037_v53  ;;  %v6461_v37 = vcombine.high %v74_v57, %v82_v58  ;;  %v6484_v6 = vcombine.low %v71_v52, %v79_v56  ;;  %v83_v43 = vld [vmem:[%s7885_s7 + $0xe8] sm:$0xff]  ;;  %v61_v48 = vld [vmem:[%s7885_s7 + $0x38] sm:$0xff] }
 0xabd   :  { %v1401_v31 = vsel %vm398_vm5, %v1400_v46, %v1399_v50  ;;  %v3041_v33 = vsel %vm398_vm5, %v3040_v54, %v3039_v59  ;;  %v6486_v7 = vcombine.low %v74_v57, %v82_v58  ;;  %v6490_v12 = vcombine.high %v57_v2, %v65_v36  ;;  %v5699_v46 = vld [vmem:[%s7887_s9] sm:$0xff]   ;;  %v69_v49 = vld [vmem:[%s7885_s7 + $0x78] sm:$0xff]  ;;  %v5700_v50 = vld [vmem:[%s7887_s9 + $0x48] sm:$0xff]  }
 0xabe   :  { %v1403_v60 = vsel %vm401_vm6, %v1402_v51, %v1401_v31  ;;  %v3043_v62 = vsel %vm401_vm6, %v3042_v32, %v3041_v33  ;;  %v6492_v13 = vcombine.high %v60_v38, %v68_v5  ;;  %v6510_v24 = vcombine.low %v57_v2, %v65_v36  ;;  %v5701_v53 = vld [vmem:[%s7887_s9 + $0x8] sm:$0xff]   ;;  %v77_v54 = vld [vmem:[%s7885_s7 + $0xb8] sm:$0xff]  ;;  %v5704_v58 = vld [vmem:[%s7887_s9 + $0x10] sm:$0xff]  }
 0xabf   :  { %v1405_v34 = vsel %vm404_vm7, %v1404_v55, %v1403_v60  ;;  %v6467_v63 = vsel %vm404_vm7, %v3044_v61, %v3043_v62  ;;  %v6512_v25 = vcombine.low %v60_v38, %v68_v5  ;;  %v6516_v26 = vcombine.high %v73_v17, %v81_v18  ;;  %v85_v31 = vld [vmem:[%s7885_s7 + $0xf8] sm:$0xff]  ;;  %v5702_v55 = vld [vmem:[%s7887_s9 + $0x50] sm:$0xff]   ;;  %v5703_v60 = vld [vmem:[%s7887_s9 + $0xc0] sm:$0xff]  }
 0xac0   :  { %v6457_v35 = vpack.c.b16 %v1405_v34, %v1405_v34  ;;  %v6518_v27 = vcombine.high %v76_v19, %v84_v21  ;;  %v6532_v30 = vcombine.low %v73_v17, %v81_v18  ;;  %v6534_v39 = vcombine.low %v76_v19, %v84_v21  ;;  %v5706_v59 = vld [vmem:[%s7887_s9 + $0x58] sm:$0xff]   ;;  %v5710_v61 = vld [vmem:[%s7887_s9 + $0x60] sm:$0xff]   ;;  %v5707_v62 = vld [vmem:[%s7887_s9 + $0xc8] sm:$0xff]  }
 0xac1   :  { %v6538_v40 = vcombine.high %v59_v28, %v67_v29  ;;  %v6553_v44 = vcombine.low %v59_v28, %v67_v29  ;;  %v6556_v45 = vcombine.high %v75_v42, %v83_v43  ;;  %v6575_v51 = vcombine.low %v75_v42, %v83_v43  ;;  %v5708_v33 = vld [vmem:[%s7887_s9 + $0x18] sm:$0xff]   ;;  %v5705_v34 = vld [vmem:[%s7887_s9 + $0x80] sm:$0xff]   ;;  %v5714_v36 = vld [vmem:[%s7887_s9 + $0x68] sm:$0xff]  }
 0xac2   :  { %4928 = vmatmul.mubr.msk.bf16.vlgmr.msra.gmra.mrb[24].mxu0 %vm419_vm8, %v6457_v35  ;;  %4930 = vmatmul.mubr.msk.bf16.vlgmr.msra.gmra.mrb[16].mxu1 %vm419_vm8, %v6457_v35  ;;  %v6579_v52 = vcombine.high %v61_v48, %v69_v49  ;;  %v6594_v56 = vcombine.low %v61_v48, %v69_v49  ;;  %v6597_v57 = vcombine.high %v77_v54, %v85_v31  ;;  %v5712_v2 = vld [vmem:[%s7887_s9 + $0x20] sm:$0xff]   ;;  %v5709_v38 = vld [vmem:[%s7887_s9 + $0x88] sm:$0xff]   ;;  %v5711_v5 = vld [vmem:[%s7887_s9 + $0xd0] sm:$0xff]  }
 0xac3   :  { %1612 = vmatpush1.bf16.msra.mxu0 %v6410_v22  ;;  %1735 = vmatpush1.bf16.msra.mxu1 %v6412_v23  ;;  %v6608_v32 = vcombine.low %v77_v54, %v85_v31  ;;  %v5716_v17 = vld [vmem:[%s7887_s9 + $0x28] sm:$0xff]   ;;  %v5715_v18 = vld [vmem:[%s7887_s9 + $0xd8] sm:$0xff]   ;;  %v5718_v21 = vld [vmem:[%s7887_s9 + $0x70] sm:$0xff]  }
 0xac4   :  { %1613 = vmatprep.subr.bf16.mxu0 %v6459_v0  ;;  %1736 = vmatprep.subr.bf16.mxu1 %v6461_v37  ;;  %7926 = vst [vmem:[#allocation5_spill] sm:$0xff] %v6597_v57  ;;  %v5717_v19 = vld [vmem:[%s7887_s9 + $0x98] sm:$0xff]   ;;  %v5719_v28 = vld [vmem:[%s7887_s9 + $0xe0] sm:$0xff]   ;;  %v5720_v29 = vld [vmem:[%s7887_s9 + $0x30] sm:$0xff]  }
 0xac5   :  { %1643 = vmatprep.mubr.bf16.mxu0 %v7896_v8  ;;  %1766 = vmatprep.mubr.bf16.mxu1 %v7896_v8  ;;  %7927 = vst [vmem:[#allocation6_spill] sm:$0xff] %v6608_v32  ;;  %v5722_v42 = vld [vmem:[%s7887_s9 + $0x78] sm:$0xff]   ;;  %v5723_v43 = vld [vmem:[%s7887_s9 + $0xe8] sm:$0xff]   ;;  %v5726_v49 = vld [vmem:[%s7887_s9 + $0xf0] sm:$0xff]  }
 0xac6   :  { %v5725_v48 = vld [vmem:[%s7887_s9 + $0xa8] sm:$0xff]   ;;  %v5730_v54 = vld [vmem:[%s7887_s9 + $0xf8] sm:$0xff]  }
 0xac7   :  { %1614 = vmatpush1.bf16.msra.mxu0 %v6484_v6  ;;  %1737 = vmatpush1.bf16.msra.mxu1 %v6486_v7  ;;  %v5732_v31 = vld [vmem:[%s7887_s9 + $0xb8] sm:$0xff]  }
 0xac8   :  { %1693 = vmatprep.subr.bf16.mxu0 %v6490_v12  ;;  %1816 = vmatprep.subr.bf16.mxu1 %v6492_v13 }
 0xaca   :  { %4929 = vmatmul.mubr.msk.bf16.vlgmr.msra.gmra.mrb[28].mxu0 %vm419_vm8, %v6457_v35  ;;  %4932 = vmatmul.mubr.msk.bf16.vlgmr.msra.gmra.mrb[20].mxu1 %vm419_vm8, %v6457_v35 }
 0xacb   :  { %1694 = vmatpush1.bf16.msra.mxu0 %v6510_v24  ;;  %1817 = vmatpush1.bf16.msra.mxu1 %v6512_v25 }
 0xacc   :  { %1695 = vmatprep.subr.bf16.mxu0 %v6516_v26  ;;  %1818 = vmatprep.subr.bf16.mxu1 %v6518_v27 }
 0xacd   :  { %1725 = vmatprep.mubr.bf16.mxu0 %v7896_v8  ;;  %1848 = vmatprep.mubr.bf16.mxu1 %v7896_v8 }
 0xacf   :  { %1696 = vmatpush1.bf16.msra.mxu0 %v6532_v30  ;;  %1819 = vmatpush1.bf16.msra.mxu1 %v6534_v39 }
 0xad0   :  { %1775 = vmatprep.subr.bf16.mxu0 %v6538_v40  ;;  %5115 = vmatprep.subr.bf16.mxu1 %v5698_v41  ;;  %v5721_v41 = vld [vmem:[%s7887_s9 + $0xa0] sm:$0xff]  }
 0xad2   :  { %4931 = vmatmul.mubr.msk.bf16.vlgmr.msra.gmra.mrb[32].mxu0 %vm419_vm8, %v6457_v35  ;;  %4934 = vmatmul.mubr.msk.bf16.vlgmr.msra.gmra.mrb[24].mxu1 %vm419_vm8, %v6457_v35 }
 0xad3   :  { %1776 = vmatpush1.bf16.msra.mxu0 %v6553_v44  ;;  %1807 = vmatprep.mubr.bf16.mxu0 %v7896_v8 }
 0xad4   :  { %1777 = vmatprep.subr.bf16.mxu0 %v6556_v45  ;;  %5116 = vmatpush3.bf16.msra.mxu1 %v5699_v46  ;;  %v5724_v46 = vld [vmem:[%s7887_s9 + $0x38] sm:$0xff]  }
 0xad5   :  { %5117 = vmatprep.subr.bf16.mxu1 %v5700_v50  ;;  %v5727_v50 = vld [vmem:[%s7887_s9 + $0x140] sm:$0xff]  }
 0xad7   :  { %1778 = vmatpush1.bf16.msra.mxu0 %v6575_v51 }
 0xad8   :  { %1857 = vmatprep.subr.bf16.mxu0 %v6579_v52  ;;  %5118 = vmatpush3.bf16.msra.mxu1 %v5701_v53  ;;  %v5728_v53 = vld [vmem:[%s7887_s9 + $0xb0] sm:$0xff]  }
 0xad9   :  { %5119 = vmatprep.subr.bf16.mxu1 %v5702_v55  ;;  %v5735_v55 = vld [vmem:[%s7887_s9 + $0x1c0] sm:$0xff]  }
 0xada   :  { %4933 = vmatmul.mubr.msk.bf16.vlgmr.msra.gmra.mrb[36].mxu0 %vm419_vm8, %v6457_v35 }
 0xadb   :  { %1858 = vmatpush1.bf16.msra.mxu0 %v6594_v56  ;;  %1889 = vmatprep.mubr.bf16.mxu0 %v7896_v8 }
 0xadc   :  { %1859 = vmatprep.subr.bf16.mxu0 %v6597_v57  ;;  %5120 = vmatpush3.bf16.msra.mxu1 %v5704_v58  ;;  %v1296_v58 = vlaneseq }
 0xadd   :  { %5121 = vmatprep.subr.bf16.mxu1 %v5706_v59 }
 0xade   :  { %v6696_v59 = vshrl.u32 %v1296_v58, 7 }
 0xadf   :  { %1860 = vmatpush1.bf16.msra.mxu0 %v6608_v32 }
 0xae0   :  { %5137 = vmatprep.subr.bf16.mxu0 %v5703_v60  ;;  %5122 = vmatpush3.bf16.msra.mxu1 %v5708_v33  ;;  %7928 = vst [vmem:[#allocation7_spill] sm:$0xff] %v6696_v59  ;;  %v7906_v60 = vsub.s32 6, %v6696_v59  ;;  %v6702_v33 = vld [vmem:[%s7886_s8 + $0x8] sm:$0xff]  ;;  %v7902_v1 = vsub.s32 7, %v6696_v59 }
 0xae1   :  { %5123 = vmatprep.subr.bf16.mxu1 %v5710_v61 }
 0xae2   :  { %4935 = vmatmul.mubr.msk.bf16.vlgmr.msra.gmra.mrb[40].mxu0 %vm419_vm8, %v6457_v35  ;;  %v5713_v35 = vld [vmem:[%s7887_s9 + $0x90] sm:$0xff]   ;;  %v6707_v61 = vrot.slane %v6702_v33, %v7906_v60 }
 0xae3   :  { %5138 = vmatpush3.bf16.msra.mxu0 %v5705_v34  ;;  %v7903_v34 = vsub.s32 0, %v6696_v59 }
 0xae4   :  { %5139 = vmatprep.subr.bf16.mxu0 %v5707_v62  ;;  %5124 = vmatpush3.bf16.msra.mxu1 %v5712_v2  ;;  %7929 = vst [vmem:[#allocation8_spill] sm:$0xff] %v6707_v61  ;;  %v6713_v62 = vld [vmem:[%s7886_s8] sm:$0xff]  ;;  %v1302_v2 = vsub.s32 1, %v6696_v59 }
 0xae5   :  { %5125 = vmatprep.subr.bf16.mxu1 %v5714_v36  ;;  %v7901_v36 = vsub.s32 5, %v6696_v59 }
 0xae7   :  { %5140 = vmatpush3.bf16.msra.mxu0 %v5709_v38  ;;  %v6720_v38 = vrot.slane %v6713_v62, %v7903_v34  ;;  %v5741_v34 = vld [vmem:[%s7887_s9 + $0x188] sm:$0xff]  }
 0xae8   :  { %5141 = vmatprep.subr.bf16.mxu0 %v5711_v5  ;;  %5126 = vmatpush3.bf16.msra.mxu1 %v5716_v17  ;;  %v6725_v5 = vrot.slane %v6713_v62, %v1302_v2  ;;  %v6730_v17 = vrot.slane %v6713_v62, %v7901_v36 }
 0xae9   :  { %5127 = vmatprep.subr.bf16.mxu1 %v5718_v21  ;;  %7930 = vst [vmem:[#allocation9_spill] sm:$0xff] %v6720_v38 }
 0xaea   :  { %7931 = vst [vmem:[#allocation10_spill] sm:$0xff] %v6725_v5  ;;  %7932 = vst [vmem:[#allocation11_spill] sm:$0xff] %v6730_v17 }
 0xaeb   :  { %5142 = vmatpush3.bf16.msra.mxu0 %v5713_v35 }
 0xaec   :  { %5143 = vmatprep.subr.bf16.mxu0 %v5715_v18  ;;  %5128 = vmatpush3.bf16.msra.mxu1 %v5720_v29  ;;  %v7900_v29 = vsub.s32 2, %v6696_v59 }
 0xaed   :  { %5129 = vmatprep.subr.bf16.mxu1 %v5722_v42 }
 0xaef   :  { %5144 = vmatpush3.bf16.msra.mxu0 %v5717_v19 }
 0xaf0   :  { %5145 = vmatprep.subr.bf16.mxu0 %v5719_v28  ;;  %5130 = vmatpush3.bf16.msra.mxu1 %v5724_v46 }
 0xaf1   :  { %5159 = vmatprep.subr.bf16.mxu1 %v5727_v50 }
 0xaf3   :  { %5146 = vmatpush3.bf16.msra.mxu0 %v5721_v41 }
 0xaf4   :  { %5147 = vmatprep.subr.bf16.mxu0 %v5723_v43 }
 0xaf7   :  { %5148 = vmatpush3.bf16.msra.mxu0 %v5725_v48  ;;  %v7904_v48 = vsub.s32 3, %v6696_v59 }
 0xaf8   :  { %5149 = vmatprep.subr.bf16.mxu0 %v5726_v49 }
 0xafb   :  { %5150 = vmatpush3.bf16.msra.mxu0 %v5728_v53 }
 0xafc   :  { %5151 = vmatprep.subr.bf16.mxu0 %v5730_v54 }
 0xaff   :  { %5152 = vmatpush3.bf16.msra.mxu0 %v5732_v31 }
 0xb00   :  { %5181 = vmatprep.subr.bf16.mxu0 %v5735_v55  ;;  %v6742_v55 = vrot.slane %v6713_v62, %v7900_v29 }
 0xb02   :  { %7933 = vst [vmem:[#allocation12_spill] sm:$0xff] %v6742_v55 }
 0xb95   :  { %v1604_v35 = vpop.f32.mrb[24].mxu0  ;;  %v6732_v18 = vpop.f32.mrb[16].mxu1 }
 0xb96   :  { %v1605_v19 = vadd.f32 %v1604_v35, %v6720_v38  ;;  %v1606_v21 = vpop.f32.mrb[25].mxu0  ;;  %v1688_v28 = vpop.f32.mrb[17].mxu1  ;;  %v6747_v35 = vrot.slane %v6713_v62, %v7904_v48 }
 0xb97   :  { %v1607_v41 = vadd.f32 %v1606_v21, %v6725_v5  ;;  %v1689_v42 = vadd.f32 %v1688_v28, %v6730_v17  ;;  %v1608_v43 = vpop.f32.mrb[26].mxu0  ;;  %v1690_v46 = vpop.f32.mrb[18].mxu1  ;;  %v5729_v21 = vld [vmem:[%s7887_s9 + $0x100] sm:$0xff]   ;;  %v5731_v28 = vld [vmem:[%s7887_s9 + $0x148] sm:$0xff]  }
 0xb98   :  { %v1898_v49 = vmax.f32 %v1605_v19, 0.0  ;;  %v1609_v50 = vpop.f32.mrb[27].mxu0  ;;  %v1691_v53 = vpop.f32.mrb[19].mxu1  ;;  %7934 = vst [vmem:[#allocation13_spill] sm:$0xff] %v6747_v35 }
 0xb99   :  { %v1899_v54 = vmax.f32 %v1607_v41, 0.0  ;;  %v1903_v31 = vmax.f32 %v1689_v42, 0.0 }
 0xb9a   :  { %v1914_v19 = vpack.c.bf16 %v1898_v49, %v1898_v49 }
 0xb9b   :  { %v1915_v58 = vpack.c.bf16 %v1899_v54, %v1899_v54  ;;  %v1919_v41 = vpack.c.bf16 %v1903_v31, %v1903_v31  ;;  %v5733_v31 = vld [vmem:[%s7887_s9 + $0x108] sm:$0xff]  }
 0xb9d   :  { %v1645_v42 = vpop.f32.mrb[28].mxu0  ;;  %v6755_v43 = vpop.f32.mrb[20].mxu1  ;;  %2736 = vmatprep.mubr.bf16.mxu1 %v1915_v58 }
 0xb9e   :  { %v1646_v46 = vadd.f32 %v1645_v42, %v6742_v55  ;;  %v1647_v50 = vpop.f32.mrb[29].mxu0  ;;  %v6758_v53 = vpop.f32.mrb[21].mxu1  ;;  %2737 = vmatmul.mubr.bf16.vlgmr.msra.gmra.mrb[28].mxu1 %v1914_v19  ;;  %v5734_v19 = vld [vmem:[%s7887_s9 + $0x150] sm:$0xff]   ;;  %v7950_v55 = vsub.s32 4, %v6696_v59 }
 0xb9f   :  { %v1648_v54 = vadd.f32 %v1647_v50, %v6747_v35  ;;  %5160 = vmatpush3.bf16.msra.mxu1 %v5729_v21  ;;  %v1649_v8 = vpop.f32.mrb[30].mxu0  ;;  %v1772_v49 = vpop.f32.mrb[22].mxu1  ;;  %2816 = vmatprep.mubr.bf16.mxu1 %v1919_v41  ;;  %v5736_v21 = vld [vmem:[%s7887_s9 + $0x110] sm:$0xff]   ;;  %v5738_v41 = vld [vmem:[%s7887_s9 + $0x158] sm:$0xff]  }
 0xba0   :  { %v1900_v29 = vmax.f32 %v1646_v46, 0.0  ;;  %v1650_v58 = vpop.f32.mrb[31].mxu0  ;;  %v1773_v36 = vpop.f32.mrb[23].mxu1  ;;  %5161 = vmatprep.subr.bf16.mxu1 %v5731_v28  ;;  %v6771_v8 = vrot.slane %v6713_v62, %v7902_v1  ;;  %v5739_v46 = vld [vmem:[%s7887_s9 + $0x1c8] sm:$0xff]   ;;  %v5740_v1 = vld [vmem:[%s7887_s9 + $0x118] sm:$0xff]   ;;  %v7127_v17 = vrot.slane %v6702_v33, %v7950_v55 }
 0xba1   :  { %v1901_v42 = vmax.f32 %v1648_v54, 0.0  ;;  %v5737_v36 = vld [vmem:[%s7887_s9 + $0x180] sm:$0xff]  }
 0xba2   :  { %7935 = vst [vmem:[#allocation14_spill] sm:$0xff] %v6771_v8  ;;  %v1916_v28 = vpack.c.bf16 %v1900_v29, %v1900_v29  ;;  %7951 = vst [vmem:[#allocation23_spill] sm:$0xff] %v7127_v17 }
 0xba3   :  { %v1917_v50 = vpack.c.bf16 %v1901_v42, %v1901_v42  ;;  %5162 = vmatpush3.bf16.msra.mxu1 %v5733_v31 }
 0xba4   :  { %5163 = vmatprep.subr.bf16.mxu1 %v5734_v19 }
 0xba5   :  { %v6785_v54 = vpop.f32.mrb[32].mxu0  ;;  %v6787_v49 = vpop.f32.mrb[24].mxu1  ;;  %2776 = vmatprep.mubr.bf16.mxu0 %v1917_v50 }
 0xba6   :  { %v1729_v31 = vpop.f32.mrb[33].mxu0  ;;  %v6789_v58 = vpop.f32.mrb[25].mxu1  ;;  %2777 = vmatmul.mubr.bf16.vlgmr.msra.gmra.mrb[44].mxu0 %v1916_v28  ;;  %v5742_v28 = vld [vmem:[%s7887_s9 + $0x160] sm:$0xff]  }
 0xba7   :  { %v1730_v29 = vadd.f32 %v1729_v31, %v6771_v8  ;;  %5164 = vmatpush3.bf16.msra.mxu1 %v5736_v21  ;;  %5182 = vmatpush3.bf16.msra.mxu0 %v5737_v36  ;;  %v1731_v19 = vpop.f32.mrb[34].mxu0  ;;  %v1854_v42 = vpop.f32.mrb[26].mxu1  ;;  %v5743_v21 = vld [vmem:[%s7887_s9 + $0x1d0] sm:$0xff]  }
 0xba8   :  { %v1732_v48 = vpop.f32.mrb[35].mxu0  ;;  %v1855_v50 = vpop.f32.mrb[27].mxu1  ;;  %5165 = vmatprep.subr.bf16.mxu1 %v5738_v41  ;;  %5183 = vmatprep.subr.bf16.mxu0 %v5739_v46  ;;  %v5744_v19 = vld [vmem:[%s7887_s9 + $0x120] sm:$0xff]   ;;  %v7905_v41 = vsub.s32 4, %v6696_v59  ;;  %v5746_v46 = vld [vmem:[%s7887_s9 + $0x168] sm:$0xff]  }
 0xba9   :  { %v1905_v36 = vmax.f32 %v1730_v29, 0.0  ;;  %v5745_v48 = vld [vmem:[%s7887_s9 + $0x190] sm:$0xff]   ;;  %v5748_v50 = vld [vmem:[%s7887_s9 + $0x128] sm:$0xff]  }
 0xbab   :  { %v1921_v31 = vpack.c.bf16 %v1905_v36, %v1905_v36  ;;  %5166 = vmatpush3.bf16.msra.mxu1 %v5740_v1  ;;  %5184 = vmatpush3.bf16.msra.mxu0 %v5741_v34  ;;  %v5747_v1 = vld [vmem:[%s7887_s9 + $0x1d8] sm:$0xff]  }
 0xbac   :  { %5167 = vmatprep.subr.bf16.mxu1 %v5742_v28  ;;  %5185 = vmatprep.subr.bf16.mxu0 %v5743_v21  ;;  %v5749_v28 = vld [vmem:[%s7887_s9 + $0x198] sm:$0xff]   ;;  %v6828_v21 = vrot.slane %v6713_v62, %v7905_v41 }
 0xbad   :  { %v6817_v34 = vpop.f32.mrb[36].mxu0  ;;  %2856 = vmatprep.mubr.bf16.mxu0 %v1921_v31  ;;  %v5750_v31 = vld [vmem:[%s7887_s9 + $0x170] sm:$0xff]  }
 0xbae   :  { %v1811_v29 = vpop.f32.mrb[37].mxu0  ;;  %7936 = vst [vmem:[#allocation15_spill] sm:$0xff] %v6828_v21 }
 0xbaf   :  { %5168 = vmatpush3.bf16.msra.mxu1 %v5744_v19  ;;  %5186 = vmatpush3.bf16.msra.mxu0 %v5745_v48  ;;  %v1813_v42 = vpop.f32.mrb[38].mxu0  ;;  %v5751_v19 = vld [vmem:[%s7887_s9 + $0x1e0] sm:$0xff]   ;;  %v6839_v48 = vrot.slane %v6702_v33, %v1302_v2  ;;  %v5754_v2 = vld [vmem:[%s7887_s9 + $0x178] sm:$0xff]  }
 0xbb0   :  { %v1814_v36 = vpop.f32.mrb[39].mxu0  ;;  %5169 = vmatprep.subr.bf16.mxu1 %v5746_v46  ;;  %5187 = vmatprep.subr.bf16.mxu0 %v5747_v1  ;;  %v5752_v46 = vld [vmem:[%s7887_s9 + $0x130] sm:$0xff]   ;;  %v5753_v1 = vld [vmem:[%s7887_s9 + $0x1a0] sm:$0xff]   ;;  %v1687_v42 = vadd.f32 %v6732_v18, %v6828_v21  ;;  %v7938_v21 = vsub.s32 6, %v6696_v59 }
 0xbb1   :  { %7937 = vst [vmem:[#allocation16_spill] sm:$0xff] %v6839_v48  ;;  %v1771_v36 = vadd.f32 %v6758_v53, %v6839_v48  ;;  %v7940_v48 = vsub.s32 3, %v6696_v59 }
 0xbb2   :  { %v1902_v60 = vmax.f32 %v1687_v42, 0.0  ;;  %v6870_v8 = vrot.slane %v6713_v62, %v7938_v21  ;;  %v5760_v62 = vld [vmem:[%s7887_s9 + $0x1b0] sm:$0xff]   ;;  %v5761_v21 = vld [vmem:[%s7887_s9 + $0x200] sm:$0xff]  }
 0xbb3   :  { %5170 = vmatpush3.bf16.msra.mxu1 %v5748_v50  ;;  %5188 = vmatpush3.bf16.msra.mxu0 %v5749_v28  ;;  %v5755_v50 = vld [vmem:[%s7887_s9 + $0x1e8] sm:$0xff]   ;;  %v6881_v42 = vrot.slane %v6702_v33, %v7940_v48  ;;  %v5762_v48 = vld [vmem:[%s7887_s9 + $0x1f8] sm:$0xff]  }
 0xbb4   :  { %5171 = vmatprep.subr.bf16.mxu1 %v5750_v31  ;;  %5189 = vmatprep.subr.bf16.mxu0 %v5751_v19  ;;  %v5756_v31 = vld [vmem:[%s7887_s9 + $0x138] sm:$0xff]   ;;  %v5757_v19 = vld [vmem:[%s7887_s9 + $0x1a8] sm:$0xff]   ;;  %7939 = vst [vmem:[#allocation17_spill] sm:$0xff] %v6870_v8 }
 0xbb5   :  { %v6855_v28 = vpop.f32.mrb[40].mxu0  ;;  %7941 = vst [vmem:[#allocation18_spill] sm:$0xff] %v6881_v42 }
 0xbb6   :  { %v6859_v41 = vpop.f32.mrb[41].mxu0 }
 0xbb7   :  { %5172 = vmatpush3.bf16.msra.mxu1 %v5752_v46  ;;  %5190 = vmatpush3.bf16.msra.mxu0 %v5753_v1  ;;  %v1895_v18 = vpop.f32.mrb[42].mxu0  ;;  %v5758_v46 = vld [vmem:[%s7887_s9 + $0x1f0] sm:$0xff]   ;;  %v5759_v1 = vld [vmem:[%s7887_s9 + $0x240] sm:$0xff]  }
 0xbb8   :  { %v1896_v53 = vpop.f32.mrb[43].mxu0  ;;  %5173 = vmatprep.subr.bf16.mxu1 %v5754_v2  ;;  %5191 = vmatprep.subr.bf16.mxu0 %v5755_v50  ;;  %v1907_v18 = vmax.f32 %v1771_v36, 0.0  ;;  %v1918_v2 = vpack.c.bf16 %v1902_v60, %v1902_v60  ;;  %v1728_v50 = vadd.f32 %v6785_v54, %v6870_v8  ;;  %v5763_v36 = vld [vmem:[%s7887_s9 + $0x248] sm:$0xff]   ;;  %v5764_v60 = vld [vmem:[%s7887_s9 + $0x1b8] sm:$0xff]  }
 0xbb9   :  { %v5765_v54 = vld [vmem:[%s7887_s9 + $0x208] sm:$0xff]  }
 0xbba   :  { %v1904_v53 = vmax.f32 %v1728_v50, 0.0  ;;  %v5771_v50 = vld [vmem:[%s7887_s9 + $0x2c8] sm:$0xff]  }
 0xbbb   :  { %5174 = vmatpush3.bf16.msra.mxu1 %v5756_v31  ;;  %5192 = vmatpush3.bf16.msra.mxu0 %v5757_v19  ;;  %v1923_v31 = vpack.c.bf16 %v1907_v18, %v1907_v18  ;;  %v1812_v19 = vadd.f32 %v1811_v29, %v6881_v42  ;;  %v5767_v29 = vld [vmem:[%s7887_s9 + $0x2c0] sm:$0xff]   ;;  %v5768_v18 = vld [vmem:[%s7887_s9 + $0x210] sm:$0xff]   ;;  %v7094_v42 = vld [vmem:[%s7878_s0 + $0xb] sm:$0x1] }
 0xbbc   :  { %5193 = vmatprep.subr.bf16.mxu0 %v5758_v46  ;;  %5203 = vmatprep.subr.bf16.mxu1 %v5759_v1  ;;  %v5766_v46 = vld [vmem:[%s7887_s9 + $0x250] sm:$0xff]   ;;  %v3155_v8 = vpack.c.bf16 %v7094_v42, %v7094_v42 }
 0xbbd   :  { %v1909_v1 = vmax.f32 %v1812_v19, 0.0  ;;  %v5774_v19 = vld [vmem:[%s7887_s9 + $0x260] sm:$0xff]  }
 0xbbe   :  { %2817 = vmatmul.mubr.bf16.vlgmr.msra.gmra.mrb[32].mxu1 %v1918_v2  ;;  %v5770_v2 = vld [vmem:[%s7887_s9 + $0x258] sm:$0xff]   ;;  %v3171_v55 = vunpack.c.l.b16 %v3155_v8 }
 0xbbf   :  { %5194 = vmatpush3.bf16.msra.mxu0 %v5760_v62  ;;  %5204 = vmatpush3.bf16.msra.mxu1 %v5761_v21  ;;  %v5769_v62 = vld [vmem:[%s7887_s9 + $0x280] sm:$0xff]   ;;  %v1920_v21 = vpack.c.bf16 %v1904_v53, %v1904_v53  ;;  %v5777_v53 = vld [vmem:[%s7887_s9 + $0x290] sm:$0xff]   ;;  %v5818_v8 = vld [vmem:[%s7887_s9 + $0x378] sm:$0xff]  }
 0xbc0   :  { %2896 = vmatprep.mubr.bf16.mxu1 %v1923_v31  ;;  %5195 = vmatprep.subr.bf16.mxu0 %v5762_v48  ;;  %v1925_v48 = vpack.c.bf16 %v1909_v1, %v1909_v1  ;;  %v5773_v31 = vld [vmem:[%s7887_s9 + $0x288] sm:$0xff]  }
 0xbc1   :  { %5205 = vmatprep.subr.bf16.mxu1 %v5763_v36  ;;  %v5772_v36 = vld [vmem:[%s7887_s9 + $0x218] sm:$0xff]   ;;  %v5780_v1 = vld [vmem:[%s7887_s9 + $0x228] sm:$0xff]  }
 0xbc3   :  { %5196 = vmatpush3.bf16.msra.mxu0 %v5764_v60  ;;  %5206 = vmatpush3.bf16.msra.mxu1 %v5765_v54  ;;  %v5775_v60 = vld [vmem:[%s7887_s9 + $0x2d0] sm:$0xff]   ;;  %v5776_v54 = vld [vmem:[%s7887_s9 + $0x220] sm:$0xff]  }
 0xbc4   :  { %5207 = vmatprep.subr.bf16.mxu1 %v5766_v46  ;;  %5225 = vmatprep.subr.bf16.mxu0 %v5767_v29  ;;  %v5778_v46 = vld [vmem:[%s7887_s9 + $0x268] sm:$0xff]   ;;  %v5779_v29 = vld [vmem:[%s7887_s9 + $0x2d8] sm:$0xff]  }
 0xbc6   :  { %2857 = vmatmul.mubr.bf16.vlgmr.msra.gmra.mrb[48].mxu0 %v1920_v21 }
 0xbc7   :  { %5208 = vmatpush3.bf16.msra.mxu1 %v5768_v18  ;;  %5226 = vmatpush3.bf16.msra.mxu0 %v5769_v62  ;;  %v5781_v18 = vld [vmem:[%s7887_s9 + $0x298] sm:$0xff]   ;;  %v7942_v62 = vsub.s32 0, %v6696_v59 }
 0xbc8   :  { %2936 = vmatprep.mubr.bf16.mxu0 %v1925_v48  ;;  %5209 = vmatprep.subr.bf16.mxu1 %v5770_v2  ;;  %v5782_v2 = vld [vmem:[%s7887_s9 + $0x270] sm:$0xff]   ;;  %v7944_v48 = vsub.s32 5, %v6696_v59 }
 0xbc9   :  { %5227 = vmatprep.subr.bf16.mxu0 %v5771_v50  ;;  %v6955_v21 = vrot.slane %v6702_v33, %v7942_v62  ;;  %v5783_v50 = vld [vmem:[%s7887_s9 + $0x2e0] sm:$0xff]  }
 0xbcb   :  { %5210 = vmatpush3.bf16.msra.mxu1 %v5772_v36  ;;  %5228 = vmatpush3.bf16.msra.mxu0 %v5773_v31  ;;  %7943 = vst [vmem:[#allocation19_spill] sm:$0xff] %v6955_v21  ;;  %v6966_v36 = vrot.slane %v6702_v33, %v7944_v48  ;;  %v5784_v31 = vld [vmem:[%s7887_s9 + $0x230] sm:$0xff]   ;;  %v7948_v48 = vsub.s32 7, %v6696_v59 }
 0xbcc   :  { %5211 = vmatprep.subr.bf16.mxu1 %v5774_v19  ;;  %5229 = vmatprep.subr.bf16.mxu0 %v5775_v60  ;;  %v5785_v19 = vld [vmem:[%s7887_s9 + $0x2a0] sm:$0xff]   ;;  %v1769_v60 = vadd.f32 %v6755_v43, %v6955_v21  ;;  %v5789_v43 = vld [vmem:[%s7887_s9 + $0x2a8] sm:$0xff]  }
 0xbcd   :  { %7945 = vst [vmem:[#allocation20_spill] sm:$0xff] %v6966_v36 }
 0xbcf   :  { %5212 = vmatpush3.bf16.msra.mxu1 %v5776_v54  ;;  %5230 = vmatpush3.bf16.msra.mxu0 %v5777_v53  ;;  %v5786_v54 = vld [vmem:[%s7887_s9 + $0x278] sm:$0xff]   ;;  %v5787_v53 = vld [vmem:[%s7887_s9 + $0x2e8] sm:$0xff]  }
 0xbd0   :  { %5213 = vmatprep.subr.bf16.mxu1 %v5778_v46  ;;  %5231 = vmatprep.subr.bf16.mxu0 %v5779_v29  ;;  %v1853_v46 = vadd.f32 %v6789_v58, %v6966_v36  ;;  %v5788_v29 = vld [vmem:[%s7887_s9 + $0x238] sm:$0xff]   ;;  %v5790_v58 = vld [vmem:[%s7887_s9 + $0x2f0] sm:$0xff]   ;;  %v7081_v36 = vld [vmem:[%s7878_s0 + $0x9] sm:$0x1] }
 0xbd3   :  { %5214 = vmatpush3.bf16.msra.mxu1 %v5780_v1  ;;  %5232 = vmatpush3.bf16.msra.mxu0 %v5781_v18  ;;  %v1906_v1 = vmax.f32 %v1769_v60, 0.0  ;;  %v7946_v18 = vsub.s32 2, %v6696_v59  ;;  %v5793_v60 = vld [vmem:[%s7887_s9 + $0x300] sm:$0xff]  }
 0xbd4   :  { %5215 = vmatprep.subr.bf16.mxu1 %v5782_v2  ;;  %5233 = vmatprep.subr.bf16.mxu0 %v5783_v50  ;;  %v5791_v2 = vld [vmem:[%s7887_s9 + $0x340] sm:$0xff]   ;;  %v1911_v50 = vmax.f32 %v1853_v46, 0.0  ;;  %v5794_v46 = vld [vmem:[%s7887_s9 + $0x2f8] sm:$0xff]  }
 0xbd5   :  { %v6993_v62 = vrot.slane %v6702_v33, %v7946_v18 }
 0xbd7   :  { %5216 = vmatpush3.bf16.msra.mxu1 %v5784_v31  ;;  %5234 = vmatpush3.bf16.msra.mxu0 %v5785_v19  ;;  %7947 = vst [vmem:[#allocation21_spill] sm:$0xff] %v6993_v62  ;;  %v7004_v31 = vrot.slane %v6702_v33, %v7948_v48  ;;  %v5792_v19 = vld [vmem:[%s7887_s9 + $0x2b0] sm:$0xff]   ;;  %v7042_v48 = vld [vmem:[%s7878_s0 + $0x5] sm:$0x1] }
 0xbd8   :  { %5217 = vmatprep.subr.bf16.mxu1 %v5786_v54  ;;  %5235 = vmatprep.subr.bf16.mxu0 %v5787_v53  ;;  %v1922_v54 = vpack.c.bf16 %v1906_v1, %v1906_v1  ;;  %v1810_v53 = vadd.f32 %v6817_v34, %v6993_v62  ;;  %v7025_v1 = vld [vmem:[%s7878_s0 + $0x3] sm:$0x1]  ;;  %v5796_v34 = vld [vmem:[%s7887_s9 + $0x2b8] sm:$0xff]   ;;  %v5805_v62 = vld [vmem:[%s7887_s9 + $0x388] sm:$0xff]  }
 0xbd9   :  { %7949 = vst [vmem:[#allocation22_spill] sm:$0xff] %v7004_v31  ;;  %v1894_v18 = vadd.f32 %v6859_v41, %v7004_v31  ;;  %v5798_v41 = vld [vmem:[%s7887_s9 + $0x350] sm:$0xff]   ;;  %v5804_v31 = vld [vmem:[%s7887_s9 + $0x318] sm:$0xff]  }
 0xbdb   :  { %5218 = vmatpush3.bf16.msra.mxu1 %v5788_v29  ;;  %5236 = vmatpush3.bf16.msra.mxu0 %v5789_v43  ;;  %v5795_v29 = vld [vmem:[%s7887_s9 + $0x348] sm:$0xff]   ;;  %v1927_v43 = vpack.c.bf16 %v1911_v50, %v1911_v50  ;;  %v5799_v50 = vld [vmem:[%s7887_s9 + $0x3c0] sm:$0xff]  }
 0xbdc   :  { %5237 = vmatprep.subr.bf16.mxu0 %v5790_v58  ;;  %5247 = vmatprep.subr.bf16.mxu1 %v5791_v2  ;;  %v5797_v58 = vld [vmem:[%s7887_s9 + $0x308] sm:$0xff]   ;;  %v1908_v2 = vmax.f32 %v1810_v53, 0.0  ;;  %v5800_v53 = vld [vmem:[%s7887_s9 + $0x310] sm:$0xff]  }
 0xbde   :  { %2897 = vmatmul.mubr.bf16.vlgmr.msra.gmra.mrb[36].mxu1 %v1922_v54  ;;  %v7049_v54 = vld [vmem:[%s7878_s0 + $0x1] sm:$0x1] }
 0xbdf   :  { %5238 = vmatpush3.bf16.msra.mxu0 %v5792_v19  ;;  %5248 = vmatpush3.bf16.msra.mxu1 %v5793_v60  ;;  %v3151_v19 = vpack.c.bf16 %v7025_v1, %v7025_v1  ;;  %v1913_v60 = vmax.f32 %v1894_v18, 0.0  ;;  %v7063_v18 = vld [vmem:[%s7878_s0 + $0x7] sm:$0x1] }
 0xbe0   :  { %2976 = vmatprep.mubr.bf16.mxu1 %v1927_v43  ;;  %5239 = vmatprep.subr.bf16.mxu0 %v5794_v46  ;;  %v5801_v46 = vld [vmem:[%s7887_s9 + $0x380] sm:$0xff]   ;;  %v5802_v43 = vld [vmem:[%s7887_s9 + $0x358] sm:$0xff]  }
 0xbe1   :  { %5249 = vmatprep.subr.bf16.mxu1 %v5795_v29  ;;  %v1924_v29 = vpack.c.bf16 %v1908_v2, %v1908_v2  ;;  %v3150_v2 = vpack.c.bf16 %v7049_v54, %v7049_v54 }
 0xbe3   :  { %5240 = vmatpush3.bf16.msra.mxu0 %v5796_v34  ;;  %5250 = vmatpush3.bf16.msra.mxu1 %v5797_v58  ;;  %v3152_v34 = vpack.c.bf16 %v7042_v48, %v7042_v48  ;;  %v5803_v58 = vld [vmem:[%s7887_s9 + $0x3c8] sm:$0xff]  }
 0xbe4   :  { %5251 = vmatprep.subr.bf16.mxu1 %v5798_v41  ;;  %5269 = vmatprep.subr.bf16.mxu0 %v5799_v50  ;;  %v3167_v41 = vunpack.c.l.b16 %v3151_v19  ;;  %v1929_v50 = vpack.c.bf16 %v1913_v60, %v1913_v60  ;;  %v3153_v19 = vpack.c.bf16 %v7063_v18, %v7063_v18  ;;  %v5806_v60 = vld [vmem:[%s7887_s9 + $0x360] sm:$0xff]  }
 0xbe6   :  { %2937 = vmatmul.mubr.bf16.vlgmr.msra.gmra.mrb[52].mxu0 %v1924_v29  ;;  %v3166_v29 = vunpack.c.l.b16 %v3150_v2  ;;  %v3174_v21 = vrot.slane %v3167_v41, 7  ;;  %v5810_v2 = vld [vmem:[%s7887_s9 + $0x368] sm:$0xff]  }
 0xbe7   :  { %5252 = vmatpush3.bf16.msra.mxu1 %v5800_v53  ;;  %5270 = vmatpush3.bf16.msra.mxu0 %v5801_v46  ;;  %v5807_v53 = vld [vmem:[%s7887_s9 + $0x3d0] sm:$0xff]   ;;  %v3168_v46 = vunpack.c.l.b16 %v3152_v34  ;;  %v7113_v41 = vld [vmem:[%s7878_s0 + $0xd] sm:$0x1] }
 0xbe8   :  { %3016 = vmatprep.mubr.bf16.mxu0 %v1929_v50  ;;  %5253 = vmatprep.subr.bf16.mxu1 %v5802_v43  ;;  %v3154_v43 = vpack.c.bf16 %v7081_v36, %v7081_v36  ;;  %v5808_v50 = vld [vmem:[%s7887_s9 + $0x320] sm:$0xff]   ;;  %v5809_v34 = vld [vmem:[%s7887_s9 + $0x390] sm:$0xff]  }
 0xbe9   :  { %5271 = vmatprep.subr.bf16.mxu0 %v5803_v58  ;;  %v3169_v58 = vunpack.c.l.b16 %v3153_v19  ;;  %v3175_v19 = vsel %vm386_vm1, %v3174_v21, %v3166_v29  ;;  %v5814_v21 = vld [vmem:[%s7887_s9 + $0x370] sm:$0xff]   ;;  %v5815_v29 = vld [vmem:[%s7887_s9 + $0x3e0] sm:$0xff]  }
 0xbeb   :  { %5254 = vmatpush3.bf16.msra.mxu1 %v5804_v31  ;;  %5272 = vmatpush3.bf16.msra.mxu0 %v5805_v62  ;;  %v5811_v31 = vld [vmem:[%s7887_s9 + $0x3d8] sm:$0xff]   ;;  %v3176_v62 = vrot.slane %v3168_v46, 6  ;;  %v3178_v35 = vrot.slane %v3169_v58, 5  ;;  %v5816_v58 = vld [vmem:[%s7887_s9 + $0x330] sm:$0xff]  }
 0xbec   :  { %5255 = vmatprep.subr.bf16.mxu1 %v5806_v60  ;;  %5273 = vmatprep.subr.bf16.mxu0 %v5807_v53  ;;  %v3170_v60 = vunpack.c.l.b16 %v3154_v43  ;;  %v5812_v53 = vld [vmem:[%s7887_s9 + $0x328] sm:$0xff]   ;;  %v5813_v46 = vld [vmem:[%s7887_s9 + $0x398] sm:$0xff]  }
 0xbed   :  { %v7138_v43 = vld [vmem:[%s7878_s0 + $0xf] sm:$0x1]  ;;  %v3177_v33 = vsel %vm389_vm2, %v3176_v62, %v3175_v19  ;;  %v1851_v62 = vadd.f32 %v6787_v49, %v7127_v17 }
 0xbee   :  { %v3179_v59 = vsel %vm392_vm3, %v3178_v35, %v3177_v33  ;;  %v5819_v19 = vld [vmem:[%s7887_s9 + $0x3e8] sm:$0xff]   ;;  %v5820_v35 = vld [vmem:[%s7887_s9 + $0x338] sm:$0xff]  }
 0xbef   :  { %5256 = vmatpush3.bf16.msra.mxu1 %v5808_v50  ;;  %5274 = vmatpush3.bf16.msra.mxu0 %v5809_v34  ;;  %v3156_v50 = vpack.c.bf16 %v7113_v41, %v7113_v41  ;;  %v3180_v34 = vrot.slane %v3170_v60, 4  ;;  %v5821_v49 = vld [vmem:[%s7887_s9 + $0x3a8] sm:$0xff]  }
 0xbf0   :  { %5257 = vmatprep.subr.bf16.mxu1 %v5810_v2  ;;  %5275 = vmatprep.subr.bf16.mxu0 %v5811_v31  ;;  %v5817_v2 = vld [vmem:[%s7887_s9 + $0x3a0] sm:$0xff]   ;;  %v3157_v31 = vpack.c.bf16 %v7138_v43, %v7138_v43 }
 0xbf1   :  { %v3172_v60 = vunpack.c.l.b16 %v3156_v50  ;;  %v5822_v50 = vld [vmem:[%s7887_s9 + $0x3f0] sm:$0xff]  }
 0xbf3   :  { %5258 = vmatpush3.bf16.msra.mxu1 %v5812_v53  ;;  %5276 = vmatpush3.bf16.msra.mxu0 %v5813_v46  ;;  %v3182_v53 = vrot.slane %v3171_v55, 3  ;;  %v3181_v46 = vsel %vm395_vm4, %v3180_v34, %v3179_v59  ;;  %v3184_v33 = vrot.slane %v3172_v60, 2  ;;  %v5823_v55 = vld [vmem:[%s7887_s9 + $0x3b0] sm:$0xff]  }
 0xbf4   :  { %5259 = vmatprep.subr.bf16.mxu1 %v5814_v21  ;;  %5277 = vmatprep.subr.bf16.mxu0 %v5815_v29  ;;  %v3173_v21 = vunpack.c.l.b16 %v3157_v31  ;;  %v1910_v29 = vmax.f32 %v1851_v62, 0.0  ;;  %v7952_v31 = vmov 0.0   ;;  %v5824_v62 = vld [vmem:[%s7887_s9 + $0x3f8] sm:$0xff]  }
 0xbf5   :  { %v3183_v59 = vsel %vm398_vm5, %v3182_v53, %v3181_v46 }
 0xbf6   :  { %v3186_v34 = vrot.slane %v3173_v21, 1 }
 0xbf7   :  { %5260 = vmatpush3.bf16.msra.mxu1 %v5816_v58  ;;  %5278 = vmatpush3.bf16.msra.mxu0 %v5817_v2  ;;  %v1926_v58 = vpack.c.bf16 %v1910_v29, %v1910_v29  ;;  %v1892_v2 = vadd.f32 %v6855_v28, %v6707_v61  ;;  %v5825_v28 = vld [vmem:[%s7887_s9 + $0x3b8] sm:$0xff]  }
 0xbf8   :  { %5261 = vmatprep.subr.bf16.mxu1 %v5818_v8  ;;  %5279 = vmatprep.subr.bf16.mxu0 %v5819_v19  ;;  %v3185_v8 = vsel %vm401_vm6, %v3184_v33, %v3183_v59  ;;  %v5874_v19 = vld [vmem:[%s7879_s1] sm:$0xff]  }
 0xbf9   :  { %v3187_v60 = vsel %vm404_vm7, %v3186_v34, %v3185_v8  ;;  %v1912_v53 = vmax.f32 %v1892_v2, 0.0 }
 0xbfa   :  { %v3188_v46 = vpack.c.b16 %v3187_v60, %v3187_v60 }
 0xbfb   :  { %5262 = vmatpush3.bf16.msra.mxu1 %v5820_v35  ;;  %5280 = vmatpush3.bf16.msra.mxu0 %v5821_v49  ;;  %v5875_v35 = vld [vmem:[%s7879_s1 + $0x8] sm:$0xff]   ;;  %v1928_v49 = vpack.c.bf16 %v1912_v53, %v1912_v53 }
 0xbfc   :  { %5281 = vmatprep.subr.bf16.mxu0 %v5822_v50  ;;  %5574 = vmatprep.subr.bf16.mxu1 %v7952_v31 }
 0xbfe   :  { %2977 = vmatmul.mubr.bf16.vlgmr.msra.gmra.mrb[40].mxu1 %v1926_v58 }
 0xbff   :  { %5282 = vmatpush3.bf16.msra.mxu0 %v5823_v55  ;;  %5575 = vmatpush3.bf16.msra.mxu1 %v5874_v19  ;;  %v4936_v55 = vld [vmem:[%s7888_s10] ss:$0 sm:$0xff] }
 0xc00   :  { %5283 = vmatprep.subr.bf16.mxu0 %v5824_v62  ;;  %5576 = vmatprep.subr.bf16.mxu1 %v7952_v31 }
 0xc01   :  { %5578 = vmatprep.mubr.msk.bf16.mxu1 %vm6034_vm0, %v7952_v31 }
 0xc03   :  { %5284 = vmatpush3.bf16.msra.mxu0 %v5825_v28  ;;  %5577 = vmatpush3.bf16.msra.mxu1 %v5875_v35 }
 0xc04   :  { %5582 = vmatprep.subr.bf16.mxu0 %v7952_v31  ;;  %5588 = vmatprep.subr.bf16.mxu1 %v7952_v31 }
 0xc06   :  { %3017 = vmatmul.mubr.bf16.vlgmr.msra.gmra.mrb[56].mxu0 %v1928_v49  ;;  %5579 = vmatmul.mubr.msk.bf16.vlgmr.msra.gmra.mrb[44].mxu1 %vm419_vm8, %v3188_v46 }
 0xc07   :  { %5584 = vmatprep.mubr.msk.bf16.mxu0 %vm6034_vm0, %v7952_v31  ;;  %5590 = vmatprep.mubr.msk.bf16.mxu1 %vm6034_vm0, %v7952_v31 }
 0xc71   :  { %v5131_v21 = vpop.f32.mrb[28].mxu1 }
 0xc72   :  { %v5132_v29 = vpop.f32.mrb[29].mxu1 }
 0xc73   :  { %v5133_v50 = vadd.f32 %v5132_v29, %v5131_v21  ;;  %v5134_v33 = vpop.f32.mrb[30].mxu1 }
 0xc74   :  { %v5135_v59 = vpop.f32.mrb[31].mxu1 }
 0xc75   :  { %v2739_v2 = vadd.f32 %v5133_v50, %v4936_v55 }
 0xc79   :  { %v5153_v34 = vpop.f32.mrb[44].mxu0 }
 0xc7a   :  { %v5154_v58 = vpop.f32.mrb[45].mxu0 }
 0xc7b   :  { %v5155_v62 = vadd.f32 %v5154_v58, %v5153_v34  ;;  %v5156_v8 = vpop.f32.mrb[46].mxu0 }
 0xc7c   :  { %v5157_v19 = vpop.f32.mrb[47].mxu0 }
 0xc7d   :  { %v2779_v28 = vadd.f32 %v5155_v62, %v2739_v2 }
 0xc91   :  { %v5175_v60 = vpop.f32.mrb[32].mxu1 }
 0xc92   :  { %v5176_v53 = vpop.f32.mrb[33].mxu1 }
 0xc93   :  { %v5177_v46 = vadd.f32 %v5176_v53, %v5175_v60  ;;  %v5178_v35 = vpop.f32.mrb[34].mxu1 }
 0xc94   :  { %v5179_v49 = vpop.f32.mrb[35].mxu1 }
 0xc95   :  { %v2819_v61 = vadd.f32 %v5177_v46, %v2779_v28 }
 0xc99   :  { %v5197_v21 = vpop.f32.mrb[48].mxu0 }
 0xc9a   :  { %v5198_v29 = vpop.f32.mrb[49].mxu0 }
 0xc9b   :  { %v5199_v33 = vadd.f32 %v5198_v29, %v5197_v21  ;;  %v5200_v59 = vpop.f32.mrb[50].mxu0 }
 0xc9c   :  { %v5201_v17 = vpop.f32.mrb[51].mxu0 }
 0xc9d   :  { %v2859_v5 = vadd.f32 %v5199_v33, %v2819_v61 }
 0xcb1   :  { %v5219_v38 = vpop.f32.mrb[36].mxu1 }
 0xcb2   :  { %v5220_v32 = vpop.f32.mrb[37].mxu1 }
 0xcb3   :  { %v5221_v57 = vadd.f32 %v5220_v32, %v5219_v38  ;;  %v5222_v50 = vpop.f32.mrb[38].mxu1  ;;  %v5876_v32 = vld [vmem:[%s7880_s2] ss:$0 sm:$0xff] }
 0xcb4   :  { %v5223_v55 = vpop.f32.mrb[39].mxu1 }
 0xcb5   :  { %v2899_v34 = vadd.f32 %v5221_v57, %v2859_v5 }
 0xcb9   :  { %v5241_v58 = vpop.f32.mrb[52].mxu0 }
 0xcba   :  { %v5242_v2 = vpop.f32.mrb[53].mxu0 }
 0xcbb   :  { %v5243_v62 = vadd.f32 %v5242_v2, %v5241_v58  ;;  %v5244_v8 = vpop.f32.mrb[54].mxu0 }
 0xcbc   :  { %v5245_v19 = vpop.f32.mrb[55].mxu0 }
 0xcbd   :  { %v2939_v60 = vadd.f32 %v5243_v62, %v2899_v34 }
 0xcd1   :  { %v5263_v53 = vpop.f32.mrb[40].mxu1 }
 0xcd2   :  { %v5264_v28 = vpop.f32.mrb[41].mxu1 }
 0xcd3   :  { %v5265_v46 = vadd.f32 %v5264_v28, %v5263_v53  ;;  %v5266_v35 = vpop.f32.mrb[42].mxu1 }
 0xcd4   :  { %v5267_v49 = vpop.f32.mrb[43].mxu1 }
 0xcd5   :  { %v2979_v21 = vadd.f32 %v5265_v46, %v2939_v60 }
 0xcd9   :  { %v5285_v17 = vpop.f32.mrb[56].mxu0  ;;  %v3226_v61 = vpop.f32.mrb[44].mxu1 }
 0xcda   :  { %v3227_v38 = vadd.f32 %v5876_v32, %v3226_v61  ;;  %v5286_v57 = vpop.f32.mrb[57].mxu0  ;;  %v5580_v5 = vpop.f32.mrb[45].mxu1 }
 0xcdb   :  { %v5287_v29 = vadd.f32 %v5286_v57, %v5285_v17  ;;  %v5288_v33 = vpop.f32.mrb[58].mxu0  ;;  %v3229_v59 = vpop.f32.mrb[46].mxu1 }
 0xcdc   :  { %v7207_v50 = vpack.c.bf16 %v3227_v38, %v3227_v38  ;;  %v5289_v55 = vpop.f32.mrb[59].mxu0  ;;  %v5581_v34 = vpop.f32.mrb[47].mxu1 }
 0xcdd   :  { %v3019_v58 = vadd.f32 %v5287_v29, %v2979_v21 }
 0xcde   :  { %3348 = vrot.lane.b32.xlu0 %v7207_v50, %s6037_s15  ;;  %3234 = vrot.lane.b32.xlu1 %v7207_v50, %s6036_s14 }
 0xcdf   :  { %v7214_v2 = vadd.f32 %v6467_v63, %v3019_v58 }
 0xce2   :  { %3346 = vrot.lane.b32.xlu0 %v7207_v50, %s6035_s30 }
 0xd50   :  { %v3235_v62 = vpop.permute.xlu1 %3234  ;;  %v3349_v19 = vpop.permute.xlu0 %3348 }
 0xd51   :  { %v3240_v8 = vsel %vm467_vm9, %v3235_v62, 0  ;;  %v3354_v60 = vsel %vm467_vm9, %v3349_v19, 0 }
 0xd52   :  { %5583 = vmatpush3.bf16.xpose.msra.mxu0 %v3240_v8 }
 0xd53   :  { %5594 = vmatprep.subr.bf16.mxu0 %v7952_v31 }
 0xd54   :  { %v3347_v63 = vpop.permute.xlu0 %3346 }
 0xd59   :  { %5585 = vmatmul.mubr.msk.bf16.vlgmr.msra.gmra.mrb[60].mxu0 %vm467_vm9, %v7207_v50 }
 0xd5a   :  { %5595 = vmatpush3.bf16.xpose.msra.mxu0 %v3354_v60  ;;  %5596 = vmatprep.mubr.msk.bf16.mxu0 %vm6034_vm0, %v7952_v31 }
 0xd5b   :  { %5606 = vmatprep.subr.bf16.mxu0 %v7952_v31 }
 0xd61   :  { %5597 = vmatmul.mubr.msk.bf16.vlgmr.msra.gmra.mrb[64].mxu0 %vm467_vm9, %v3347_v63 }
 0xd62   :  { %5608 = vmatprep.mubr.msk.bf16.mxu0 %vm6034_vm0, %v7952_v31 }
 0xe2c   :  { %v3276_v53 = vpop.f32.mrb[60].mxu0 }
 0xe2d   :  { %v3282_v28 = vmul.f32 0.35355338, %v3276_v53  ;;  %v5586_v46 = vpop.f32.mrb[61].mxu0 }
 0xe2e   :  { %v3279_v35 = vpop.f32.mrb[62].mxu0 }
 0xe2f   :  { %v5587_v49 = vpop.f32.mrb[63].mxu0  ;;  %v3283_v21 = vsel %vm467_vm9, %v3282_v28, -inf }
 0xe30   :  { %3284 = vmax.xlane.f32.xlu0 %v3283_v21 }
 0xe34   :  { %v3390_v17 = vpop.f32.mrb[64].mxu0 }
 0xe35   :  { %v3396_v61 = vmul.f32 0.35355338, %v3390_v17  ;;  %v5598_v32 = vpop.f32.mrb[65].mxu0 }
 0xe36   :  { %v3393_v38 = vpop.f32.mrb[66].mxu0 }
 0xe37   :  { %v5599_v57 = vpop.f32.mrb[67].mxu0  ;;  %v3397_v5 = vsel %vm467_vm9, %v3396_v61, -inf }
 0xe38   :  { %3398 = vmax.xlane.f32.xlu1 %v3397_v5 }
 0xe49   :  { %3295 = vrot.lane.b32.xlu1 %v7207_v50, %s6039_s17  ;;  %s7954_s17 = smov 104  }
 0xe4d   :  { %3554 = vrot.lane.b32.xlu1 %v7207_v50, %s6040_s18  ;;  %s7955_s18 = smov 72  }
 0xe51   :  { %3552 = vrot.lane.b32.xlu1 %v7207_v50, %s6041_s19 }
 0xebd   :  { %v3285_v29 = vpop.xlane.xlu0 %3284 }
 0xebe   :  { %v3286_v33 = vsub.f32 %v3282_v28, %v3285_v29 }
 0xec0   :  { %v3287_v59 = vmul.f32 1.442695, %v3286_v33 }
 0xec2   :  { %5844 = vpow2.f32 %v3287_v59  ;;  %v3457_v59 = vld [vmem:[%s7881_s3 + $0x8] sm:$0xff] }
 0xec5   :  { %v3399_v55 = vpop.xlane.xlu1 %3398 }
 0xec6   :  { %v3400_v34 = vsub.f32 %v3396_v61, %v3399_v55  ;;  %v3458_v55 = vpack.c.bf16 %v3457_v59, %v3457_v59 }
 0xec8   :  { %v3401_v58 = vmul.f32 1.442695, %v3400_v34  ;;  %v3464_v34 = vsel %vm532_vm10, %v3458_v55, 0 }
 0xec9   :  { %v3296_v62 = vpop.permute.xlu1 %3295  ;;  %5607 = vmatpush3.bf16.msra.mxu0 %v3464_v34 }
 0xeca   :  { %5846 = vpow2.f32 %v3401_v58  ;;  %v3301_v8 = vsel %vm532_vm10, %v3296_v62, 0  ;;  %5612 = vmatprep.subr.bf16.mxu0 %v7952_v31 }
 0xecb   :  { %5589 = vmatpush3.bf16.msra.mxu1 %v3301_v8 }
 0xecc   :  { %v5845_v19 = vpop.eup %5844  ;;  %5600 = vmatprep.subr.bf16.mxu1 %v7952_v31 }
 0xecd   :  { %v3289_v60 = vsel %vm467_vm9, %v5845_v19, 0.0  ;;  %v3555_v57 = vpop.permute.xlu1 %3554 }
 0xece   :  { %3290 = vadd.xlane.f32.xlu0 %v3289_v60  ;;  %v3560_v29 = vsel %vm467_vm9, %v3555_v57, 0 }
 0xed1   :  { %v3553_v33 = vpop.permute.xlu1 %3552 }
 0xed4   :  { %v5847_v63 = vpop.eup %5846 }
 0xed5   :  { %v3403_v53 = vsel %vm467_vm9, %v5847_v63, 0.0 }
 0xed6   :  { %3404 = vadd.xlane.f32.xlu0 %v3403_v53 }
 0xeec   :  { %3409 = vrot.lane.b32.xlu0 %v7207_v50, %s6038_s16  ;;  %s7953_s16 = smov 48  }
 0xf5b   :  { %v3291_v28 = vpop.xlane.xlu0 %3290 }
 0xf5c   :  { %5848 = vrcp.f32 %v3291_v28 }
 0xf63   :  { %v3405_v46 = vpop.xlane.xlu0 %3404 }
 0xf64   :  { %5850 = vrcp.f32 %v3405_v46 }
 0xf66   :  { %v5849_v35 = vpop.eup %5848 }
 0xf67   :  { %v3293_v49 = vmul.f32 %v5849_v35, %v5845_v19  ;;  %v3410_v21 = vpop.permute.xlu0 %3409  ;;  %v3343_v19 = vld [vmem:[%s7881_s3] sm:$0xff] }
 0xf68   :  { %v3415_v61 = vsel %vm532_vm10, %v3410_v21, 0 }
 0xf69   :  { %v3294_v17 = vpack.c.bf16 %v3293_v49, %v3293_v49 }
 0xf6b   :  { %5591 = vmatmul.mubr.msk.bf16.vlgmr.msra.gmra.mrb[48].mxu1 %vm467_vm9, %v3294_v17 }
 0xf6c   :  { %5601 = vmatpush3.bf16.msra.mxu1 %v3415_v61  ;;  %5602 = vmatprep.mubr.msk.bf16.mxu1 %vm6034_vm0, %v7952_v31 }
 0xf6d   :  { %5618 = vmatprep.subr.bf16.mxu1 %v7952_v31 }
 0xf6e   :  { %v5851_v32 = vpop.eup %5850 }
 0xf6f   :  { %v3407_v38 = vmul.f32 %v5851_v32, %v5847_v63  ;;  %v3344_v63 = vpack.c.bf16 %v3343_v19, %v3343_v19 }
 0xf71   :  { %v3408_v5 = vpack.c.bf16 %v3407_v38, %v3407_v38  ;;  %v3510_v35 = vsel %vm532_vm10, %v3344_v63, 0 }
 0xf73   :  { %5603 = vmatmul.mubr.msk.bf16.vlgmr.msra.gmra.mrb[52].mxu1 %vm467_vm9, %v3408_v5 }
 0xf74   :  { %5620 = vmatprep.mubr.msk.bf16.mxu1 %vm6034_vm0, %v7952_v31 }
 0xf75   :  { %5619 = vmatpush3.bf16.xpose.msra.mxu1 %v3560_v29 }
 0xf76   :  { %5624 = vmatprep.subr.bf16.mxu1 %v7952_v31 }
 0xf7c   :  { %5621 = vmatmul.mubr.msk.bf16.vlgmr.msra.gmra.mrb[56].mxu1 %vm467_vm9, %v3553_v33 }
 0xf7d   :  { %5626 = vmatprep.mubr.msk.bf16.mxu1 %vm6034_vm0, %v7952_v31 }
0x103e   :  { %v3337_v58 = vpop.f32.mrb[48].mxu1 }
0x103f   :  { %v5592_v62 = vpop.f32.mrb[49].mxu1  ;;  %v3345_v29 = vpack.c.bf16 %v3337_v58, %v3337_v58 }
0x1040   :  { %v3340_v8 = vpop.f32.mrb[50].mxu1 }
0x1041   :  { %v5593_v60 = vpop.f32.mrb[51].mxu1 }
0x1046   :  { %v3451_v53 = vpop.f32.mrb[52].mxu1 }
0x1047   :  { %v3459_v28 = vpack.c.bf16 %v3451_v53, %v3451_v53  ;;  %v5604_v46 = vpop.f32.mrb[53].mxu1 }
0x1048   :  { %v3454_v49 = vpop.f32.mrb[54].mxu1 }
0x1049   :  { %v5605_v21 = vpop.f32.mrb[55].mxu1  ;;  %5609 = vmatmul.mubr.msk.bf16.vlgmr.msra.gmra.mrb[68].mxu0 %vm467_vm9, %v3459_v28  ;;  %v7956_v49 = vmov 0  }
0x104a   :  { %5613 = vmatpush3.bf16.msra.mxu0 %v3510_v35  ;;  %5614 = vmatprep.mubr.msk.bf16.mxu0 %vm6034_vm0, %v7952_v31  ;;  %v3663_v21 = vld [vmem:[%s7881_s3 + $0x10] sm:$0xff] }
0x104b   :  { %5630 = vmatprep.subr.bf16.mxu0 %v7952_v31 }
0x104f   :  { %v3596_v17 = vpop.f32.mrb[56].mxu1 }
0x1050   :  { %v3602_v61 = vmul.f32 0.35355338, %v3596_v17  ;;  %v5622_v32 = vpop.f32.mrb[57].mxu1  ;;  %v3664_v17 = vpack.c.bf16 %v3663_v21, %v3663_v21 }
0x1051   :  { %v3599_v38 = vpop.f32.mrb[58].mxu1 }
0x1052   :  { %v5623_v57 = vpop.f32.mrb[59].mxu1  ;;  %v3603_v5 = vsel %vm467_vm9, %v3602_v61, -inf }
0x1053   :  { %3604 = vmax.xlane.f32.xlu0 %v3603_v5 }
0x1055   :  { %5615 = vmatmul.mubr.msk.bf16.vlgmr.msra.gmra.mrb[68].mxu0 %vm467_vm9, %v3345_v29 }
0x1056   :  { %5632 = vmatprep.mubr.msk.bf16.mxu0 %vm6034_vm0, %v7952_v31 }
0x1069   :  { %3615 = vrot.lane.b32.xlu0 %v7207_v50, %s7953_s16 }
0x106d   :  { %3713 = vrot.lane.b32.xlu0 %v7207_v50, %s7954_s17 }
0x10e0   :  { %v3605_v33 = vpop.xlane.xlu0 %3604 }
0x10e1   :  { %v3606_v59 = vsub.f32 %v3602_v61, %v3605_v33 }
0x10e3   :  { %v3607_v55 = vmul.f32 1.442695, %v3606_v59 }
0x10e4   :  { %v3616_v34 = vpop.permute.xlu0 %3615 }
0x10e5   :  { %5852 = vpow2.f32 %v3607_v55  ;;  %v3621_v62 = vsel %vm532_vm10, %v3616_v34, 0 }
0x10e6   :  { %5625 = vmatpush3.bf16.msra.mxu1 %v3621_v62 }
0x10e7   :  { %5636 = vmatprep.subr.bf16.mxu1 %v7952_v31 }
0x10e8   :  { %v3714_v35 = vpop.permute.xlu0 %3713 }
0x10ef   :  { %v5853_v58 = vpop.eup %5852 }
0x10f0   :  { %v3609_v8 = vsel %vm467_vm9, %v5853_v58, 0.0 }
0x10f1   :  { %3610 = vadd.xlane.f32.xlu1 %v3609_v8 }
0x1102   :  { %3715 = vrot.lane.b32.xlu1 %v7207_v50, %s7955_s18 }
0x117e   :  { %v3611_v19 = vpop.xlane.xlu1 %3610 }
0x117f   :  { %5854 = vrcp.f32 %v3611_v19 }
0x1182   :  { %v3716_v53 = vpop.permute.xlu1 %3715 }
0x1183   :  { %v3721_v46 = vsel %vm467_vm9, %v3716_v53, 0 }
0x1189   :  { %v5855_v60 = vpop.eup %5854 }
0x118a   :  { %v3613_v63 = vmul.f32 %v5855_v60, %v5853_v58 }
0x118c   :  { %v3614_v28 = vpack.c.bf16 %v3613_v63, %v3613_v63  ;;  %v3824_v63 = vld [vmem:[%s7881_s3 + $0x18] sm:$0xff] }
0x118d   :  { %v3825_v53 = vpack.c.bf16 %v3824_v63, %v3824_v63 }
0x118e   :  { %5627 = vmatmul.mubr.msk.bf16.vlgmr.msra.gmra.mrb[60].mxu1 %vm467_vm9, %v3614_v28 }
0x118f   :  { %5637 = vmatpush3.bf16.xpose.msra.mxu1 %v3721_v46  ;;  %5638 = vmatprep.mubr.msk.bf16.mxu1 %vm6034_vm0, %v7952_v31  ;;  %v3831_v21 = vsel %vm532_vm10, %v3825_v53, 0 }
0x1190   :  { %4076 = vmatprep.subr.bf16.mxu1 %v6357_v4  ;;  %v3670_v4 = vsel %vm532_vm10, %v3664_v17, 0 }
0x1191   :  { %5631 = vmatpush3.bf16.msra.mxu0 %v3670_v4 }
0x1192   :  { %5642 = vmatprep.subr.bf16.mxu0 %v7952_v31 }
0x1196   :  { %5639 = vmatmul.mubr.msk.bf16.vlgmr.msra.gmra.mrb[64].mxu1 %vm467_vm9, %v3714_v35 }
0x1197   :  { %4077 = vmatpush1.bf16.msra.mxu1 %v6355_v3  ;;  %4108 = vmatprep.mubr.bf16.mxu1 %v7956_v49 }
0x1198   :  { %4078 = vmatprep.subr.bf16.mxu1 %v6374_v11 }
0x119b   :  { %4079 = vmatpush1.bf16.msra.mxu1 %v6387_v15 }
0x119c   :  { %4117 = vmatprep.subr.bf16.mxu1 %v6405_v20 }
0x1261   :  { %v3657_v61 = vpop.f32.mrb[60].mxu1 }
0x1262   :  { %v3665_v3 = vpack.c.bf16 %v3657_v61, %v3657_v61  ;;  %v5628_v32 = vpop.f32.mrb[61].mxu1 }
0x1263   :  { %v3660_v38 = vpop.f32.mrb[62].mxu1 }
0x1264   :  { %v5629_v57 = vpop.f32.mrb[63].mxu1  ;;  %5633 = vmatmul.mubr.msk.bf16.vlgmr.msra.gmra.mrb[68].mxu0 %vm467_vm9, %v3665_v3 }
0x1265   :  { %5644 = vmatprep.mubr.msk.bf16.mxu0 %vm6034_vm0, %v7952_v31 }
0x1269   :  { %v3757_v11 = vpop.f32.mrb[64].mxu1 }
0x126a   :  { %v3763_v15 = vmul.f32 0.35355338, %v3757_v11  ;;  %v5640_v20 = vpop.f32.mrb[65].mxu1 }
0x126b   :  { %v3760_v5 = vpop.f32.mrb[66].mxu1 }
0x126c   :  { %v5641_v29 = vpop.f32.mrb[67].mxu1  ;;  %v3764_v33 = vsel %vm467_vm9, %v3763_v15, -inf }
0x126d   :  { %3765 = vmax.xlane.f32.xlu1 %v3764_v33 }
0x12fa   :  { %v3766_v59 = vpop.xlane.xlu1 %3765 }
0x12fb   :  { %v3767_v55 = vsub.f32 %v3763_v15, %v3766_v59 }
0x12fd   :  { %v3768_v34 = vmul.f32 1.442695, %v3767_v55 }
0x12ff   :  { %5856 = vpow2.f32 %v3768_v34 }
0x1309   :  { %v5857_v62 = vpop.eup %5856 }
0x130a   :  { %v3770_v58 = vsel %vm467_vm9, %v5857_v62, 0.0 }
0x130b   :  { %3771 = vadd.xlane.f32.xlu0 %v3770_v58  ;;  %v5877_v58 = vld [vmem:[%s7882_s4] ss:$0 sm:$0xff] }
0x1321   :  { %3776 = vrot.lane.b32.xlu0 %v7207_v50, %s7957_s29 }
0x1398   :  { %v3772_v8 = vpop.xlane.xlu0 %3771 }
0x1399   :  { %5858 = vrcp.f32 %v3772_v8 }
0x139c   :  { %v3777_v19 = vpop.permute.xlu0 %3776 }
0x139d   :  { %v3782_v60 = vsel %vm532_vm10, %v3777_v19, 0 }
0x139e   :  { %5643 = vmatpush3.bf16.msra.mxu0 %v3782_v60 }
0x139f   :  { %5648 = vmatprep.subr.bf16.mxu0 %v7952_v31 }
0x13a3   :  { %v5859_v28 = vpop.eup %5858 }
0x13a4   :  { %v3774_v46 = vmul.f32 %v5859_v28, %v5857_v62 }
0x13a6   :  { %v3775_v35 = vpack.c.bf16 %v3774_v46, %v3774_v46 }
0x13a8   :  { %5645 = vmatmul.mubr.msk.bf16.vlgmr.msra.gmra.mrb[72].mxu0 %vm467_vm9, %v3775_v35 }
0x13a9   :  { %5649 = vmatpush3.bf16.msra.mxu0 %v3831_v21  ;;  %5650 = vmatprep.mubr.msk.bf16.mxu0 %vm6034_vm0, %v7952_v31 }
0x13aa   :  { %4158 = vmatprep.subr.bf16.mxu0 %v6372_v10 }
0x147b   :  { %v3818_v50 = vpop.f32.mrb[72].mxu0 }
0x147c   :  { %v3826_v17 = vpack.c.bf16 %v3818_v50, %v3818_v50  ;;  %v5646_v4 = vpop.f32.mrb[73].mxu0 }
0x147d   :  { %v3821_v61 = vpop.f32.mrb[74].mxu0 }
0x147e   :  { %v5647_v3 = vpop.f32.mrb[75].mxu0  ;;  %5651 = vmatmul.mubr.msk.bf16.vlgmr.msra.gmra.mrb[68].mxu0 %vm467_vm9, %v3826_v17 }
0x147f   :  { %4159 = vmatpush1.bf16.msra.mxu0 %v6370_v9  ;;  %4190 = vmatprep.mubr.bf16.mxu0 %v7956_v49 }
0x1480   :  { %4160 = vmatprep.subr.bf16.mxu0 %v6383_v14 }
0x1483   :  { %4161 = vmatpush1.bf16.msra.mxu0 %v6391_v16 }
0x1484   :  { %4240 = vmatprep.subr.bf16.mxu0 %v6414_v47 }
0x1551   :  { %v3867_v31 = vpop.f32.mrb[68].mxu0 }
0x1552   :  { %v3875_v32 = vrot.slane %v3867_v31, 1  ;;  %v3876_v10 = vrot.slane %v3867_v31, 2  ;;  %v3877_v38 = vrot.slane %v3867_v31, 3  ;;  %v5652_v57 = vpop.f32.mrb[69].mxu0  ;;  %v3878_v15 = vrot.slane %v3867_v31, 4 }
0x1553   :  { %v3870_v11 = vpop.f32.mrb[70].mxu0  ;;  %v3879_v20 = vrot.slane %v3867_v31, 5  ;;  %v3880_v5 = vrot.slane %v3867_v31, 6  ;;  %v3881_v29 = vrot.slane %v3867_v31, 7  ;;  %v3890_v9 = vadd.f32 %v3867_v31, %v7049_v54 }
0x1554   :  { %v3891_v33 = vadd.f32 %v3875_v32, %v7025_v1  ;;  %v5653_v59 = vpop.f32.mrb[71].mxu0  ;;  %v3892_v14 = vadd.f32 %v3876_v10, %v7042_v48  ;;  %v3893_v16 = vadd.f32 %v3877_v38, %v7063_v18  ;;  %v3894_v47 = vadd.f32 %v3878_v15, %v7081_v36 }
0x1555   :  { %v3895_v55 = vadd.f32 %v3879_v20, %v7094_v42  ;;  %v3896_v34 = vadd.f32 %v3880_v5, %v7113_v41  ;;  %v3897_v62 = vadd.f32 %v3881_v29, %v7138_v43  ;;  %v3898_v60 = vadd.f32 %v5877_v58, %v3890_v9 }
0x1556   :  { %v3899_v54 = vadd.f32 %v5877_v58, %v3891_v33  ;;  %v3900_v8 = vadd.f32 %v5877_v58, %v3892_v14  ;;  %v3901_v1 = vadd.f32 %v5877_v58, %v3893_v16  ;;  %v3902_v19 = vadd.f32 %v5877_v58, %v3894_v47 }
0x1557   :  { %v3903_v48 = vadd.f32 %v5877_v58, %v3895_v55  ;;  %v3904_v53 = vadd.f32 %v5877_v58, %v3896_v34  ;;  %v3905_v36 = vadd.f32 %v5877_v58, %v3897_v62 }
0x1558   :  { %v3914_v63 = vrot.slane %v3899_v54, 7  ;;  %v3916_v18 = vrot.slane %v3900_v8, 6  ;;  %v3918_v28 = vrot.slane %v3901_v1, 5  ;;  %v3920_v43 = vrot.slane %v3902_v19, 4 }
0x1559   :  { %v3922_v35 = vrot.slane %v3903_v48, 3  ;;  %v3924_v50 = vrot.slane %v3904_v53, 2  ;;  %v3926_v4 = vrot.slane %v3905_v36, 1 }
0x155a   :  { %v3915_v42 = vsel %vm386_vm1, %v3914_v63, %v3898_v60 }
0x155b   :  { %v3917_v41 = vsel %vm389_vm2, %v3916_v18, %v3915_v42 }
0x155c   :  { %v3919_v46 = vsel %vm392_vm3, %v3918_v28, %v3917_v41 }
0x155d   :  { %v3921_v21 = vsel %vm395_vm4, %v3920_v43, %v3919_v46 }
0x155e   :  { %v3923_v17 = vsel %vm398_vm5, %v3922_v35, %v3921_v21 }
0x155f   :  { %v3925_v61 = vsel %vm401_vm6, %v3924_v50, %v3923_v17 }
0x1560   :  { %v3927_v3 = vsel %vm404_vm7, %v3926_v4, %v3925_v61 }
0x1561   :  { %v3929_v31 = vsel %vm419_vm8, %v3927_v3, 0.0  ;;  %v3048_v3 = vsel %vm419_vm8, %v7214_v2, 0.0 }
0x1562   :  { %3930 = vadd.xlane.f32.xlu1 %v3929_v31 }
0x15ef   :  { %v3931_v32 = vpop.xlane.xlu1 %3930 }
0x15f0   :  { %v3932_v10 = vmul.f32 0.03125, %v3931_v32 }
0x15f2   :  { %v3934_v38 = vrot.slane %v3932_v10, 1  ;;  %v3935_v57 = vrot.slane %v3932_v10, 2  ;;  %v3936_v11 = vrot.slane %v3932_v10, 3  ;;  %v3937_v15 = vrot.slane %v3932_v10, 4 }
0x15f3   :  { %v3938_v20 = vrot.slane %v3932_v10, 5  ;;  %v3939_v5 = vrot.slane %v3932_v10, 6  ;;  %v3940_v29 = vrot.slane %v3932_v10, 7  ;;  %v3949_v9 = vsub.f32 %v3898_v60, %v3932_v10 }
0x15f4   :  { %v3950_v33 = vsub.f32 %v3899_v54, %v3934_v38  ;;  %v3951_v59 = vsub.f32 %v3900_v8, %v3935_v57  ;;  %v3952_v14 = vsub.f32 %v3901_v1, %v3936_v11  ;;  %v3953_v16 = vsub.f32 %v3902_v19, %v3937_v15 }
0x15f5   :  { %v3954_v47 = vsub.f32 %v3903_v48, %v3938_v20  ;;  %v3955_v55 = vsub.f32 %v3904_v53, %v3939_v5  ;;  %v3956_v34 = vsub.f32 %v3905_v36, %v3940_v29  ;;  %v3957_v42 = vmul.f32 %v3949_v9, %v3949_v9 }
0x15f6   :  { %v3958_v62 = vmul.f32 %v3950_v33, %v3950_v33  ;;  %v3959_v58 = vmul.f32 %v3951_v59, %v3951_v59  ;;  %v3960_v63 = vmul.f32 %v3952_v14, %v3952_v14  ;;  %v3961_v18 = vmul.f32 %v3953_v16, %v3953_v16 }
0x15f7   :  { %v3962_v28 = vmul.f32 %v3954_v47, %v3954_v47  ;;  %v3963_v46 = vmul.f32 %v3955_v55, %v3955_v55  ;;  %v3964_v35 = vmul.f32 %v3956_v34, %v3956_v34 }
0x15f8   :  { %v3973_v41 = vrot.slane %v3958_v62, 7  ;;  %v3975_v43 = vrot.slane %v3959_v58, 6  ;;  %v3977_v60 = vrot.slane %v3960_v63, 5  ;;  %v3979_v8 = vrot.slane %v3961_v18, 4 }
0x15f9   :  { %v3981_v19 = vrot.slane %v3962_v28, 3  ;;  %v3983_v53 = vrot.slane %v3963_v46, 2  ;;  %v3985_v50 = vrot.slane %v3964_v35, 1  ;;  %v5878_v35 = vld [vmem:[%s7883_s5] ss:$0 sm:$0xff] }
0x15fa   :  { %v3974_v21 = vsel %vm386_vm1, %v3973_v41, %v3957_v42 }
0x15fb   :  { %v3976_v54 = vsel %vm389_vm2, %v3975_v43, %v3974_v21 }
0x15fc   :  { %v3978_v1 = vsel %vm392_vm3, %v3977_v60, %v3976_v54 }
0x15fd   :  { %v3980_v48 = vsel %vm395_vm4, %v3979_v8, %v3978_v1 }
0x15fe   :  { %v3982_v36 = vsel %vm398_vm5, %v3981_v19, %v3980_v48 }
0x15ff   :  { %v3984_v17 = vsel %vm401_vm6, %v3983_v53, %v3982_v36 }
0x1600   :  { %v3986_v4 = vsel %vm404_vm7, %v3985_v50, %v3984_v17 }
0x1601   :  { %v3988_v61 = vsel %vm419_vm8, %v3986_v4, 0.0 }
0x1602   :  { %3989 = vadd.xlane.f32.xlu1 %v3988_v61 }
0x1606   :  { %3049 = vadd.xlane.f32.xlu1 %v3048_v3 }
0x168f   :  { %v3990_v31 = vpop.xlane.xlu1 %3989 }
0x1690   :  { %v3991_v32 = vmul.f32 0.03125, %v3990_v31 }
0x1692   :  { %v3992_v10 = vadd.f32 1e-05, %v3991_v32 }
0x1694   :  { %5860 = vrsqrt.f32 %v3992_v10 }
0x169e   :  { %v5861_v38 = vpop.eup %5860 }
0x169f   :  { %v3995_v57 = vrot.slane %v5861_v38, 1  ;;  %v3996_v11 = vrot.slane %v5861_v38, 2  ;;  %v3997_v15 = vrot.slane %v5861_v38, 3  ;;  %v3998_v20 = vrot.slane %v5861_v38, 4 }
0x16a0   :  { %v3999_v5 = vrot.slane %v5861_v38, 5  ;;  %v4000_v29 = vrot.slane %v5861_v38, 6  ;;  %v4001_v62 = vrot.slane %v5861_v38, 7  ;;  %v4010_v58 = vmul.f32 %v5861_v38, %v3949_v9  ;;  %v5879_v9 = vld [vmem:[%s7884_s6] ss:$0 sm:$0xff] }
0x16a1   :  { %v4011_v63 = vmul.f32 %v3995_v57, %v3950_v33  ;;  %v4012_v18 = vmul.f32 %v3996_v11, %v3951_v59  ;;  %v4013_v42 = vmul.f32 %v3997_v15, %v3952_v14  ;;  %v4014_v28 = vmul.f32 %v3998_v20, %v3953_v16 }
0x16a2   :  { %v4015_v41 = vmul.f32 %v3999_v5, %v3954_v47  ;;  %v4016_v43 = vmul.f32 %v4000_v29, %v3955_v55  ;;  %v4017_v46 = vmul.f32 %v4001_v62, %v3956_v34  ;;  %v4018_v21 = vmul.f32 %v5878_v35, %v4010_v58 }
0x16a3   :  { %v4019_v60 = vmul.f32 %v5878_v35, %v4011_v63  ;;  %v4020_v54 = vmul.f32 %v5878_v35, %v4012_v18  ;;  %v4021_v8 = vmul.f32 %v5878_v35, %v4013_v42  ;;  %v4022_v1 = vmul.f32 %v5878_v35, %v4014_v28 }
0x16a4   :  { %v4023_v19 = vmul.f32 %v5878_v35, %v4015_v41  ;;  %v4024_v48 = vmul.f32 %v5878_v35, %v4016_v43  ;;  %v4025_v53 = vmul.f32 %v5878_v35, %v4017_v46  ;;  %v4026_v33 = vadd.f32 %v5879_v9, %v4018_v21 }
0x16a5   :  { %v4027_v59 = vadd.f32 %v5879_v9, %v4019_v60  ;;  %v4028_v14 = vadd.f32 %v5879_v9, %v4020_v54  ;;  %v4029_v16 = vadd.f32 %v5879_v9, %v4021_v8  ;;  %v4030_v47 = vadd.f32 %v5879_v9, %v4022_v1 }
0x16a6   :  { %v4031_v55 = vadd.f32 %v5879_v9, %v4023_v19  ;;  %v4032_v34 = vadd.f32 %v5879_v9, %v4024_v48  ;;  %v4033_v36 = vadd.f32 %v5879_v9, %v4025_v53  ;;  %v4034_v50 = vpack.c.bf16 %v4026_v33, %v4026_v33 }
0x16a7   :  { %v4035_v17 = vpack.c.bf16 %v4027_v59, %v4027_v59  ;;  %v4036_v4 = vpack.c.bf16 %v4028_v14, %v4028_v14  ;;  %v4037_v61 = vpack.c.bf16 %v4029_v16, %v4029_v16  ;;  %v4038_v3 = vpack.c.bf16 %v4030_v47, %v4030_v47 }
0x16a8   :  { %v4039_v31 = vpack.c.bf16 %v4031_v55, %v4031_v55  ;;  %v4040_v32 = vpack.c.bf16 %v4032_v34, %v4032_v34  ;;  %v4041_v10 = vpack.c.bf16 %v4033_v36, %v4033_v36  ;;  %v4764_v20 = vrot.slane %v4027_v59, 7 }
0x16a9   :  { %v4051_v38 = vunpack.c.l.b16 %v4035_v17  ;;  %v4052_v57 = vunpack.c.l.b16 %v4036_v4  ;;  %v4053_v11 = vunpack.c.l.b16 %v4037_v61  ;;  %v4054_v15 = vunpack.c.l.b16 %v4038_v3 }
0x16aa   :  { %v4050_v5 = vunpack.c.l.b16 %v4034_v50  ;;  %v4055_v29 = vunpack.c.l.b16 %v4039_v31  ;;  %v4056_v63 = vunpack.c.l.b16 %v4040_v32  ;;  %v4765_v18 = vsel %vm386_vm1, %v4764_v20, %v4026_v33  ;;  %v5902_v32 = vld [vmem:[%s7887_s9 + $0x98] sm:$0xff]   ;;  %v5908_v20 = vld [vmem:[%s7887_s9 + $0xa8] sm:$0xff]  }
0x16ab   :  { %v4058_v62 = vrot.slane %v4051_v38, 7  ;;  %v4060_v58 = vrot.slane %v4052_v57, 6  ;;  %v4057_v42 = vunpack.c.l.b16 %v4041_v10  ;;  %v4062_v41 = vrot.slane %v4053_v11, 5  ;;  %v5903_v10 = vld [vmem:[%s7887_s9 + $0xe0] sm:$0xff]   ;;  %v5904_v38 = vld [vmem:[%s7887_s9 + $0x38] sm:$0xff]  }
0x16ac   :  { %v4766_v43 = vrot.slane %v4028_v14, 6  ;;  %v4064_v35 = vrot.slane %v4054_v15, 4  ;;  %v4768_v21 = vrot.slane %v4029_v16, 5  ;;  %v4066_v54 = vrot.slane %v4055_v29, 3  ;;  %v5905_v57 = vld [vmem:[%s7887_s9 + $0x140] sm:$0xff]   ;;  %v5907_v15 = vld [vmem:[%s7887_s9 + $0xe8] sm:$0xff]  }
0x16ad   :  { %v4059_v28 = vsel %vm386_vm1, %v4058_v62, %v4050_v5  ;;  %v4770_v1 = vrot.slane %v4030_v47, 4  ;;  %v4068_v48 = vrot.slane %v4056_v63, 2  ;;  %v4772_v9 = vrot.slane %v4031_v55, 3  ;;  %v5899_v55 = vld [vmem:[%s7887_s9 + $0xd8] sm:$0xff]   ;;  %v5906_v11 = vld [vmem:[%s7887_s9 + $0xa0] sm:$0xff]   ;;  %v5909_v5 = vld [vmem:[%s7887_s9 + $0xf0] sm:$0xff]  }
0x16ae   :  { %v4061_v46 = vsel %vm389_vm2, %v4060_v58, %v4059_v28  ;;  %v4767_v8 = vsel %vm389_vm2, %v4766_v43, %v4765_v18  ;;  %v4070_v59 = vrot.slane %v4057_v42, 1  ;;  %v4774_v50 = vrot.slane %v4032_v34, 2  ;;  %v5900_v34 = vld [vmem:[%s7887_s9 + $0x30] sm:$0xff]   ;;  %v5911_v62 = vld [vmem:[%s7887_s9 + $0xf8] sm:$0xff]   ;;  %v5913_v63 = vld [vmem:[%s7887_s9 + $0x1c0] sm:$0xff]  }
0x16af   :  { %v4063_v60 = vsel %vm392_vm3, %v4062_v41, %v4061_v46  ;;  %v4769_v53 = vsel %vm392_vm3, %v4768_v21, %v4767_v8  ;;  %v4776_v4 = vrot.slane %v4033_v36, 1  ;;  %v5901_v36 = vld [vmem:[%s7887_s9 + $0x78] sm:$0xff]   ;;  %v5910_v29 = vld [vmem:[%s7887_s9 + $0xb0] sm:$0xff]  }
0x16b0   :  { %v4065_v19 = vsel %vm395_vm4, %v4064_v35, %v4063_v60  ;;  %v4771_v14 = vsel %vm395_vm4, %v4770_v1, %v4769_v53  ;;  %v5912_v58 = vld [vmem:[%s7887_s9 + $0xb8] sm:$0xff]   ;;  %v7960_v28 = vld [vmem:[#allocation9_spill] sm:$0xff]  ;;  %v7962_v60 = vld [vmem:[#allocation11_spill] sm:$0xff] }
0x16b1   :  { %v4067_v33 = vsel %vm398_vm5, %v4066_v54, %v4065_v19  ;;  %v4773_v17 = vsel %vm398_vm5, %v4772_v9, %v4771_v14  ;;  %v7961_v35 = vld [vmem:[#allocation10_spill] sm:$0xff] }
0x16b2   :  { %v4069_v16 = vsel %vm401_vm6, %v4068_v48, %v4067_v33  ;;  %v4775_v47 = vsel %vm401_vm6, %v4774_v50, %v4773_v17 }
0x16b3   :  { %v4071_v61 = vsel %vm404_vm7, %v4070_v59, %v4069_v16  ;;  %v7370_v31 = vsel %vm404_vm7, %v4776_v4, %v4775_v47  ;;  %v7963_v4 = vld [vmem:[#allocation12_spill] sm:$0xff] }
0x16b4   :  { %v4072_v3 = vpack.c.b16 %v4071_v61, %v4071_v61 }
0x16b6   :  { %5080 = vmatmul.mubr.msk.bf16.vlgmr.msra.gmra.mrb[68].mxu1 %vm419_vm8, %v4072_v3  ;;  %5082 = vmatmul.mubr.msk.bf16.vlgmr.msra.gmra.mrb[76].mxu0 %vm419_vm8, %v4072_v3 }
0x16b7   :  { %4118 = vmatpush1.bf16.msra.mxu1 %v6410_v22  ;;  %4241 = vmatpush1.bf16.msra.mxu0 %v6412_v23  ;;  %v5880_v22 = vld [vmem:[%s7887_s9 + $0x40] sm:$0xff]  }
0x16b8   :  { %4119 = vmatprep.subr.bf16.mxu1 %v6459_v0  ;;  %4242 = vmatprep.subr.bf16.mxu0 %v6461_v37  ;;  %v5881_v23 = vld [vmem:[%s7887_s9] sm:$0xff]   ;;  %v5882_v0 = vld [vmem:[%s7887_s9 + $0x48] sm:$0xff]  }
0x16b9   :  { %4149 = vmatprep.mubr.bf16.mxu1 %v7956_v49  ;;  %4272 = vmatprep.mubr.bf16.mxu0 %v7956_v49  ;;  %v5883_v37 = vld [vmem:[%s7887_s9 + $0x8] sm:$0xff]  }
0x16bb   :  { %4120 = vmatpush1.bf16.msra.mxu1 %v6484_v6  ;;  %4243 = vmatpush1.bf16.msra.mxu0 %v6486_v7  ;;  %v5884_v6 = vld [vmem:[%s7887_s9 + $0x50] sm:$0xff]  }
0x16bc   :  { %4199 = vmatprep.subr.bf16.mxu1 %v6490_v12  ;;  %4322 = vmatprep.subr.bf16.mxu0 %v6492_v13  ;;  %v7958_v7 = vld [vmem:[#allocation5_spill] sm:$0xff]  ;;  %v5886_v13 = vld [vmem:[%s7887_s9 + $0x58] sm:$0xff]  }
0x16bd   :  { %v5885_v12 = vld [vmem:[%s7887_s9 + $0x10] sm:$0xff]  }
0x16be   :  { %5081 = vmatmul.mubr.msk.bf16.vlgmr.msra.gmra.mrb[72].mxu1 %vm419_vm8, %v4072_v3  ;;  %5084 = vmatmul.mubr.msk.bf16.vlgmr.msra.gmra.mrb[80].mxu0 %vm419_vm8, %v4072_v3 }
0x16bf   :  { %4200 = vmatpush1.bf16.msra.mxu1 %v6510_v24  ;;  %4323 = vmatpush1.bf16.msra.mxu0 %v6512_v25  ;;  %v7959_v24 = vld [vmem:[#allocation6_spill] sm:$0xff]  ;;  %v5887_v25 = vld [vmem:[%s7887_s9 + $0xc0] sm:$0xff]  }
0x16c0   :  { %4201 = vmatprep.subr.bf16.mxu1 %v6516_v26  ;;  %4324 = vmatprep.subr.bf16.mxu0 %v6518_v27  ;;  %v5888_v26 = vld [vmem:[%s7887_s9 + $0x18] sm:$0xff]   ;;  %v5889_v27 = vld [vmem:[%s7887_s9 + $0x60] sm:$0xff]  }
0x16c1   :  { %4231 = vmatprep.mubr.bf16.mxu1 %v7956_v49  ;;  %4354 = vmatprep.mubr.bf16.mxu0 %v7956_v49 }
0x16c3   :  { %4202 = vmatpush1.bf16.msra.mxu1 %v6532_v30  ;;  %4325 = vmatpush1.bf16.msra.mxu0 %v6534_v39  ;;  %v5890_v30 = vld [vmem:[%s7887_s9 + $0x80] sm:$0xff]   ;;  %v5891_v39 = vld [vmem:[%s7887_s9 + $0xc8] sm:$0xff]  }
0x16c4   :  { %4281 = vmatprep.subr.bf16.mxu1 %v6538_v40  ;;  %5318 = vmatprep.subr.bf16.mxu0 %v5880_v22  ;;  %v5892_v40 = vld [vmem:[%s7887_s9 + $0x20] sm:$0xff]   ;;  %v7964_v22 = vld [vmem:[#allocation13_spill] sm:$0xff] }
0x16c6   :  { %5083 = vmatmul.mubr.msk.bf16.vlgmr.msra.gmra.mrb[76].mxu1 %vm419_vm8, %v4072_v3  ;;  %5086 = vmatmul.mubr.msk.bf16.vlgmr.msra.gmra.mrb[84].mxu0 %vm419_vm8, %v4072_v3 }
0x16c7   :  { %4282 = vmatpush1.bf16.msra.mxu1 %v6553_v44  ;;  %4313 = vmatprep.mubr.bf16.mxu1 %v7956_v49  ;;  %v5893_v44 = vld [vmem:[%s7887_s9 + $0x68] sm:$0xff]  }
0x16c8   :  { %4283 = vmatprep.subr.bf16.mxu1 %v6556_v45  ;;  %5319 = vmatpush3.bf16.msra.mxu0 %v5881_v23  ;;  %v5894_v45 = vld [vmem:[%s7887_s9 + $0x88] sm:$0xff]  }
0x16c9   :  { %5320 = vmatprep.subr.bf16.mxu0 %v5882_v0  ;;  %v5914_v0 = vld [vmem:[%s7887_s9 + $0x100] sm:$0xff]  }
0x16cb   :  { %4284 = vmatpush1.bf16.msra.mxu1 %v6575_v51  ;;  %v5895_v51 = vld [vmem:[%s7887_s9 + $0xd0] sm:$0xff]  }
0x16cc   :  { %4363 = vmatprep.subr.bf16.mxu1 %v6579_v52  ;;  %5321 = vmatpush3.bf16.msra.mxu0 %v5883_v37  ;;  %v5896_v52 = vld [vmem:[%s7887_s9 + $0x28] sm:$0xff]  }
0x16cd   :  { %5322 = vmatprep.subr.bf16.mxu0 %v5884_v6 }
0x16ce   :  { %5085 = vmatmul.mubr.msk.bf16.vlgmr.msra.gmra.mrb[80].mxu1 %vm419_vm8, %v4072_v3 }
0x16cf   :  { %4364 = vmatpush1.bf16.msra.mxu1 %v6594_v56  ;;  %4395 = vmatprep.mubr.bf16.mxu1 %v7956_v49  ;;  %v5897_v56 = vld [vmem:[%s7887_s9 + $0x70] sm:$0xff]  }
0x16d0   :  { %4365 = vmatprep.subr.bf16.mxu1 %v7958_v7  ;;  %5323 = vmatpush3.bf16.msra.mxu0 %v5885_v12  ;;  %v5898_v49 = vld [vmem:[%s7887_s9 + $0x90] sm:$0xff]  }
0x16d1   :  { %5324 = vmatprep.subr.bf16.mxu0 %v5886_v13 }
0x16d3   :  { %4366 = vmatpush1.bf16.msra.mxu1 %v7959_v24  ;;  %v5915_v24 = vld [vmem:[%s7887_s9 + $0x148] sm:$0xff]  }
0x16d4   :  { %5340 = vmatprep.subr.bf16.mxu1 %v5887_v25  ;;  %5325 = vmatpush3.bf16.msra.mxu0 %v5888_v26 }
0x16d5   :  { %5326 = vmatprep.subr.bf16.mxu0 %v5889_v27  ;;  %v5916_v27 = vld [vmem:[%s7887_s9 + $0x108] sm:$0xff]  }
0x16d6   :  { %5087 = vmatmul.mubr.msk.bf16.vlgmr.msra.gmra.mrb[84].mxu1 %vm419_vm8, %v4072_v3 }
0x16d7   :  { %5341 = vmatpush3.bf16.msra.mxu1 %v5890_v30 }
0x16d8   :  { %5342 = vmatprep.subr.bf16.mxu1 %v5891_v39  ;;  %5327 = vmatpush3.bf16.msra.mxu0 %v5892_v40  ;;  %v5917_v39 = vld [vmem:[%s7887_s9 + $0x150] sm:$0xff]  }
0x16d9   :  { %5328 = vmatprep.subr.bf16.mxu0 %v5893_v44 }
0x16db   :  { %5343 = vmatpush3.bf16.msra.mxu1 %v5894_v45 }
0x16dc   :  { %5344 = vmatprep.subr.bf16.mxu1 %v5895_v51  ;;  %5329 = vmatpush3.bf16.msra.mxu0 %v5896_v52  ;;  %v7965_v52 = vld [vmem:[#allocation14_spill] sm:$0xff] }
0x16dd   :  { %5330 = vmatprep.subr.bf16.mxu0 %v5897_v56 }
0x16df   :  { %5345 = vmatpush3.bf16.msra.mxu1 %v5898_v49  ;;  %v5918_v49 = vld [vmem:[%s7887_s9 + $0x110] sm:$0xff]  }
0x16e0   :  { %5346 = vmatprep.subr.bf16.mxu1 %v5899_v55  ;;  %5331 = vmatpush3.bf16.msra.mxu0 %v5900_v34  ;;  %v5919_v55 = vld [vmem:[%s7887_s9 + $0x180] sm:$0xff]  }
0x16e1   :  { %5332 = vmatprep.subr.bf16.mxu0 %v5901_v36 }
0x16e3   :  { %5347 = vmatpush3.bf16.msra.mxu1 %v5902_v32 }
0x16e4   :  { %5348 = vmatprep.subr.bf16.mxu1 %v5903_v10  ;;  %5333 = vmatpush3.bf16.msra.mxu0 %v5904_v38  ;;  %v5920_v38 = vld [vmem:[%s7887_s9 + $0x158] sm:$0xff]  }
0x16e5   :  { %5362 = vmatprep.subr.bf16.mxu0 %v5905_v57  ;;  %v5921_v57 = vld [vmem:[%s7887_s9 + $0x1c8] sm:$0xff]  }
0x16e7   :  { %5349 = vmatpush3.bf16.msra.mxu1 %v5906_v11 }
0x16e8   :  { %5350 = vmatprep.subr.bf16.mxu1 %v5907_v15 }
0x16eb   :  { %5351 = vmatpush3.bf16.msra.mxu1 %v5908_v20  ;;  %v5922_v20 = vld [vmem:[%s7887_s9 + $0x118] sm:$0xff]  }
0x16ec   :  { %5352 = vmatprep.subr.bf16.mxu1 %v5909_v5  ;;  %v5923_v5 = vld [vmem:[%s7887_s9 + $0x188] sm:$0xff]  }
0x16ef   :  { %5353 = vmatpush3.bf16.msra.mxu1 %v5910_v29  ;;  %v5924_v29 = vld [vmem:[%s7887_s9 + $0x160] sm:$0xff]  }
0x16f0   :  { %5354 = vmatprep.subr.bf16.mxu1 %v5911_v62  ;;  %v5925_v62 = vld [vmem:[%s7887_s9 + $0x1d0] sm:$0xff]  }
0x16f3   :  { %5355 = vmatpush3.bf16.msra.mxu1 %v5912_v58 }
0x16f4   :  { %5384 = vmatprep.subr.bf16.mxu1 %v5913_v63 }
0x1789   :  { %v4110_v18 = vpop.f32.mrb[68].mxu1  ;;  %v7510_v42 = vpop.f32.mrb[76].mxu0 }
0x178a   :  { %v4111_v41 = vadd.f32 %v4110_v18, %v7960_v28  ;;  %v4112_v43 = vpop.f32.mrb[69].mxu1  ;;  %v4194_v46 = vpop.f32.mrb[77].mxu0  ;;  %v5926_v18 = vld [vmem:[%s7887_s9 + $0x120] sm:$0xff]   ;;  %v5927_v28 = vld [vmem:[%s7887_s9 + $0x190] sm:$0xff]  }
0x178b   :  { %v4113_v21 = vadd.f32 %v4112_v43, %v7961_v35  ;;  %v4195_v54 = vadd.f32 %v4194_v46, %v7962_v60  ;;  %v4114_v8 = vpop.f32.mrb[70].mxu1  ;;  %v4196_v1 = vpop.f32.mrb[78].mxu0  ;;  %v5928_v46 = vld [vmem:[%s7887_s9 + $0x168] sm:$0xff]   ;;  %v5929_v35 = vld [vmem:[%s7887_s9 + $0x1d8] sm:$0xff]  }
0x178c   :  { %v4404_v19 = vmax.f32 %v4111_v41, 0.0  ;;  %v4115_v48 = vpop.f32.mrb[71].mxu1  ;;  %v4197_v53 = vpop.f32.mrb[79].mxu0  ;;  %v5931_v60 = vld [vmem:[%s7887_s9 + $0x198] sm:$0xff]   ;;  %v5932_v1 = vld [vmem:[%s7887_s9 + $0x170] sm:$0xff]  }
0x178d   :  { %v4405_v9 = vmax.f32 %v4113_v21, 0.0  ;;  %v4409_v33 = vmax.f32 %v4195_v54, 0.0  ;;  %v5930_v21 = vld [vmem:[%s7887_s9 + $0x128] sm:$0xff]   ;;  %v7966_v54 = vld [vmem:[#allocation15_spill] sm:$0xff] }
0x178e   :  { %v4420_v14 = vpack.c.bf16 %v4404_v19, %v4404_v19  ;;  %v4193_v8 = vadd.f32 %v7510_v42, %v7966_v54  ;;  %v5933_v19 = vld [vmem:[%s7887_s9 + $0x1e0] sm:$0xff]   ;;  %v7967_v53 = vld [vmem:[#allocation16_spill] sm:$0xff]  ;;  %v5934_v42 = vld [vmem:[%s7887_s9 + $0x130] sm:$0xff]  }
0x178f   :  { %v4421_v59 = vpack.c.bf16 %v4405_v9, %v4405_v9  ;;  %v4425_v50 = vpack.c.bf16 %v4409_v33, %v4409_v33  ;;  %v5966_v54 = vld [vmem:[%s7887_s9 + $0x230] sm:$0xff]  }
0x1791   :  { %v4151_v16 = vpop.f32.mrb[72].mxu1  ;;  %v7515_v17 = vpop.f32.mrb[80].mxu0  ;;  %4468 = vmatprep.mubr.bf16.mxu0 %v4421_v59  ;;  %v5935_v59 = vld [vmem:[%s7887_s9 + $0x1a0] sm:$0xff]  }
0x1792   :  { %v4152_v61 = vadd.f32 %v4151_v16, %v7963_v4  ;;  %v4153_v47 = vpop.f32.mrb[73].mxu1  ;;  %v7518_v3 = vpop.f32.mrb[81].mxu0  ;;  %4469 = vmatmul.mubr.bf16.vlgmr.msra.gmra.mrb[88].mxu0 %v4420_v14  ;;  %v5936_v4 = vld [vmem:[%s7887_s9 + $0x178] sm:$0xff]  }
0x1793   :  { %v4154_v23 = vadd.f32 %v4153_v47, %v7964_v22  ;;  %5363 = vmatpush3.bf16.msra.mxu0 %v5914_v0  ;;  %v4155_v37 = vpop.f32.mrb[74].mxu1  ;;  %v4278_v6 = vpop.f32.mrb[82].mxu0  ;;  %4548 = vmatprep.mubr.bf16.mxu0 %v4425_v50  ;;  %v4277_v9 = vadd.f32 %v7518_v3, %v7967_v53  ;;  %v4408_v50 = vmax.f32 %v4193_v8, 0.0  ;;  %v5938_v3 = vld [vmem:[%s7887_s9 + $0x138] sm:$0xff]   ;;  %v5939_v22 = vld [vmem:[%s7887_s9 + $0x1a8] sm:$0xff]   ;;  %v7968_v0 = vld [vmem:[#allocation17_spill] sm:$0xff] }
0x1794   :  { %v4406_v7 = vmax.f32 %v4152_v61, 0.0  ;;  %v4156_v12 = vpop.f32.mrb[75].mxu1  ;;  %v4279_v13 = vpop.f32.mrb[83].mxu0  ;;  %5364 = vmatprep.subr.bf16.mxu0 %v5915_v24  ;;  %v5937_v61 = vld [vmem:[%s7887_s9 + $0x1e8] sm:$0xff]   ;;  %v5940_v6 = vld [vmem:[%s7887_s9 + $0x1f0] sm:$0xff]   ;;  %v5970_v53 = vld [vmem:[%s7887_s9 + $0x238] sm:$0xff]  }
0x1795   :  { %v4407_v25 = vmax.f32 %v4154_v23, 0.0  ;;  %v4413_v47 = vmax.f32 %v4277_v9, 0.0  ;;  %v4424_v23 = vpack.c.bf16 %v4408_v50, %v4408_v50  ;;  %v7969_v13 = vld [vmem:[#allocation18_spill] sm:$0xff]  ;;  %v5971_v9 = vld [vmem:[%s7887_s9 + $0x2a8] sm:$0xff]   ;;  %v5972_v50 = vld [vmem:[%s7887_s9 + $0x2f0] sm:$0xff]  }
0x1796   :  { %v4422_v30 = vpack.c.bf16 %v4406_v7, %v4406_v7  ;;  %v5941_v7 = vld [vmem:[%s7887_s9 + $0x240] sm:$0xff]  }
0x1797   :  { %v4423_v26 = vpack.c.bf16 %v4407_v25, %v4407_v25  ;;  %5365 = vmatpush3.bf16.msra.mxu0 %v5916_v27  ;;  %v4429_v12 = vpack.c.bf16 %v4413_v47, %v4413_v47  ;;  %v5942_v25 = vld [vmem:[%s7887_s9 + $0x1b0] sm:$0xff]  }
0x1798   :  { %5366 = vmatprep.subr.bf16.mxu0 %v5917_v39  ;;  %v5945_v39 = vld [vmem:[%s7887_s9 + $0x248] sm:$0xff]  }
0x1799   :  { %v7533_v40 = vpop.f32.mrb[76].mxu1  ;;  %v7535_v44 = vpop.f32.mrb[84].mxu0  ;;  %4508 = vmatprep.mubr.bf16.mxu1 %v4423_v26  ;;  %v5943_v26 = vld [vmem:[%s7887_s9 + $0x200] sm:$0xff]  }
0x179a   :  { %v4235_v45 = vpop.f32.mrb[77].mxu1  ;;  %v7537_v51 = vpop.f32.mrb[85].mxu0  ;;  %4509 = vmatmul.mubr.bf16.vlgmr.msra.gmra.mrb[88].mxu1 %v4422_v30  ;;  %v4234_v37 = vadd.f32 %v7533_v40, %v7968_v0  ;;  %v5944_v30 = vld [vmem:[%s7887_s9 + $0x1f8] sm:$0xff]  }
0x179b   :  { %v4236_v56 = vadd.f32 %v4235_v45, %v7965_v52  ;;  %5367 = vmatpush3.bf16.msra.mxu0 %v5918_v49  ;;  %5385 = vmatpush3.bf16.msra.mxu1 %v5919_v55  ;;  %v4237_v34 = vpop.f32.mrb[78].mxu1  ;;  %v4360_v36 = vpop.f32.mrb[86].mxu0  ;;  %v5946_v45 = vld [vmem:[%s7887_s9 + $0x1b8] sm:$0xff]   ;;  %v5947_v52 = vld [vmem:[%s7887_s9 + $0x208] sm:$0xff]   ;;  %v5948_v49 = vld [vmem:[%s7887_s9 + $0x250] sm:$0xff]  }
0x179c   :  { %v4238_v32 = vpop.f32.mrb[79].mxu1  ;;  %v4361_v10 = vpop.f32.mrb[87].mxu0  ;;  %5368 = vmatprep.subr.bf16.mxu0 %v5920_v38  ;;  %5386 = vmatprep.subr.bf16.mxu1 %v5921_v57  ;;  %v4410_v27 = vmax.f32 %v4234_v37, 0.0  ;;  %v5949_v55 = vld [vmem:[%s7887_s9 + $0x2c0] sm:$0xff]   ;;  %v5950_v36 = vld [vmem:[%s7887_s9 + $0x210] sm:$0xff]   ;;  %v5953_v38 = vld [vmem:[%s7887_s9 + $0x2c8] sm:$0xff]  }
0x179d   :  { %v4411_v11 = vmax.f32 %v4236_v56, 0.0  ;;  %v5951_v32 = vld [vmem:[%s7887_s9 + $0x280] sm:$0xff]   ;;  %v5952_v10 = vld [vmem:[%s7887_s9 + $0x258] sm:$0xff]  }
0x179e   :  { %v4426_v56 = vpack.c.bf16 %v4410_v27, %v4410_v27  ;;  %v5954_v57 = vld [vmem:[%s7887_s9 + $0x218] sm:$0xff]  }
0x179f   :  { %v4427_v15 = vpack.c.bf16 %v4411_v11, %v4411_v11  ;;  %5369 = vmatpush3.bf16.msra.mxu0 %v5922_v20  ;;  %5387 = vmatpush3.bf16.msra.mxu1 %v5923_v5  ;;  %v5955_v11 = vld [vmem:[%s7887_s9 + $0x288] sm:$0xff]   ;;  %v5957_v20 = vld [vmem:[%s7887_s9 + $0x2d0] sm:$0xff]   ;;  %v5958_v5 = vld [vmem:[%s7887_s9 + $0x220] sm:$0xff]  }
0x17a0   :  { %5370 = vmatprep.subr.bf16.mxu0 %v5924_v29  ;;  %5388 = vmatprep.subr.bf16.mxu1 %v5925_v62  ;;  %v5959_v29 = vld [vmem:[%s7887_s9 + $0x290] sm:$0xff]   ;;  %v5960_v62 = vld [vmem:[%s7887_s9 + $0x268] sm:$0xff]   ;;  %v5978_v37 = vld [vmem:[%s7887_s9 + $0x2b8] sm:$0xff]  }
0x17a1   :  { %v7564_v58 = vpop.f32.mrb[80].mxu1  ;;  %4588 = vmatprep.mubr.bf16.mxu1 %v4427_v15  ;;  %v5956_v15 = vld [vmem:[%s7887_s9 + $0x260] sm:$0xff]   ;;  %v5984_v27 = vld [vmem:[%s7887_s9 + $0x358] sm:$0xff]  }
0x17a2   :  { %v4317_v63 = vpop.f32.mrb[81].mxu1 }
0x17a3   :  { %5371 = vmatpush3.bf16.msra.mxu0 %v5926_v18  ;;  %5389 = vmatpush3.bf16.msra.mxu1 %v5927_v28  ;;  %v4319_v41 = vpop.f32.mrb[82].mxu1  ;;  %v4318_v24 = vadd.f32 %v4317_v63, %v7969_v13  ;;  %v5961_v63 = vld [vmem:[%s7887_s9 + $0x2d8] sm:$0xff]   ;;  %v5962_v18 = vld [vmem:[%s7887_s9 + $0x228] sm:$0xff]   ;;  %v5981_v13 = vld [vmem:[%s7887_s9 + $0x3c0] sm:$0xff]  }
0x17a4   :  { %v4320_v43 = vpop.f32.mrb[83].mxu1  ;;  %5372 = vmatprep.subr.bf16.mxu0 %v5928_v46  ;;  %5390 = vmatprep.subr.bf16.mxu1 %v5929_v35  ;;  %v5963_v28 = vld [vmem:[%s7887_s9 + $0x298] sm:$0xff]   ;;  %v7970_v41 = vld [vmem:[#allocation19_spill] sm:$0xff]  ;;  %v5964_v46 = vld [vmem:[%s7887_s9 + $0x270] sm:$0xff]  }
0x17a5   :  { %v4415_v40 = vmax.f32 %v4318_v24, 0.0  ;;  %v4275_v43 = vadd.f32 %v7515_v17, %v7970_v41  ;;  %v5965_v35 = vld [vmem:[%s7887_s9 + $0x2e0] sm:$0xff]  }
0x17a6   :  { %v5967_v17 = vld [vmem:[%s7887_s9 + $0x2a0] sm:$0xff]  }
0x17a7   :  { %5373 = vmatpush3.bf16.msra.mxu0 %v5930_v21  ;;  %5391 = vmatpush3.bf16.msra.mxu1 %v5931_v60  ;;  %v4431_v34 = vpack.c.bf16 %v4415_v40, %v4415_v40  ;;  %v7971_v21 = vld [vmem:[#allocation20_spill] sm:$0xff]  ;;  %v4412_v8 = vmax.f32 %v4275_v43, 0.0  ;;  %v6004_v43 = vld [vmem:[%s7887_s9 + $0x3f0] sm:$0xff]  }
0x17a8   :  { %5374 = vmatprep.subr.bf16.mxu0 %v5932_v1  ;;  %5392 = vmatprep.subr.bf16.mxu1 %v5933_v19  ;;  %v4359_v60 = vadd.f32 %v7537_v51, %v7971_v21  ;;  %v5968_v1 = vld [vmem:[%s7887_s9 + $0x278] sm:$0xff]   ;;  %v5969_v51 = vld [vmem:[%s7887_s9 + $0x2e8] sm:$0xff]  }
0x17a9   :  { %v7592_v48 = vpop.f32.mrb[84].mxu1  ;;  %v5987_v40 = vld [vmem:[%s7887_s9 + $0x388] sm:$0xff]   ;;  %v6006_v21 = vld [vmem:[%s7887_s9 + $0x3f8] sm:$0xff]  }
0x17aa   :  { %v7596_v33 = vpop.f32.mrb[85].mxu1  ;;  %v4417_v19 = vmax.f32 %v4359_v60, 0.0 }
0x17ab   :  { %5375 = vmatpush3.bf16.msra.mxu0 %v5934_v42  ;;  %5393 = vmatpush3.bf16.msra.mxu1 %v5935_v59  ;;  %v4401_v14 = vpop.f32.mrb[86].mxu1  ;;  %v4428_v42 = vpack.c.bf16 %v4412_v8, %v4412_v8  ;;  %v7972_v59 = vld [vmem:[#allocation21_spill] sm:$0xff] }
0x17ac   :  { %v4402_v16 = vpop.f32.mrb[87].mxu1  ;;  %5376 = vmatprep.subr.bf16.mxu0 %v5936_v4  ;;  %5394 = vmatprep.subr.bf16.mxu1 %v5937_v61  ;;  %v4316_v14 = vadd.f32 %v7564_v58, %v7972_v59  ;;  %v4433_v4 = vpack.c.bf16 %v4417_v19, %v4417_v19  ;;  %v7973_v61 = vld [vmem:[#allocation22_spill] sm:$0xff]  ;;  %v5975_v58 = vld [vmem:[%s7887_s9 + $0x300] sm:$0xff]  }
0x17ad   :  { %v5973_v16 = vld [vmem:[%s7887_s9 + $0x340] sm:$0xff]   ;;  %v4400_v47 = vadd.f32 %v7596_v33, %v7973_v61  ;;  %v5977_v33 = vld [vmem:[%s7887_s9 + $0x348] sm:$0xff]  }
0x17af   :  { %5377 = vmatpush3.bf16.msra.mxu0 %v5938_v3  ;;  %5395 = vmatpush3.bf16.msra.mxu1 %v5939_v22  ;;  %v5974_v3 = vld [vmem:[%s7887_s9 + $0x2b0] sm:$0xff]   ;;  %v4414_v22 = vmax.f32 %v4316_v14, 0.0  ;;  %v4419_v0 = vmax.f32 %v4400_v47, 0.0 }
0x17b0   :  { %5396 = vmatprep.subr.bf16.mxu1 %v5940_v6  ;;  %5406 = vmatprep.subr.bf16.mxu0 %v5941_v7  ;;  %v5979_v6 = vld [vmem:[%s7887_s9 + $0x308] sm:$0xff]  }
0x17b1   :  { %v4430_v7 = vpack.c.bf16 %v4414_v22, %v4414_v22  ;;  %v4435_v24 = vpack.c.bf16 %v4419_v0, %v4419_v0 }
0x17b2   :  { %4549 = vmatmul.mubr.bf16.vlgmr.msra.gmra.mrb[92].mxu0 %v4424_v23  ;;  %v5976_v23 = vld [vmem:[%s7887_s9 + $0x2f8] sm:$0xff]  }
0x17b3   :  { %5397 = vmatpush3.bf16.msra.mxu1 %v5942_v25  ;;  %5407 = vmatpush3.bf16.msra.mxu0 %v5943_v26  ;;  %v5982_v25 = vld [vmem:[%s7887_s9 + $0x310] sm:$0xff]   ;;  %v5983_v26 = vld [vmem:[%s7887_s9 + $0x380] sm:$0xff]  }
0x17b4   :  { %4628 = vmatprep.mubr.bf16.mxu0 %v4429_v12  ;;  %5398 = vmatprep.subr.bf16.mxu1 %v5944_v30  ;;  %v5980_v12 = vld [vmem:[%s7887_s9 + $0x350] sm:$0xff]   ;;  %v5985_v30 = vld [vmem:[%s7887_s9 + $0x3c8] sm:$0xff]  }
0x17b5   :  { %5408 = vmatprep.subr.bf16.mxu0 %v5945_v39  ;;  %v5986_v39 = vld [vmem:[%s7887_s9 + $0x318] sm:$0xff]  }
0x17b7   :  { %5399 = vmatpush3.bf16.msra.mxu1 %v5946_v45  ;;  %5409 = vmatpush3.bf16.msra.mxu0 %v5947_v52  ;;  %v5988_v45 = vld [vmem:[%s7887_s9 + $0x360] sm:$0xff]   ;;  %v5989_v52 = vld [vmem:[%s7887_s9 + $0x3d0] sm:$0xff]  }
0x17b8   :  { %5410 = vmatprep.subr.bf16.mxu0 %v5948_v49  ;;  %5428 = vmatprep.subr.bf16.mxu1 %v5949_v55  ;;  %v5991_v49 = vld [vmem:[%s7887_s9 + $0x390] sm:$0xff]   ;;  %v5992_v55 = vld [vmem:[%s7887_s9 + $0x368] sm:$0xff]  }
0x17ba   :  { %4589 = vmatmul.mubr.bf16.vlgmr.msra.gmra.mrb[92].mxu1 %v4426_v56  ;;  %v5990_v56 = vld [vmem:[%s7887_s9 + $0x320] sm:$0xff]  }
0x17bb   :  { %5411 = vmatpush3.bf16.msra.mxu0 %v5950_v36  ;;  %5429 = vmatpush3.bf16.msra.mxu1 %v5951_v32  ;;  %v5994_v36 = vld [vmem:[%s7887_s9 + $0x328] sm:$0xff]   ;;  %v5995_v32 = vld [vmem:[%s7887_s9 + $0x398] sm:$0xff]  }
0x17bc   :  { %4668 = vmatprep.mubr.bf16.mxu1 %v4431_v34  ;;  %5412 = vmatprep.subr.bf16.mxu0 %v5952_v10  ;;  %v5993_v34 = vld [vmem:[%s7887_s9 + $0x3d8] sm:$0xff]   ;;  %v7974_v10 = vld [vmem:[#allocation23_spill] sm:$0xff] }
0x17bd   :  { %5430 = vmatprep.subr.bf16.mxu1 %v5953_v38  ;;  %v4357_v38 = vadd.f32 %v7535_v44, %v7974_v10 }
0x17bf   :  { %5413 = vmatpush3.bf16.msra.mxu0 %v5954_v57  ;;  %5431 = vmatpush3.bf16.msra.mxu1 %v5955_v11  ;;  %v5996_v57 = vld [vmem:[%s7887_s9 + $0x370] sm:$0xff]   ;;  %v5997_v11 = vld [vmem:[%s7887_s9 + $0x3e0] sm:$0xff]   ;;  %v4416_v44 = vmax.f32 %v4357_v38, 0.0  ;;  %v3050_v38 = vpop.xlane.xlu1 %3049 }
0x17c0   :  { %5414 = vmatprep.subr.bf16.mxu0 %v5956_v15  ;;  %5432 = vmatprep.subr.bf16.mxu1 %v5957_v20  ;;  %v5998_v15 = vld [vmem:[%s7887_s9 + $0x330] sm:$0xff]   ;;  %v5999_v20 = vld [vmem:[%s7887_s9 + $0x3a0] sm:$0xff]  }
0x17c3   :  { %5415 = vmatpush3.bf16.msra.mxu0 %v5958_v5  ;;  %5433 = vmatpush3.bf16.msra.mxu1 %v5959_v29  ;;  %v6000_v5 = vld [vmem:[%s7887_s9 + $0x378] sm:$0xff]   ;;  %v6001_v29 = vld [vmem:[%s7887_s9 + $0x3e8] sm:$0xff]  }
0x17c4   :  { %5416 = vmatprep.subr.bf16.mxu0 %v5960_v62  ;;  %5434 = vmatprep.subr.bf16.mxu1 %v5961_v63  ;;  %v6002_v62 = vld [vmem:[%s7887_s9 + $0x338] sm:$0xff]   ;;  %v6003_v63 = vld [vmem:[%s7887_s9 + $0x3a8] sm:$0xff]  }
0x17c7   :  { %5417 = vmatpush3.bf16.msra.mxu0 %v5962_v18  ;;  %5435 = vmatpush3.bf16.msra.mxu1 %v5963_v28  ;;  %v4432_v18 = vpack.c.bf16 %v4416_v44, %v4416_v44  ;;  %v7975_v28 = vld [vmem:[#allocation8_spill] sm:$0xff] }
0x17c8   :  { %5418 = vmatprep.subr.bf16.mxu0 %v5964_v46  ;;  %5436 = vmatprep.subr.bf16.mxu1 %v5965_v35  ;;  %v4398_v41 = vadd.f32 %v7592_v48, %v7975_v28  ;;  %v6005_v46 = vld [vmem:[%s7887_s9 + $0x3b0] sm:$0xff]   ;;  %v6007_v48 = vld [vmem:[%s7887_s9 + $0x3b8] sm:$0xff]  }
0x17ca   :  { %v4418_v35 = vmax.f32 %v4398_v41, 0.0 }
0x17cb   :  { %5419 = vmatpush3.bf16.msra.mxu0 %v5966_v54  ;;  %5437 = vmatpush3.bf16.msra.mxu1 %v5967_v17 }
0x17cc   :  { %5420 = vmatprep.subr.bf16.mxu0 %v5968_v1  ;;  %5438 = vmatprep.subr.bf16.mxu1 %v5969_v51  ;;  %v4434_v60 = vpack.c.bf16 %v4418_v35, %v4418_v35 }
0x17cf   :  { %5421 = vmatpush3.bf16.msra.mxu0 %v5970_v53  ;;  %5439 = vmatpush3.bf16.msra.mxu1 %v5971_v9  ;;  %v6008_v9 = vld [vmem:[%s7888_s10] ss:$0 sm:$0xff] }
0x17d0   :  { %5440 = vmatprep.subr.bf16.mxu1 %v5972_v50  ;;  %5450 = vmatprep.subr.bf16.mxu0 %v5973_v16 }
0x17d2   :  { %4629 = vmatmul.mubr.bf16.vlgmr.msra.gmra.mrb[96].mxu0 %v4428_v42 }
0x17d3   :  { %5441 = vmatpush3.bf16.msra.mxu1 %v5974_v3  ;;  %5451 = vmatpush3.bf16.msra.mxu0 %v5975_v58 }
0x17d4   :  { %4708 = vmatprep.mubr.bf16.mxu0 %v4433_v4  ;;  %5442 = vmatprep.subr.bf16.mxu1 %v5976_v23 }
0x17d5   :  { %5452 = vmatprep.subr.bf16.mxu0 %v5977_v33 }
0x17d7   :  { %5443 = vmatpush3.bf16.msra.mxu1 %v5978_v37  ;;  %5453 = vmatpush3.bf16.msra.mxu0 %v5979_v6 }
0x17d8   :  { %5454 = vmatprep.subr.bf16.mxu0 %v5980_v12  ;;  %5472 = vmatprep.subr.bf16.mxu1 %v5981_v13 }
0x17da   :  { %4669 = vmatmul.mubr.bf16.vlgmr.msra.gmra.mrb[96].mxu1 %v4430_v7 }
0x17db   :  { %5455 = vmatpush3.bf16.msra.mxu0 %v5982_v25  ;;  %5473 = vmatpush3.bf16.msra.mxu1 %v5983_v26 }
0x17dc   :  { %4748 = vmatprep.mubr.bf16.mxu1 %v4435_v24  ;;  %5456 = vmatprep.subr.bf16.mxu0 %v5984_v27 }
0x17dd   :  { %5474 = vmatprep.subr.bf16.mxu1 %v5985_v30 }
0x17df   :  { %5457 = vmatpush3.bf16.msra.mxu0 %v5986_v39  ;;  %5475 = vmatpush3.bf16.msra.mxu1 %v5987_v40 }
0x17e0   :  { %5458 = vmatprep.subr.bf16.mxu0 %v5988_v45  ;;  %5476 = vmatprep.subr.bf16.mxu1 %v5989_v52 }
0x17e3   :  { %5459 = vmatpush3.bf16.msra.mxu0 %v5990_v56  ;;  %5477 = vmatpush3.bf16.msra.mxu1 %v5991_v49 }
0x17e4   :  { %5460 = vmatprep.subr.bf16.mxu0 %v5992_v55  ;;  %5478 = vmatprep.subr.bf16.mxu1 %v5993_v34 }
0x17e7   :  { %5461 = vmatpush3.bf16.msra.mxu0 %v5994_v36  ;;  %5479 = vmatpush3.bf16.msra.mxu1 %v5995_v32 }
0x17e8   :  { %5462 = vmatprep.subr.bf16.mxu0 %v5996_v57  ;;  %5480 = vmatprep.subr.bf16.mxu1 %v5997_v11  ;;  %v3051_v57 = vmul.f32 0.03125, %v3050_v38 }
0x17eb   :  { %5463 = vmatpush3.bf16.msra.mxu0 %v5998_v15  ;;  %5481 = vmatpush3.bf16.msra.mxu1 %v5999_v20 }
0x17ec   :  { %5464 = vmatprep.subr.bf16.mxu0 %v6000_v5  ;;  %5482 = vmatprep.subr.bf16.mxu1 %v6001_v29  ;;  %v3052_v29 = vsub.f32 %v7214_v2, %v3051_v57  ;;  %v6047_v2 = vmov 1966171168  }
0x17ee   :  { %v3053_v28 = vmul.f32 %v3052_v29, %v3052_v29 }
0x17ef   :  { %5465 = vmatpush3.bf16.msra.mxu0 %v6002_v62  ;;  %5483 = vmatpush3.bf16.msra.mxu1 %v6003_v63 }
0x17f0   :  { %5484 = vmatprep.subr.bf16.mxu1 %v6004_v43  ;;  %v3054_v41 = vsel %vm419_vm8, %v3053_v28, 0.0 }
0x17f2   :  { %4709 = vmatmul.mubr.bf16.vlgmr.msra.gmra.mrb[100].mxu0 %v4432_v18 }
0x17f3   :  { %5485 = vmatpush3.bf16.msra.mxu1 %v6005_v46 }
0x17f4   :  { %5486 = vmatprep.subr.bf16.mxu1 %v6006_v21 }
0x17f7   :  { %5487 = vmatpush3.bf16.msra.mxu1 %v6007_v48 }
0x17fa   :  { %4749 = vmatmul.mubr.bf16.vlgmr.msra.gmra.mrb[100].mxu1 %v4434_v60 }
0x1865   :  { %v5334_v54 = vpop.f32.mrb[88].mxu0 }
0x1866   :  { %v5335_v17 = vpop.f32.mrb[89].mxu0 }
0x1867   :  { %v5336_v8 = vadd.f32 %v5335_v17, %v5334_v54  ;;  %v5337_v1 = vpop.f32.mrb[90].mxu0 }
0x1868   :  { %v5338_v51 = vpop.f32.mrb[91].mxu0 }
0x1869   :  { %v4471_v42 = vadd.f32 %v6008_v9, %v5336_v8  ;;  %v5065_v51 = vld [vmem:[%s7889_s11] ss:$0 sm:$0xff]  ;;  %s6048_s11 = smov [#allocation2]  }
0x186a   :  { %v7976_v9 = vld [vmem:[#allocation7_spill] sm:$0xff] }
0x186d   :  { %v5356_v19 = vpop.f32.mrb[88].mxu1 }
0x186e   :  { %v5357_v53 = vpop.f32.mrb[89].mxu1 }
0x186f   :  { %v5358_v59 = vadd.f32 %v5357_v53, %v5356_v19  ;;  %v5359_v14 = vpop.f32.mrb[90].mxu1  ;;  %v5066_v53 = vld [vmem:[%s7890_s12] ss:$0 sm:$0xff]  ;;  %s4866_s12 = sshll.u32 %s6048_s11, 4  ;;  %s4867_s12 = int_to_ptr.vmem [resolvable:$true] %s4866_s12 }
0x1870   :  { %v5360_v50 = vpop.f32.mrb[91].mxu1  ;;  %s6009_s5 = scalar_lea.vmem %s4867_s12, 256  ;;  %p6014_p1 = scmp.lt.s32.totalorder %s4867_s12, %s4867_s12 }
0x1871   :  { %v4511_v16 = vadd.f32 %v5358_v59, %v4471_v42  ;;  %p6010_p0 = scmp.ne.s32.totalorder %s4867_s12, %s6009_s5  ;;  %p6015_p2 = scmp.lt.s32.totalorder %s6009_s5, %s6009_s5 }
0x1873   :  { %p6016_p3 = por %p6015_p2, %p6014_p1 }
0x1875   :  { %p6017_p4 = pnand %p6016_p3, %p6010_p0 }
0x1885   :  { %v5378_v4 = vpop.f32.mrb[92].mxu0 }
0x1886   :  { %v5379_v61 = vpop.f32.mrb[93].mxu0 }
0x1887   :  { %v5380_v47 = vadd.f32 %v5379_v61, %v5378_v4  ;;  %v5381_v3 = vpop.f32.mrb[94].mxu0 }
0x1888   :  { %v5382_v58 = vpop.f32.mrb[95].mxu0 }
0x1889   :  { %v4551_v22 = vadd.f32 %v5380_v47, %v4511_v16 }
0x188d   :  { %v5400_v23 = vpop.f32.mrb[92].mxu1 }
0x188e   :  { %v5401_v33 = vpop.f32.mrb[93].mxu1 }
0x188f   :  { %v5402_v0 = vadd.f32 %v5401_v33, %v5400_v23  ;;  %v5403_v37 = vpop.f32.mrb[94].mxu1 }
0x1890   :  { %v5404_v6 = vpop.f32.mrb[95].mxu1 }
0x1891   :  { %v4591_v7 = vadd.f32 %v5402_v0, %v4551_v22 }
0x18a5   :  { %v5422_v12 = vpop.f32.mrb[96].mxu0 }
0x18a6   :  { %v5423_v13 = vpop.f32.mrb[97].mxu0 }
0x18a7   :  { %v5424_v24 = vadd.f32 %v5423_v13, %v5422_v12  ;;  %v5425_v25 = vpop.f32.mrb[98].mxu0 }
0x18a8   :  { %v5426_v26 = vpop.f32.mrb[99].mxu0 }
0x18a9   :  { %v4631_v27 = vadd.f32 %v5424_v24, %v4591_v7 }
0x18ad   :  { %v5444_v30 = vpop.f32.mrb[96].mxu1 }
0x18ae   :  { %v5445_v39 = vpop.f32.mrb[97].mxu1 }
0x18af   :  { %v5446_v40 = vadd.f32 %v5445_v39, %v5444_v30  ;;  %v5447_v45 = vpop.f32.mrb[98].mxu1 }
0x18b0   :  { %v5448_v52 = vpop.f32.mrb[99].mxu1 }
0x18b1   :  { %v4671_v56 = vadd.f32 %v5446_v40, %v4631_v27 }
0x18c5   :  { %v5466_v49 = vpop.f32.mrb[100].mxu0 }
0x18c6   :  { %v5467_v55 = vpop.f32.mrb[101].mxu0 }
0x18c7   :  { %v5468_v34 = vadd.f32 %v5467_v55, %v5466_v49  ;;  %v5469_v36 = vpop.f32.mrb[102].mxu0 }
0x18c8   :  { %v5470_v32 = vpop.f32.mrb[103].mxu0 }
0x18c9   :  { %v4711_v10 = vadd.f32 %v5468_v34, %v4671_v56 }
0x18cd   :  { %v5488_v11 = vpop.f32.mrb[100].mxu1 }
0x18ce   :  { %v5489_v15 = vpop.f32.mrb[101].mxu1 }
0x18cf   :  { %v5490_v20 = vadd.f32 %v5489_v15, %v5488_v11  ;;  %v5491_v44 = vpop.f32.mrb[102].mxu1 }
0x18d0   :  { %v5492_v5 = vpop.f32.mrb[103].mxu1 }
0x18d1   :  { %v4751_v62 = vadd.f32 %v5490_v20, %v4711_v10 }
0x18d3   :  { %v4779_v63 = vadd.f32 %v7370_v31, %v4751_v62  ;;  %v3078_v31 = vunpack.c.l.s4 %v6047_v2 }
0x18d5   :  { %v4780_v18 = vsel %vm419_vm8, %v4779_v63, 0.0  ;;  %v3079_v8 = vunpack.c.0.s8 %v3078_v31 }
0x18d6   :  { %4781 = vadd.xlane.f32.xlu1 %v4780_v18 }
0x18d7   :  { %v3082_v42 = vsub.s32 %v3079_v8, %v7976_v9 }
0x18da   :  { %3055 = vadd.xlane.f32.xlu1 %v3054_v41 }
0x1963   :  { %v4782_v43 = vpop.xlane.xlu1 %4781 }
0x1964   :  { %v4783_v46 = vmul.f32 0.03125, %v4782_v43 }
0x1966   :  { %v4784_v35 = vsub.f32 %v4779_v63, %v4783_v46 }
0x1967   :  { %v3056_v21 = vpop.xlane.xlu1 %3055 }
0x1968   :  { %v3057_v48 = vmul.f32 0.03125, %v3056_v21  ;;  %v4785_v60 = vmul.f32 %v4784_v35, %v4784_v35 }
0x196a   :  { %v3058_v54 = vadd.f32 1e-05, %v3057_v48  ;;  %v4786_v17 = vsel %vm419_vm8, %v4785_v60, 0.0 }
0x196b   :  { %4787 = vadd.xlane.f32.xlu1 %v4786_v17 }
0x196c   :  { %5862 = vrsqrt.f32 %v3058_v54 }
0x1976   :  { %v5863_v1 = vpop.eup %5862 }
0x1977   :  { %v3060_v19 = vmul.f32 %v5863_v1, %v3052_v29 }
0x1979   :  { %v3067_v59 = vmul.f32 %v5065_v51, %v3060_v19 }
0x197b   :  { %v3074_v14 = vadd.f32 %v5066_v53, %v3067_v59 }
0x197d   :  { %v3076_v50 = vcombine.high %v3074_v14, %v3074_v14  ;;  %v3083_v16 = vrot.slane %v3074_v14, %v3082_v42 }
0x197f   :  { %v3090_v4 = vrot.slane %v3076_v50, %v3082_v42  ;;  %v3091_v61 = vcombine.high %v3083_v16, %v3083_v16  ;;  %v3099_v47 = vrot.slane %v3083_v16, %v3082_v42 }
0x1981   :  { %v3092_v3 = vcombine.high %v3090_v4, %v3090_v4  ;;  %v3106_v58 = vrot.slane %v3090_v4, %v3082_v42  ;;  %v3113_v22 = vrot.slane %v3091_v61, %v3082_v42  ;;  %v3121_v23 = vcombine.high %v3099_v47, %v3099_v47  ;;  %3134 = vst.msk [vmem:[#allocation2] sm:$0x1] %vm3133_vm11, %v3099_v47 }
0x1983   :  { %v3120_v33 = vrot.slane %v3092_v3, %v3082_v42  ;;  %v3122_v0 = vcombine.high %v3106_v58, %v3106_v58  ;;  %v3123_v37 = vcombine.high %v3113_v22, %v3113_v22  ;;  %3135 = vst.msk [vmem:[#allocation2 + $0x2] sm:$0x1] %vm3133_vm11, %v3113_v22  ;;  %3136 = vst.msk [vmem:[#allocation2 + $0x4] sm:$0x1] %vm3133_vm11, %v3121_v23 }
0x1984   :  { %3138 = vst.msk [vmem:[#allocation2 + $0x8] sm:$0x1] %vm3133_vm11, %v3106_v58 }
0x1985   :  { %v3124_v6 = vcombine.high %v3120_v33, %v3120_v33  ;;  %3137 = vst.msk [vmem:[#allocation2 + $0x6] sm:$0x1] %vm3133_vm11, %v3123_v37  ;;  %3139 = vst.msk [vmem:[#allocation2 + $0xa] sm:$0x1] %vm3133_vm11, %v3120_v33 }
0x1986   :  { %3140 = vst.msk [vmem:[#allocation2 + $0xc] sm:$0x1] %vm3133_vm11, %v3122_v0 }
0x1987   :  { %3141 = vst.msk [vmem:[#allocation2 + $0xe] sm:$0x1] %vm3133_vm11, %v3124_v6 }
0x19f8   :  { %v4788_v7 = vpop.xlane.xlu1 %4787 }
0x19f9   :  { %v4789_v12 = vmul.f32 0.03125, %v4788_v7 }
0x19fb   :  { %v4790_v13 = vadd.f32 1e-05, %v4789_v12 }
0x19fd   :  { %5864 = vrsqrt.f32 %v4790_v13 }
0x1a07   :  { %v5865_v24 = vpop.eup %5864 }
0x1a08   :  { %v4792_v25 = vmul.f32 %v5865_v24, %v4784_v35 }
0x1a0a   :  { %v4793_v26 = vmul.f32 %v5065_v51, %v4792_v25 }
0x1a0c   :  { %v4794_v27 = vadd.f32 %v5066_v53, %v4793_v26 }
0x1a0e   :  { %v4796_v30 = vcombine.high %v4794_v27, %v4794_v27  ;;  %v4803_v39 = vrot.slane %v4794_v27, %v3082_v42 }
0x1a10   :  { %v4810_v40 = vrot.slane %v4796_v30, %v3082_v42  ;;  %v4811_v45 = vcombine.high %v4803_v39, %v4803_v39  ;;  %v4819_v52 = vrot.slane %v4803_v39, %v3082_v42 }
0x1a12   :  { %v4812_v56 = vcombine.high %v4810_v40, %v4810_v40  ;;  %v4826_v49 = vrot.slane %v4810_v40, %v3082_v42  ;;  %v4833_v55 = vrot.slane %v4811_v45, %v3082_v42  ;;  %v4841_v34 = vcombine.high %v4819_v52, %v4819_v52  ;;  %4853 = vst.msk [vmem:[#allocation2 + $0x1] sm:$0x1] %vm3133_vm11, %v4819_v52 }
0x1a14   :  { %v4840_v36 = vrot.slane %v4812_v56, %v3082_v42  ;;  %v4842_v32 = vcombine.high %v4826_v49, %v4826_v49  ;;  %v4843_v10 = vcombine.high %v4833_v55, %v4833_v55  ;;  %4854 = vst.msk [vmem:[#allocation2 + $0x3] sm:$0x1] %vm3133_vm11, %v4833_v55  ;;  %4855 = vst.msk [vmem:[#allocation2 + $0x5] sm:$0x1] %vm3133_vm11, %v4841_v34 }
0x1a15   :  { %4857 = vst.msk [vmem:[#allocation2 + $0x9] sm:$0x1] %vm3133_vm11, %v4826_v49 }
0x1a16   :  { %v4844_v38 = vcombine.high %v4840_v36, %v4840_v36  ;;  %4856 = vst.msk [vmem:[#allocation2 + $0x7] sm:$0x1] %vm3133_vm11, %v4843_v10  ;;  %4858 = vst.msk [vmem:[#allocation2 + $0xb] sm:$0x1] %vm3133_vm11, %v4840_v36 }
0x1a17   :  { %4859 = vst.msk [vmem:[#allocation2 + $0xd] sm:$0x1] %vm3133_vm11, %v4842_v32 }
0x1a18   :  { %4860 = vst.msk [vmem:[#allocation2 + $0xf] sm:$0x1] %vm3133_vm11, %v4844_v38 }
0x1a19   :  { %6020 = shalt.err (!%p6017_p4)
}
0x1a1a   :  { %s6021_s27 = scalar_lea.hbm %s7891_s13, 256 }
0x1a1b   :  { %p6022_p5 = scmp.ne.s32.totalorder %s7891_s13, %s6021_s27  ;;  %p6025_p6 = scmp.lt.u32.totalorder %s6021_s27, %s7891_s13 }
0x1a1d   :  { %p6027_p7 = pnand %p6025_p6, %p6022_p5 }
0x1a1f   :  { %6030 = shalt.err (!%p6027_p7)
}
0x1a20   :  { %s6049_s2 = smov 32   ;;  %s6050_s30 = smov 2  }
0x1a21   :  { %4872 = dma.vmem_to_hbm [thread:$0]  %s4867_s12, 256, %s7891_s13, [#allocation3], %s6049_s2, %s6049_s2, %s6050_s30  }
0x1a22   :  { %6031 = dma.done.wait [#allocation3], 256  }
0x1a23   :  { %6032 = vsyncadd [#allocation3], 4294967040 }
0x1a24   :  { %4876 = vsyncpa [#allocation3], 1 }

</bundles_post_ra>
